<compile_context>
chip_gen: v7x
topology: tpu7x:2x2x1
jax: 0.10.0
libtpu: 0.0.40
codegen_flags: <defaults>
</compile_context>

<pallas_src>
import math
import functools

import jax
import jax.numpy as jnp
from jax import lax
from jax.experimental import pallas as pl
from jax.experimental.pallas import tpu as pltpu


# ----------------------------------------------------------------------------
# shared in-kernel helpers
# ----------------------------------------------------------------------------
def _res_block(h, w1, b1, w2, b2):
    # ResLayer(x) = x + relu(W2 @ relu(W1 @ x + b1) + b2)
    # (matches the reference ResLayer: ReLU after both inner linears, residual add)
    t = jnp.maximum(jnp.dot(h, w1, preferred_element_type=jnp.float32) + b1, 0.0)
    t = jnp.maximum(jnp.dot(t, w2, preferred_element_type=jnp.float32) + b2, 0.0)
    return h + t


def _log_softmax_last(x):
    m = jnp.max(x, axis=-1, keepdims=True)
    return x - m - jnp.log(jnp.sum(jnp.exp(x - m), axis=-1, keepdims=True))


def _fetch_ahead(x, k):
    """out[:, c] = x[:, (c + k) % ncols].  Static lane slices + concat, so the
    shift direction is unambiguous and lowering is trivial."""
    if k == 0:
        return x
    return jnp.concatenate([x[:, k:], x[:, :k]], axis=1)


def _grouped_left(v, head0, colj, g_mat, gt_mat, nt_t):
    """rule_l = head0[p] + log_softmax_q( v[:, p*nt_t + q] )  — groups are
    contiguous lane blocks of width nt_t.  Per-group max: log2(nt_t) masked
    rotation+max steps (cyclic within group).  Group sums / broadcast: one-hot
    MXU matmuls (exact one-hot weights, HIGHEST precision)."""
    nn2 = v.shape[1]
    m = v
    s = 1
    while s < nt_t:
        near = _fetch_ahead(m, s)                 # m[c + s]          (valid iff j + s < nt_t)
        wrap = _fetch_ahead(m, nn2 - nt_t + s)    # m[c + s - nt_t]   (cyclic within the group)
        m = jnp.maximum(m, jnp.where(colj < nt_t - s, near, wrap))
        s *= 2
    # m is now the exact per-group max, already broadcast to every column.
    e = jnp.exp(v - m)
    gsum = jnp.dot(e, gt_mat, preferred_element_type=jnp.float32,
                   precision=lax.Precision.HIGHEST)              # (rows, nt_t): sum over q
    corr = head0 - jnp.log(gsum)                                 # (rows, nt_t), indexed by p
    corr_full = jnp.dot(corr, g_mat, preferred_element_type=jnp.float32,
                        precision=lax.Precision.HIGHEST)         # col c -> corr[:, c // nt_t]
    return (v - m) + corr_full


def _grouped_right(v, head1, g2t_mat, nt_t):
    """rule_r = head1[q] + log_softmax_p( v[:, p*nt_t + q] )  — groups are
    strided (stride nt_t), i.e. cyclic under rotations by multiples of nt_t."""
    nn2 = v.shape[1]
    m = v
    s = nt_t
    while s < nn2:
        m = jnp.maximum(m, _fetch_ahead(m, s))
        s *= 2
    e = jnp.exp(v - m)
    gsum = jnp.dot(e, g2t_mat, preferred_element_type=jnp.float32,
                   precision=lax.Precision.HIGHEST)              # (rows, nt_t): sum over p
    corr = head1 - jnp.log(gsum)                                 # (rows, nt_t), indexed by q
    corr_full = jnp.concatenate([corr] * nt_t, axis=-1)          # col c -> corr[:, c % nt_t]
    return (v - m) + corr_full


def _mlp4_logsoftmax_body(x, p):
    w0, b0, r1w1, r1b1, r1w2, r1b2, r2w1, r2b1, r2w2, r2b2, wo, bo = p
    h = jnp.dot(x, w0, preferred_element_type=jnp.float32) + b0
    h = _res_block(h, r1w1, r1b1, r1w2, r1b2)
    h = _res_block(h, r2w1, r2b1, r2w2, r2b2)
    return _log_softmax_last(jnp.dot(h, wo, preferred_element_type=jnp.float32) + bo)


# ----------------------------------------------------------------------------
# Kernel 1: fused root_mlp + term_mlp  (Linear -> ResLayer x2 -> Linear -> lsm)
# ----------------------------------------------------------------------------
def root_term_kernel(root_in_ref, emit_in_ref, *refs):
    rp = [r[...] for r in refs[:12]]
    tp = [r[...] for r in refs[12:24]]
    root_out_ref = refs[24]
    term_out_ref = refs[25]
    root_out_ref[...] = _mlp4_logsoftmax_body(root_in_ref[...], rp)
    term_out_ref[...] = _mlp4_logsoftmax_body(emit_in_ref[...], tp)


def root_term_pallas(root_emb, emit_in, root_params, term_params):
    NT = root_params[-2].shape[1]
    V = term_params[-2].shape[1]
    NT_T = emit_in.shape[0]
    inputs = [root_emb, emit_in] + list(root_params) + list(term_params)
    in_specs = [pl.BlockSpec(a.shape, lambda i, _r=a.ndim: (0,) * _r) for a in inputs]
    out_shape = (jax.ShapeDtypeStruct((1, NT), jnp.float32),
                 jax.ShapeDtypeStruct((NT_T, V), jnp.float32))
    out_specs = (pl.BlockSpec((1, NT), lambda i: (0, 0)),
                 pl.BlockSpec((NT_T, V), lambda i: (0, 0)))
    return pl.pallas_call(
        root_term_kernel,
        out_shape=out_shape,
        grid=(1,),
        in_specs=in_specs,
        out_specs=out_specs,
    )(*inputs)


# ----------------------------------------------------------------------------
# Kernel 2: rule scores.  One grid step = one batch element; all NT nonterms
# of that element's N positions are processed as a single (NT*N, .) row block.
# Output is a single lane-dense (B, 2, N, NT*NT_T^2) array:
#     out[b, 0, n, a*nn2 + p*NT_T + q] = head0 + left  log-probs
#     out[b, 1, n, a*nn2 + p*NT_T + q] = head1 + right log-probs
# so the final (B, 2, N, NT, NT_T, NT_T) is a free reshape.
# ----------------------------------------------------------------------------
def rules_kernel(x_ref, hw0w_ref, r1w1_ref, r1b1_ref, r1w2_ref, r1b2_ref,
                 hwo_ref, hbo_ref, lww_ref, rww_ref,
                 nth_ref, ntl_ref, ntr_ref,
                 g_ref, gt_ref, g2t_ref, colj_ref,
                 out_ref, *, NT, NT_T):
    nn2 = NT_T * NT_T
    xw = x_ref[0]                                  # (N, S) word embeddings
    N = xw.shape[0]

    # ---- word-side projections: once per word position (~NT x FLOP saving) ----
    wx_h = jnp.dot(xw, hw0w_ref[...], preferred_element_type=jnp.float32)   # (N, S)
    wx_l = jnp.dot(xw, lww_ref[...], preferred_element_type=jnp.float32)    # (N, nn2)
    wx_r = jnp.dot(xw, rww_ref[...], preferred_element_type=jnp.float32)    # (N, nn2)

    nt_h = nth_ref[...]          # (NT, S)   nonterm-side head projection (+ bias)
    nt_l = ntl_ref[...]          # (NT, nn2) nonterm-side left  projection (+ bias)
    nt_r = ntr_ref[...]          # (NT, nn2) nonterm-side right projection (+ bias)

    # ---- combine halves; rows ordered (a, n): row = a*N + n --------------------
    h = jnp.concatenate([wx_h + nt_h[a] for a in range(NT)], axis=0)        # (NT*N, S)
    v_l = jnp.concatenate([wx_l + nt_l[a] for a in range(NT)], axis=0)      # (NT*N, nn2)
    v_r = jnp.concatenate([wx_r + nt_r[a] for a in range(NT)], axis=0)      # (NT*N, nn2)

    # ---- head MLP: ResLayer + single fused (S, 2*NT_T) output matmul -----------
    h = _res_block(h, r1w1_ref[...], r1b1_ref[...], r1w2_ref[...], r1b2_ref[...])
    head = jnp.dot(h, hwo_ref[...], preferred_element_type=jnp.float32) + hbo_ref[...]
    head = _log_softmax_last(head)          # joint softmax over 2*NT_T (cols pre-split [even|odd])
    head0 = head[:, :NT_T]                  # == head_scores[..., 0]
    head1 = head[:, NT_T:]                  # == head_scores[..., 1]

    colj = colj_ref[...]                    # (1, nn2) int32: column index mod NT_T
    rule_l = _grouped_left(v_l, head0, colj, g_ref[...], gt_ref[...], NT_T)   # (NT*N, nn2)
    rule_r = _grouped_right(v_r, head1, g2t_ref[...], NT_T)                   # (NT*N, nn2)

    # ---- pack nonterminal slabs along lanes -> one lane-dense store per side ---
    out_ref[0, 0] = jnp.concatenate([rule_l[a * N:(a + 1) * N] for a in range(NT)], axis=-1)
    out_ref[0, 1] = jnp.concatenate([rule_r[a * N:(a + 1) * N] for a in range(NT)], axis=-1)


def rules_pallas(x_emb, hw0_w, hr1w1, hr1b1, hr1w2, hr1b2, hwo_p, hbo_p,
                 lw_w, rw_w, nt_h, nt_l, nt_r, g_mat, gt_mat, g2t_mat, colj,
                 *, NT, NT_T):
    B, N, S = x_emb.shape
    nn2 = NT_T * NT_T
    others = [hw0_w, hr1w1, hr1b1, hr1w2, hr1b2, hwo_p, hbo_p, lw_w, rw_w,
              nt_h, nt_l, nt_r, g_mat, gt_mat, g2t_mat, colj]
    in_specs = [pl.BlockSpec((1, N, S), lambda b: (b, 0, 0))]
    in_specs += [pl.BlockSpec(a.shape, lambda b, _r=a.ndim: (0,) * _r) for a in others]
    out_spec = pl.BlockSpec((1, 2, N, NT * nn2), lambda b: (b, 0, 0, 0))
    return pl.pallas_call(
        functools.partial(rules_kernel, NT=NT, NT_T=NT_T),
        out_shape=jax.ShapeDtypeStruct((B, 2, N, NT * nn2), jnp.float32),
        grid=(B,),
        in_specs=in_specs,
        out_specs=out_spec,
        compiler_params=pltpu.CompilerParams(dimension_semantics=("parallel",)),
        # for large configs: pltpu.CompilerParams(..., vmem_limit_bytes=<per-chip budget>)
    )(x_emb, *others)


# ----------------------------------------------------------------------------
# parameter construction (deterministic, xavier-uniform like the module)
# ----------------------------------------------------------------------------
def _xavier(key, in_dim, out_dim):
    bound = math.sqrt(6.0 / (in_dim + out_dim))
    return jax.random.uniform(key, (in_dim, out_dim), jnp.float32, -bound, bound)


def build_params(key, NT, T, S, V):
    NT_T = NT + T
    keys = iter(jax.random.split(key, 64))

    def lin(in_d, out_d):
        w = _xavier(next(keys), in_d, out_d)
        bb = 1.0 / math.sqrt(in_d)
        b = jax.random.uniform(next(keys), (1, out_d), jnp.float32, -bb, bb)
        return w, b

    def mlp4(in_d, hid, out_d):
        w0, b0 = lin(in_d, hid)
        r1a, r1b = lin(hid, hid)
        r1c, r1d = lin(hid, hid)
        r2a, r2b = lin(hid, hid)
        r2c, r2d = lin(hid, hid)
        wo, bo = lin(hid, out_d)
        return [w0, b0, r1a, r1b, r1c, r1d, r2a, r2b, r2c, r2d, wo, bo]

    p = {}
    p['term_emb'] = _xavier(next(keys), T, S)
    p['nonterm_emb'] = _xavier(next(keys), NT, S)
    p['nonterm_emission_emb'] = _xavier(next(keys), NT, S)
    p['root_emb'] = _xavier(next(keys), 1, S)
    p['word_emb'] = _xavier(next(keys), V, S)
    p['root_mlp'] = mlp4(S, S, NT)
    p['term_mlp'] = mlp4(S, S, V)

    # head_mlp: Linear(2S,S) -> ResLayer(S,S) -> Linear(S, 2*NT_T)  (raw weights)
    hw0, hb0 = lin(2 * S, S)
    hr1a, hr1b = lin(S, S)
    hr1c, hr1d = lin(S, S)
    hwo, hbo = lin(S, 2 * NT_T)
    p['head_mlp'] = [hw0, hb0, hr1a, hr1b, hr1c, hr1d, hwo, hbo]

    p['left'] = lin(2 * S, NT_T * NT_T)
    p['right'] = lin(2 * S, NT_T * NT_T)
    return p


# ----------------------------------------------------------------------------
# forward pass (matches NeuralLPCFG.forward with eval_dep=False)
# ----------------------------------------------------------------------------
def neural_lpcfg_forward(params, x, *, NT, T, S, V):
    B, N = x.shape
    NT_T = NT + T
    nn2 = NT_T * NT_T

    # roots() + terms(): fused root_mlp / term_mlp pallas_call
    emit_in = jnp.concatenate([params['nonterm_emission_emb'],
                               params['term_emb']], axis=0)              # (NT_T, S)
    root_lp, term_lp = root_term_pallas(params['root_emb'], emit_in,
                                        params['root_mlp'], params['term_mlp'])
    root = jnp.broadcast_to(root_lp, (B, NT))                            # (B, NT)
    unary = term_lp.T[x]                                                 # (B, N, NT_T)

    # rules(): algebraic split of the [word ; nonterm] concat input
    x_emb = params['word_emb'][x]                                        # (B, N, S)
    nt_emb = params['nonterm_emb']                                       # (NT, S)

    hw0, hb0, hr1w1, hr1b1, hr1w2, hr1b2, hwo, hbo = params['head_mlp']
    lw, lb = params['left']
    rw, rb = params['right']

    hw0_w, hw0_n = hw0[:S], hw0[S:]
    lw_w, lw_n = lw[:S], lw[S:]
    rw_w, rw_n = rw[:S], rw[S:]

    # tiny nonterm-side projections, done once (biases folded here)
    nt_h = nt_emb @ hw0_n + hb0                                          # (NT, S)
    nt_l = nt_emb @ lw_n + lb                                            # (NT, nn2)
    nt_r = nt_emb @ rw_n + rb                                            # (NT, nn2)

    # head output columns pre-split [even | odd] so the kernel can slice halves
    hwo_p = jnp.concatenate([hwo[:, 0::2], hwo[:, 1::2]], axis=1)        # (S, 2*NT_T)
    hbo_p = jnp.concatenate([hbo[:, 0::2], hbo[:, 1::2]], axis=1)        # (1, 2*NT_T)

    # one-hot group matrices + column-index constants for the grouped softmaxes
    cols = jnp.arange(nn2)
    g_mat = (cols[None, :] // NT_T == jnp.arange(NT_T)[:, None]).astype(jnp.float32)   # (NT_T, nn2)
    gt_mat = g_mat.T                                                                    # (nn2, NT_T)
    g2t_mat = (cols[:, None] % NT_T == jnp.arange(NT_T)[None, :]).astype(jnp.float32)   # (nn2, NT_T)
    colj = (cols % NT_T).astype(jnp.int32)[None, :]                                     # (1, nn2)

    rule_packed = rules_pallas(x_emb, hw0_w, hr1w1, hr1b1, hr1w2, hr1b2,
                               hwo_p, hbo_p, lw_w, rw_w, nt_h, nt_l, nt_r,
                               g_mat, gt_mat, g2t_mat, colj, NT=NT, NT_T=NT_T)
    rule = rule_packed.reshape(B, 2, N, NT, NT_T, NT_T)   # free reshape, no copy

    return {'unary': unary, 'root': root, 'rule': rule,
            'kl': jnp.zeros((), jnp.float32)}


# ----------------------------------------------------------------------------
# plain-JAX reference (transcription of the PyTorch forward) for self-checking
# ----------------------------------------------------------------------------
def neural_lpcfg_reference(params, x, *, NT, T, S, V):
    B, N = x.shape
    NT_T = NT + T

    def mlp4(xx, p):
        w0, b0, r1w1, r1b1, r1w2, r1b2, r2w1, r2b1, r2w2, r2b2, wo, bo = p
        h = xx @ w0 + b0
        h = h + jax.nn.relu(jax.nn.relu(h @ r1w1 + r1b1) @ r1w2 + r1b2)
        h = h + jax.nn.relu(jax.nn.relu(h @ r2w1 + r2b1) @ r2w2 + r2b2)
        return h @ wo + bo

    root = jax.nn.log_softmax(mlp4(params['root_emb'], params['root_mlp']), axis=-1)
    root = jnp.broadcast_to(root, (B, NT))

    emit_in = jnp.concatenate([params['nonterm_emission_emb'], params['term_emb']], axis=0)
    term_prob = jax.nn.log_softmax(mlp4(emit_in, params['term_mlp']), axis=-1)
    unary = term_prob.T[x]

    x_emb = params['word_emb'][x]
    nt_emb = params['nonterm_emb']
    nt_x = jnp.concatenate(
        [jnp.broadcast_to(x_emb[:, :, None, :], (B, N, NT, S)),
         jnp.broadcast_to(nt_emb[None, None, :, :], (B, N, NT, S))], axis=-1)

    hw0, hb0, hr1w1, hr1b1, hr1w2, hr1b2, hwo, hbo = params['head_mlp']
    hh = nt_x @ hw0 + hb0
    hh = hh + jax.nn.relu(jax.nn.relu(hh @ hr1w1 + hr1b1) @ hr1w2 + hr1b2)
    head = jax.nn.log_softmax(hh @ hwo + hbo, axis=-1).reshape(B, N, NT, NT_T, 2)

    lw, lb = params['left']
    rw, rb = params['right']
    left = jax.nn.log_softmax((nt_x @ lw + lb).reshape(B, N, NT, NT_T, NT_T), axis=-1)
    right = jax.nn.log_softmax((nt_x @ rw + rb).reshape(B, N, NT, NT_T, NT_T), axis=-2)
    rule = jnp.stack([head[..., 0][..., None] + left,
                      head[..., 1][..., None, :] + right], axis=1)
    return {'unary': unary, 'root': root, 'rule': rule}


# ----------------------------------------------------------------------------
if __name__ == "__main__":
    NT, T, S, V = 4, 4, 32, 64
    B, N = 2, 8

    key = jax.random.PRNGKey(0)
    pkey, xkey = jax.random.split(key)
    params = build_params(pkey, NT, T, S, V)
    x = jax.random.randint(xkey, (B, N), 0, V, dtype=jnp.int32)

    fwd = jax.jit(functools.partial(neural_lpcfg_forward, NT=NT, T=T, S=S, V=V))
    out = jax.block_until_ready(fwd(params, x))

    assert out['unary'].shape == (B, N, NT + T)
    assert out['root'].shape == (B, NT)
    assert out['rule'].shape == (B, 2, N, NT, NT + T, NT + T)
    assert out['kl'].dtype == jnp.float32
    for k in ('unary', 'root', 'rule'):
        assert bool(jnp.all(jnp.isfinite(out[k]))), k

    # numerical cross-check against the plain-JAX transcription of the module
    ref = neural_lpcfg_reference(params, x, NT=NT, T=T, S=S, V=V)
    for k in ('unary', 'root', 'rule'):
        err = float(jnp.max(jnp.abs(out[k] - ref[k])))
        assert err < 0.1, (k, err)

    print("KERNEL_OK")
</pallas_src>

<mosaic_0001>
module attributes {stable_mosaic.version = 11 : i64} {
  func.func @root_term_kernel(%arg0: i32, %arg1: memref<1x32xf32, #tpu.memory_space<vmem>>, %arg2: memref<8x32xf32, #tpu.memory_space<vmem>>, %arg3: memref<32x32xf32, #tpu.memory_space<vmem>>, %arg4: memref<1x32xf32, #tpu.memory_space<vmem>>, %arg5: memref<32x32xf32, #tpu.memory_space<vmem>>, %arg6: memref<1x32xf32, #tpu.memory_space<vmem>>, %arg7: memref<32x32xf32, #tpu.memory_space<vmem>>, %arg8: memref<1x32xf32, #tpu.memory_space<vmem>>, %arg9: memref<32x32xf32, #tpu.memory_space<vmem>>, %arg10: memref<1x32xf32, #tpu.memory_space<vmem>>, %arg11: memref<32x32xf32, #tpu.memory_space<vmem>>, %arg12: memref<1x32xf32, #tpu.memory_space<vmem>>, %arg13: memref<32x4xf32, #tpu.memory_space<vmem>>, %arg14: memref<1x4xf32, #tpu.memory_space<vmem>>, %arg15: memref<32x32xf32, #tpu.memory_space<vmem>>, %arg16: memref<1x32xf32, #tpu.memory_space<vmem>>, %arg17: memref<32x32xf32, #tpu.memory_space<vmem>>, %arg18: memref<1x32xf32, #tpu.memory_space<vmem>>, %arg19: memref<32x32xf32, #tpu.memory_space<vmem>>, %arg20: memref<1x32xf32, #tpu.memory_space<vmem>>, %arg21: memref<32x32xf32, #tpu.memory_space<vmem>>, %arg22: memref<1x32xf32, #tpu.memory_space<vmem>>, %arg23: memref<32x32xf32, #tpu.memory_space<vmem>>, %arg24: memref<1x32xf32, #tpu.memory_space<vmem>>, %arg25: memref<32x64xf32, #tpu.memory_space<vmem>>, %arg26: memref<1x64xf32, #tpu.memory_space<vmem>>, %arg27: memref<1x4xf32, #tpu.memory_space<vmem>>, %arg28: memref<8x64xf32, #tpu.memory_space<vmem>>) attributes {dimension_semantics = [#tpu.dimension_semantics<arbitrary>], iteration_bounds = array<i64: 1>, scalar_prefetch = 0 : i64, scratch_operands = 0 : i64, tpu.core_type = #tpu.core_type<tc>, window_params = [{pipeline_mode = #tpu.pipeline_mode<synchronous>, transform_indices = @transform_0, window_bounds = array<i64: 1, 32>}, {pipeline_mode = #tpu.pipeline_mode<synchronous>, transform_indices = @transform_1, window_bounds = array<i64: 8, 32>}, {pipeline_mode = #tpu.pipeline_mode<synchronous>, transform_indices = @transform_2, window_bounds = array<i64: 32, 32>}, {pipeline_mode = #tpu.pipeline_mode<synchronous>, transform_indices = @transform_3, window_bounds = array<i64: 1, 32>}, {pipeline_mode = #tpu.pipeline_mode<synchronous>, transform_indices = @transform_4, window_bounds = array<i64: 32, 32>}, {pipeline_mode = #tpu.pipeline_mode<synchronous>, transform_indices = @transform_5, window_bounds = array<i64: 1, 32>}, {pipeline_mode = #tpu.pipeline_mode<synchronous>, transform_indices = @transform_6, window_bounds = array<i64: 32, 32>}, {pipeline_mode = #tpu.pipeline_mode<synchronous>, transform_indices = @transform_7, window_bounds = array<i64: 1, 32>}, {pipeline_mode = #tpu.pipeline_mode<synchronous>, transform_indices = @transform_8, window_bounds = array<i64: 32, 32>}, {pipeline_mode = #tpu.pipeline_mode<synchronous>, transform_indices = @transform_9, window_bounds = array<i64: 1, 32>}, {pipeline_mode = #tpu.pipeline_mode<synchronous>, transform_indices = @transform_10, window_bounds = array<i64: 32, 32>}, {pipeline_mode = #tpu.pipeline_mode<synchronous>, transform_indices = @transform_11, window_bounds = array<i64: 1, 32>}, {pipeline_mode = #tpu.pipeline_mode<synchronous>, transform_indices = @transform_12, window_bounds = array<i64: 32, 4>}, {pipeline_mode = #tpu.pipeline_mode<synchronous>, transform_indices = @transform_13, window_bounds = array<i64: 1, 4>}, {pipeline_mode = #tpu.pipeline_mode<synchronous>, transform_indices = @transform_14, window_bounds = array<i64: 32, 32>}, {pipeline_mode = #tpu.pipeline_mode<synchronous>, transform_indices = @transform_15, window_bounds = array<i64: 1, 32>}, {pipeline_mode = #tpu.pipeline_mode<synchronous>, transform_indices = @transform_16, window_bounds = array<i64: 32, 32>}, {pipeline_mode = #tpu.pipeline_mode<synchronous>, transform_indices = @transform_17, window_bounds = array<i64: 1, 32>}, {pipeline_mode = #tpu.pipeline_mode<synchronous>, transform_indices = @transform_18, window_bounds = array<i64: 32, 32>}, {pipeline_mode = #tpu.pipeline_mode<synchronous>, transform_indices = @transform_19, window_bounds = array<i64: 1, 32>}, {pipeline_mode = #tpu.pipeline_mode<synchronous>, transform_indices = @transform_20, window_bounds = array<i64: 32, 32>}, {pipeline_mode = #tpu.pipeline_mode<synchronous>, transform_indices = @transform_21, window_bounds = array<i64: 1, 32>}, {pipeline_mode = #tpu.pipeline_mode<synchronous>, transform_indices = @transform_22, window_bounds = array<i64: 32, 32>}, {pipeline_mode = #tpu.pipeline_mode<synchronous>, transform_indices = @transform_23, window_bounds = array<i64: 1, 32>}, {pipeline_mode = #tpu.pipeline_mode<synchronous>, transform_indices = @transform_24, window_bounds = array<i64: 32, 64>}, {pipeline_mode = #tpu.pipeline_mode<synchronous>, transform_indices = @transform_25, window_bounds = array<i64: 1, 64>}, {pipeline_mode = #tpu.pipeline_mode<synchronous>, transform_indices = @transform_26, window_bounds = array<i64: 1, 4>}, {pipeline_mode = #tpu.pipeline_mode<synchronous>, transform_indices = @transform_27, window_bounds = array<i64: 8, 64>}]} {
    %c0 = arith.constant 0 : index
    %c0_0 = arith.constant 0 : index
    %0 = vector.load %arg3[%c0, %c0_0] : memref<32x32xf32, #tpu.memory_space<vmem>>, vector<32x32xf32>
    %c0_1 = arith.constant 0 : index
    %c0_2 = arith.constant 0 : index
    %1 = vector.load %arg4[%c0_1, %c0_2] : memref<1x32xf32, #tpu.memory_space<vmem>>, vector<1x32xf32>
    %c0_3 = arith.constant 0 : index
    %c0_4 = arith.constant 0 : index
    %2 = vector.load %arg5[%c0_3, %c0_4] : memref<32x32xf32, #tpu.memory_space<vmem>>, vector<32x32xf32>
    %c0_5 = arith.constant 0 : index
    %c0_6 = arith.constant 0 : index
    %3 = vector.load %arg6[%c0_5, %c0_6] : memref<1x32xf32, #tpu.memory_space<vmem>>, vector<1x32xf32>
    %c0_7 = arith.constant 0 : index
    %c0_8 = arith.constant 0 : index
    %4 = vector.load %arg7[%c0_7, %c0_8] : memref<32x32xf32, #tpu.memory_space<vmem>>, vector<32x32xf32>
    %c0_9 = arith.constant 0 : index
    %c0_10 = arith.constant 0 : index
    %5 = vector.load %arg8[%c0_9, %c0_10] : memref<1x32xf32, #tpu.memory_space<vmem>>, vector<1x32xf32>
    %c0_11 = arith.constant 0 : index
    %c0_12 = arith.constant 0 : index
    %6 = vector.load %arg9[%c0_11, %c0_12] : memref<32x32xf32, #tpu.memory_space<vmem>>, vector<32x32xf32>
    %c0_13 = arith.constant 0 : index
    %c0_14 = arith.constant 0 : index
    %7 = vector.load %arg10[%c0_13, %c0_14] : memref<1x32xf32, #tpu.memory_space<vmem>>, vector<1x32xf32>
    %c0_15 = arith.constant 0 : index
    %c0_16 = arith.constant 0 : index
    %8 = vector.load %arg11[%c0_15, %c0_16] : memref<32x32xf32, #tpu.memory_space<vmem>>, vector<32x32xf32>
    %c0_17 = arith.constant 0 : index
    %c0_18 = arith.constant 0 : index
    %9 = vector.load %arg12[%c0_17, %c0_18] : memref<1x32xf32, #tpu.memory_space<vmem>>, vector<1x32xf32>
    %c0_19 = arith.constant 0 : index
    %c0_20 = arith.constant 0 : index
    %10 = vector.load %arg13[%c0_19, %c0_20] : memref<32x4xf32, #tpu.memory_space<vmem>>, vector<32x4xf32>
    %c0_21 = arith.constant 0 : index
    %c0_22 = arith.constant 0 : index
    %11 = vector.load %arg14[%c0_21, %c0_22] : memref<1x4xf32, #tpu.memory_space<vmem>>, vector<1x4xf32>
    %c0_23 = arith.constant 0 : index
    %c0_24 = arith.constant 0 : index
    %12 = vector.load %arg15[%c0_23, %c0_24] : memref<32x32xf32, #tpu.memory_space<vmem>>, vector<32x32xf32>
    %c0_25 = arith.constant 0 : index
    %c0_26 = arith.constant 0 : index
    %13 = vector.load %arg16[%c0_25, %c0_26] : memref<1x32xf32, #tpu.memory_space<vmem>>, vector<1x32xf32>
    %c0_27 = arith.constant 0 : index
    %c0_28 = arith.constant 0 : index
    %14 = vector.load %arg17[%c0_27, %c0_28] : memref<32x32xf32, #tpu.memory_space<vmem>>, vector<32x32xf32>
    %c0_29 = arith.constant 0 : index
    %c0_30 = arith.constant 0 : index
    %15 = vector.load %arg18[%c0_29, %c0_30] : memref<1x32xf32, #tpu.memory_space<vmem>>, vector<1x32xf32>
    %c0_31 = arith.constant 0 : index
    %c0_32 = arith.constant 0 : index
    %16 = vector.load %arg19[%c0_31, %c0_32] : memref<32x32xf32, #tpu.memory_space<vmem>>, vector<32x32xf32>
    %c0_33 = arith.constant 0 : index
    %c0_34 = arith.constant 0 : index
    %17 = vector.load %arg20[%c0_33, %c0_34] : memref<1x32xf32, #tpu.memory_space<vmem>>, vector<1x32xf32>
    %c0_35 = arith.constant 0 : index
    %c0_36 = arith.constant 0 : index
    %18 = vector.load %arg21[%c0_35, %c0_36] : memref<32x32xf32, #tpu.memory_space<vmem>>, vector<32x32xf32>
    %c0_37 = arith.constant 0 : index
    %c0_38 = arith.constant 0 : index
    %19 = vector.load %arg22[%c0_37, %c0_38] : memref<1x32xf32, #tpu.memory_space<vmem>>, vector<1x32xf32>
    %c0_39 = arith.constant 0 : index
    %c0_40 = arith.constant 0 : index
    %20 = vector.load %arg23[%c0_39, %c0_40] : memref<32x32xf32, #tpu.memory_space<vmem>>, vector<32x32xf32>
    %c0_41 = arith.constant 0 : index
    %c0_42 = arith.constant 0 : index
    %21 = vector.load %arg24[%c0_41, %c0_42] : memref<1x32xf32, #tpu.memory_space<vmem>>, vector<1x32xf32>
    %c0_43 = arith.constant 0 : index
    %c0_44 = arith.constant 0 : index
    %22 = vector.load %arg25[%c0_43, %c0_44] : memref<32x64xf32, #tpu.memory_space<vmem>>, vector<32x64xf32>
    %c0_45 = arith.constant 0 : index
    %c0_46 = arith.constant 0 : index
    %23 = vector.load %arg26[%c0_45, %c0_46] : memref<1x64xf32, #tpu.memory_space<vmem>>, vector<1x64xf32>
    %c0_47 = arith.constant 0 : index
    %c0_48 = arith.constant 0 : index
    %24 = vector.load %arg1[%c0_47, %c0_48] : memref<1x32xf32, #tpu.memory_space<vmem>>, vector<1x32xf32>
    %cst = arith.constant dense<0.000000e+00> : vector<1x32xf32>
    %25 = tpu.matmul %24, %0, %cst {dimension_numbers = #tpu.dot_dimension_numbers<[1], [0], [0], [1], [0, 0, 1, 1], [], []>} : vector<1x32xf32>, vector<32x32xf32>, vector<1x32xf32> -> vector<1x32xf32>
    %26 = arith.addf %25, %1 : vector<1x32xf32>
    %cst_49 = arith.constant dense<0.000000e+00> : vector<1x32xf32>
    %27 = tpu.matmul %26, %2, %cst_49 {dimension_numbers = #tpu.dot_dimension_numbers<[1], [0], [0], [1], [0, 0, 1, 1], [], []>} : vector<1x32xf32>, vector<32x32xf32>, vector<1x32xf32> -> vector<1x32xf32>
    %28 = arith.addf %27, %3 : vector<1x32xf32>
    %cst_50 = arith.constant 0.000000e+00 : f32
    %29 = vector.broadcast %cst_50 : f32 to vector<1x32xf32>
    %30 = arith.maximumf %28, %29 : vector<1x32xf32>
    %cst_51 = arith.constant dense<0.000000e+00> : vector<1x32xf32>
    %31 = tpu.matmul %30, %4, %cst_51 {dimension_numbers = #tpu.dot_dimension_numbers<[1], [0], [0], [1], [0, 0, 1, 1], [], []>} : vector<1x32xf32>, vector<32x32xf32>, vector<1x32xf32> -> vector<1x32xf32>
    %32 = arith.addf %31, %5 : vector<1x32xf32>
    %cst_52 = arith.constant 0.000000e+00 : f32
    %33 = vector.broadcast %cst_52 : f32 to vector<1x32xf32>
    %34 = arith.maximumf %32, %33 : vector<1x32xf32>
    %35 = arith.addf %26, %34 : vector<1x32xf32>
    %cst_53 = arith.constant dense<0.000000e+00> : vector<1x32xf32>
    %36 = tpu.matmul %35, %6, %cst_53 {dimension_numbers = #tpu.dot_dimension_numbers<[1], [0], [0], [1], [0, 0, 1, 1], [], []>} : vector<1x32xf32>, vector<32x32xf32>, vector<1x32xf32> -> vector<1x32xf32>
    %37 = arith.addf %36, %7 : vector<1x32xf32>
    %cst_54 = arith.constant 0.000000e+00 : f32
    %38 = vector.broadcast %cst_54 : f32 to vector<1x32xf32>
    %39 = arith.maximumf %37, %38 : vector<1x32xf32>
    %cst_55 = arith.constant dense<0.000000e+00> : vector<1x32xf32>
    %40 = tpu.matmul %39, %8, %cst_55 {dimension_numbers = #tpu.dot_dimension_numbers<[1], [0], [0], [1], [0, 0, 1, 1], [], []>} : vector<1x32xf32>, vector<32x32xf32>, vector<1x32xf32> -> vector<1x32xf32>
    %41 = arith.addf %40, %9 : vector<1x32xf32>
    %cst_56 = arith.constant 0.000000e+00 : f32
    %42 = vector.broadcast %cst_56 : f32 to vector<1x32xf32>
    %43 = arith.maximumf %41, %42 : vector<1x32xf32>
    %44 = arith.addf %35, %43 : vector<1x32xf32>
    %cst_57 = arith.constant dense<0.000000e+00> : vector<1x4xf32>
    %45 = tpu.matmul %44, %10, %cst_57 {dimension_numbers = #tpu.dot_dimension_numbers<[1], [0], [0], [1], [0, 0, 1, 1], [], []>} : vector<1x32xf32>, vector<32x4xf32>, vector<1x4xf32> -> vector<1x4xf32>
    %46 = arith.addf %45, %11 : vector<1x4xf32>
    %cst_58 = arith.constant dense<0xFF800000> : vector<1xf32>
    %47 = vector.multi_reduction <maximumf>, %46, %cst_58 [1] : vector<1x4xf32> to vector<1xf32>
    %48 = vector.shape_cast %47 : vector<1xf32> to vector<1x1xf32>
    %49 = vector.broadcast %48 : vector<1x1xf32> to vector<1x4xf32>
    %50 = arith.subf %46, %49 : vector<1x4xf32>
    %51 = vector.broadcast %48 : vector<1x1xf32> to vector<1x4xf32>
    %52 = arith.subf %46, %51 : vector<1x4xf32>
    %53 = math.exp %52 : vector<1x4xf32>
    %cst_59 = arith.constant dense<0.000000e+00> : vector<1xf32>
    %54 = vector.multi_reduction <add>, %53, %cst_59 [1] : vector<1x4xf32> to vector<1xf32>
    %55 = vector.shape_cast %54 : vector<1xf32> to vector<1x1xf32>
    %56 = math.log %55 : vector<1x1xf32>
    %57 = vector.broadcast %56 : vector<1x1xf32> to vector<1x4xf32>
    %58 = arith.subf %50, %57 : vector<1x4xf32>
    %c0_60 = arith.constant 0 : index
    %c0_61 = arith.constant 0 : index
    %59 = vector.load %arg27[%c0_60, %c0_61] : memref<1x4xf32, #tpu.memory_space<vmem>>, vector<1x4xf32>
    tpu.vector_store %arg27[%c0_60, %c0_61], %58 {strides = array<i32>} : memref<1x4xf32, #tpu.memory_space<vmem>>, vector<1x4xf32>,
    %c0_62 = arith.constant 0 : index
    %c0_63 = arith.constant 0 : index
    %60 = vector.load %arg2[%c0_62, %c0_63] : memref<8x32xf32, #tpu.memory_space<vmem>>, vector<8x32xf32>
    %cst_64 = arith.constant dense<0.000000e+00> : vector<8x32xf32>
    %61 = tpu.matmul %60, %12, %cst_64 {dimension_numbers = #tpu.dot_dimension_numbers<[1], [0], [0], [1], [0, 0, 1, 1], [], []>} : vector<8x32xf32>, vector<32x32xf32>, vector<8x32xf32> -> vector<8x32xf32>
    %62 = vector.broadcast %13 : vector<1x32xf32> to vector<8x32xf32>
    %63 = arith.addf %61, %62 : vector<8x32xf32>
    %cst_65 = arith.constant dense<0.000000e+00> : vector<8x32xf32>
    %64 = tpu.matmul %63, %14, %cst_65 {dimension_numbers = #tpu.dot_dimension_numbers<[1], [0], [0], [1], [0, 0, 1, 1], [], []>} : vector<8x32xf32>, vector<32x32xf32>, vector<8x32xf32> -> vector<8x32xf32>
    %65 = vector.broadcast %15 : vector<1x32xf32> to vector<8x32xf32>
    %66 = arith.addf %64, %65 : vector<8x32xf32>
    %cst_66 = arith.constant 0.000000e+00 : f32
    %67 = vector.broadcast %cst_66 : f32 to vector<8x32xf32>
    %68 = arith.maximumf %66, %67 : vector<8x32xf32>
    %cst_67 = arith.constant dense<0.000000e+00> : vector<8x32xf32>
    %69 = tpu.matmul %68, %16, %cst_67 {dimension_numbers = #tpu.dot_dimension_numbers<[1], [0], [0], [1], [0, 0, 1, 1], [], []>} : vector<8x32xf32>, vector<32x32xf32>, vector<8x32xf32> -> vector<8x32xf32>
    %70 = vector.broadcast %17 : vector<1x32xf32> to vector<8x32xf32>
    %71 = arith.addf %69, %70 : vector<8x32xf32>
    %cst_68 = arith.constant 0.000000e+00 : f32
    %72 = vector.broadcast %cst_68 : f32 to vector<8x32xf32>
    %73 = arith.maximumf %71, %72 : vector<8x32xf32>
    %74 = arith.addf %63, %73 : vector<8x32xf32>
    %cst_69 = arith.constant dense<0.000000e+00> : vector<8x32xf32>
    %75 = tpu.matmul %74, %18, %cst_69 {dimension_numbers = #tpu.dot_dimension_numbers<[1], [0], [0], [1], [0, 0, 1, 1], [], []>} : vector<8x32xf32>, vector<32x32xf32>, vector<8x32xf32> -> vector<8x32xf32>
    %76 = vector.broadcast %19 : vector<1x32xf32> to vector<8x32xf32>
    %77 = arith.addf %75, %76 : vector<8x32xf32>
    %cst_70 = arith.constant 0.000000e+00 : f32
    %78 = vector.broadcast %cst_70 : f32 to vector<8x32xf32>
    %79 = arith.maximumf %77, %78 : vector<8x32xf32>
    %cst_71 = arith.constant dense<0.000000e+00> : vector<8x32xf32>
    %80 = tpu.matmul %79, %20, %cst_71 {dimension_numbers = #tpu.dot_dimension_numbers<[1], [0], [0], [1], [0, 0, 1, 1], [], []>} : vector<8x32xf32>, vector<32x32xf32>, vector<8x32xf32> -> vector<8x32xf32>
    %81 = vector.broadcast %21 : vector<1x32xf32> to vector<8x32xf32>
    %82 = arith.addf %80, %81 : vector<8x32xf32>
    %cst_72 = arith.constant 0.000000e+00 : f32
    %83 = vector.broadcast %cst_72 : f32 to vector<8x32xf32>
    %84 = arith.maximumf %82, %83 : vector<8x32xf32>
    %85 = arith.addf %74, %84 : vector<8x32xf32>
    %cst_73 = arith.constant dense<0.000000e+00> : vector<8x64xf32>
    %86 = tpu.matmul %85, %22, %cst_73 {dimension_numbers = #tpu.dot_dimension_numbers<[1], [0], [0], [1], [0, 0, 1, 1], [], []>} : vector<8x32xf32>, vector<32x64xf32>, vector<8x64xf32> -> vector<8x64xf32>
    %87 = vector.broadcast %23 : vector<1x64xf32> to vector<8x64xf32>
    %88 = arith.addf %86, %87 : vector<8x64xf32>
    %cst_74 = arith.constant dense<0xFF800000> : vector<8xf32>
    %89 = vector.multi_reduction <maximumf>, %88, %cst_74 [1] : vector<8x64xf32> to vector<8xf32>
    %90 = vector.shape_cast %89 : vector<8xf32> to vector<8x1xf32>
    %91 = vector.broadcast %90 : vector<8x1xf32> to vector<8x64xf32>
    %92 = arith.subf %88, %91 : vector<8x64xf32>
    %93 = vector.broadcast %90 : vector<8x1xf32> to vector<8x64xf32>
    %94 = arith.subf %88, %93 : vector<8x64xf32>
    %95 = math.exp %94 : vector<8x64xf32>
    %cst_75 = arith.constant dense<0.000000e+00> : vector<8xf32>
    %96 = vector.multi_reduction <add>, %95, %cst_75 [1] : vector<8x64xf32> to vector<8xf32>
    %97 = vector.shape_cast %96 : vector<8xf32> to vector<8x1xf32>
    %98 = math.log %97 : vector<8x1xf32>
    %99 = vector.broadcast %98 : vector<8x1xf32> to vector<8x64xf32>
    %100 = arith.subf %92, %99 : vector<8x64xf32>
    %c0_76 = arith.constant 0 : index
    %c0_77 = arith.constant 0 : index
    %101 = vector.load %arg28[%c0_76, %c0_77] : memref<8x64xf32, #tpu.memory_space<vmem>>, vector<8x64xf32>
    tpu.vector_store %arg28[%c0_76, %c0_77], %100 {strides = array<i32>} : memref<8x64xf32, #tpu.memory_space<vmem>>, vector<8x64xf32>,
    return
  }
  func.func @transform_0(%arg0: i32) -> (i32, i32) {
    %c0_i32 = arith.constant 0 : i32
    %c0_i32_0 = arith.constant 0 : i32
    %c0_i32_1 = arith.constant 0 : i32
    return %c0_i32, %c0_i32_0 : i32, i32
  }
  func.func @transform_1(%arg0: i32) -> (i32, i32) {
    %c0_i32 = arith.constant 0 : i32
    %c0_i32_0 = arith.constant 0 : i32
    %c0_i32_1 = arith.constant 0 : i32
    return %c0_i32, %c0_i32_0 : i32, i32
  }
  func.func @transform_2(%arg0: i32) -> (i32, i32) {
    %c0_i32 = arith.constant 0 : i32
    %c0_i32_0 = arith.constant 0 : i32
    %c0_i32_1 = arith.constant 0 : i32
    return %c0_i32, %c0_i32_0 : i32, i32
  }
  func.func @transform_3(%arg0: i32) -> (i32, i32) {
    %c0_i32 = arith.constant 0 : i32
    %c0_i32_0 = arith.constant 0 : i32
    %c0_i32_1 = arith.constant 0 : i32
    return %c0_i32, %c0_i32_0 : i32, i32
  }
  func.func @transform_4(%arg0: i32) -> (i32, i32) {
    %c0_i32 = arith.constant 0 : i32
    %c0_i32_0 = arith.constant 0 : i32
    %c0_i32_1 = arith.constant 0 : i32
    return %c0_i32, %c0_i32_0 : i32, i32
  }
  func.func @transform_5(%arg0: i32) -> (i32, i32) {
    %c0_i32 = arith.constant 0 : i32
    %c0_i32_0 = arith.constant 0 : i32
    %c0_i32_1 = arith.constant 0 : i32
    return %c0_i32, %c0_i32_0 : i32, i32
  }
  func.func @transform_6(%arg0: i32) -> (i32, i32) {
    %c0_i32 = arith.constant 0 : i32
    %c0_i32_0 = arith.constant 0 : i32
    %c0_i32_1 = arith.constant 0 : i32
    return %c0_i32, %c0_i32_0 : i32, i32
  }
  func.func @transform_7(%arg0: i32) -> (i32, i32) {
    %c0_i32 = arith.constant 0 : i32
    %c0_i32_0 = arith.constant 0 : i32
    %c0_i32_1 = arith.constant 0 : i32
    return %c0_i32, %c0_i32_0 : i32, i32
  }
  func.func @transform_8(%arg0: i32) -> (i32, i32) {
    %c0_i32 = arith.constant 0 : i32
    %c0_i32_0 = arith.constant 0 : i32
    %c0_i32_1 = arith.constant 0 : i32
    return %c0_i32, %c0_i32_0 : i32, i32
  }
  func.func @transform_9(%arg0: i32) -> (i32, i32) {
    %c0_i32 = arith.constant 0 : i32
    %c0_i32_0 = arith.constant 0 : i32
    %c0_i32_1 = arith.constant 0 : i32
    return %c0_i32, %c0_i32_0 : i32, i32
  }
  func.func @transform_10(%arg0: i32) -> (i32, i32) {
    %c0_i32 = arith.constant 0 : i32
    %c0_i32_0 = arith.constant 0 : i32
    %c0_i32_1 = arith.constant 0 : i32
    return %c0_i32, %c0_i32_0 : i32, i32
  }
  func.func @transform_11(%arg0: i32) -> (i32, i32) {
    %c0_i32 = arith.constant 0 : i32
    %c0_i32_0 = arith.constant 0 : i32
    %c0_i32_1 = arith.constant 0 : i32
    return %c0_i32, %c0_i32_0 : i32, i32
  }
  func.func @transform_12(%arg0: i32) -> (i32, i32) {
    %c0_i32 = arith.constant 0 : i32
    %c0_i32_0 = arith.constant 0 : i32
    %c0_i32_1 = arith.constant 0 : i32
    return %c0_i32, %c0_i32_0 : i32, i32
  }
  func.func @transform_13(%arg0: i32) -> (i32, i32) {
    %c0_i32 = arith.constant 0 : i32
    %c0_i32_0 = arith.constant 0 : i32
    %c0_i32_1 = arith.constant 0 : i32
    return %c0_i32, %c0_i32_0 : i32, i32
  }
  func.func @transform_14(%arg0: i32) -> (i32, i32) {
    %c0_i32 = arith.constant 0 : i32
    %c0_i32_0 = arith.constant 0 : i32
    %c0_i32_1 = arith.constant 0 : i32
    return %c0_i32, %c0_i32_0 : i32, i32
  }
  func.func @transform_15(%arg0: i32) -> (i32, i32) {
    %c0_i32 = arith.constant 0 : i32
    %c0_i32_0 = arith.constant 0 : i32
    %c0_i32_1 = arith.constant 0 : i32
    return %c0_i32, %c0_i32_0 : i32, i32
  }
  func.func @transform_16(%arg0: i32) -> (i32, i32) {
    %c0_i32 = arith.constant 0 : i32
    %c0_i32_0 = arith.constant 0 : i32
    %c0_i32_1 = arith.constant 0 : i32
    return %c0_i32, %c0_i32_0 : i32, i32
  }
  func.func @transform_17(%arg0: i32) -> (i32, i32) {
    %c0_i32 = arith.constant 0 : i32
    %c0_i32_0 = arith.constant 0 : i32
    %c0_i32_1 = arith.constant 0 : i32
    return %c0_i32, %c0_i32_0 : i32, i32
  }
  func.func @transform_18(%arg0: i32) -> (i32, i32) {
    %c0_i32 = arith.constant 0 : i32
    %c0_i32_0 = arith.constant 0 : i32
    %c0_i32_1 = arith.constant 0 : i32
    return %c0_i32, %c0_i32_0 : i32, i32
  }
  func.func @transform_19(%arg0: i32) -> (i32, i32) {
    %c0_i32 = arith.constant 0 : i32
    %c0_i32_0 = arith.constant 0 : i32
    %c0_i32_1 = arith.constant 0 : i32
    return %c0_i32, %c0_i32_0 : i32, i32
  }
  func.func @transform_20(%arg0: i32) -> (i32, i32) {
    %c0_i32 = arith.constant 0 : i32
    %c0_i32_0 = arith.constant 0 : i32
    %c0_i32_1 = arith.constant 0 : i32
    return %c0_i32, %c0_i32_0 : i32, i32
  }
  func.func @transform_21(%arg0: i32) -> (i32, i32) {
    %c0_i32 = arith.constant 0 : i32
    %c0_i32_0 = arith.constant 0 : i32
    %c0_i32_1 = arith.constant 0 : i32
    return %c0_i32, %c0_i32_0 : i32, i32
  }
  func.func @transform_22(%arg0: i32) -> (i32, i32) {
    %c0_i32 = arith.constant 0 : i32
    %c0_i32_0 = arith.constant 0 : i32
    %c0_i32_1 = arith.constant 0 : i32
    return %c0_i32, %c0_i32_0 : i32, i32
  }
  func.func @transform_23(%arg0: i32) -> (i32, i32) {
    %c0_i32 = arith.constant 0 : i32
    %c0_i32_0 = arith.constant 0 : i32
    %c0_i32_1 = arith.constant 0 : i32
    return %c0_i32, %c0_i32_0 : i32, i32
  }
  func.func @transform_24(%arg0: i32) -> (i32, i32) {
    %c0_i32 = arith.constant 0 : i32
    %c0_i32_0 = arith.constant 0 : i32
    %c0_i32_1 = arith.constant 0 : i32
    return %c0_i32, %c0_i32_0 : i32, i32
  }
  func.func @transform_25(%arg0: i32) -> (i32, i32) {
    %c0_i32 = arith.constant 0 : i32
    %c0_i32_0 = arith.constant 0 : i32
    %c0_i32_1 = arith.constant 0 : i32
    return %c0_i32, %c0_i32_0 : i32, i32
  }
  func.func @transform_26(%arg0: i32) -> (i32, i32) {
    %c0_i32 = arith.constant 0 : i32
    %c0_i32_0 = arith.constant 0 : i32
    %c0_i32_1 = arith.constant 0 : i32
    return %c0_i32, %c0_i32_0 : i32, i32
  }
  func.func @transform_27(%arg0: i32) -> (i32, i32) {
    %c0_i32 = arith.constant 0 : i32
    %c0_i32_0 = arith.constant 0 : i32
    %c0_i32_1 = arith.constant 0 : i32
    return %c0_i32, %c0_i32_0 : i32, i32
  }
}

module attributes {stable_mosaic.version = 11 : i64} {
  func.func @rules_kernel(%arg0: i32, %arg1: memref<1x8x32xf32, #tpu.memory_space<vmem>>, %arg2: memref<32x32xf32, #tpu.memory_space<vmem>>, %arg3: memref<32x32xf32, #tpu.memory_space<vmem>>, %arg4: memref<1x32xf32, #tpu.memory_space<vmem>>, %arg5: memref<32x32xf32, #tpu.memory_space<vmem>>, %arg6: memref<1x32xf32, #tpu.memory_space<vmem>>, %arg7: memref<32x16xf32, #tpu.memory_space<vmem>>, %arg8: memref<1x16xf32, #tpu.memory_space<vmem>>, %arg9: memref<32x64xf32, #tpu.memory_space<vmem>>, %arg10: memref<32x64xf32, #tpu.memory_space<vmem>>, %arg11: memref<4x32xf32, #tpu.memory_space<vmem>>, %arg12: memref<4x64xf32, #tpu.memory_space<vmem>>, %arg13: memref<4x64xf32, #tpu.memory_space<vmem>>, %arg14: memref<8x64xf32, #tpu.memory_space<vmem>>, %arg15: memref<64x8xf32, #tpu.memory_space<vmem>>, %arg16: memref<64x8xf32, #tpu.memory_space<vmem>>, %arg17: memref<1x64xi32, #tpu.memory_space<vmem>>, %arg18: memref<1x2x8x256xf32, #tpu.memory_space<vmem>>) attributes {dimension_semantics = [#tpu.dimension_semantics<parallel>], iteration_bounds = array<i64: 2>, scalar_prefetch = 0 : i64, scratch_operands = 0 : i64, tpu.core_type = #tpu.core_type<tc>, window_params = [{transform_indices = @transform_0, window_bounds = array<i64: 1, 8, 32>}, {pipeline_mode = #tpu.pipeline_mode<synchronous>, transform_indices = @transform_1, window_bounds = array<i64: 32, 32>}, {pipeline_mode = #tpu.pipeline_mode<synchronous>, transform_indices = @transform_2, window_bounds = array<i64: 32, 32>}, {pipeline_mode = #tpu.pipeline_mode<synchronous>, transform_indices = @transform_3, window_bounds = array<i64: 1, 32>}, {pipeline_mode = #tpu.pipeline_mode<synchronous>, transform_indices = @transform_4, window_bounds = array<i64: 32, 32>}, {pipeline_mode = #tpu.pipeline_mode<synchronous>, transform_indices = @transform_5, window_bounds = array<i64: 1, 32>}, {pipeline_mode = #tpu.pipeline_mode<synchronous>, transform_indices = @transform_6, window_bounds = array<i64: 32, 16>}, {pipeline_mode = #tpu.pipeline_mode<synchronous>, transform_indices = @transform_7, window_bounds = array<i64: 1, 16>}, {pipeline_mode = #tpu.pipeline_mode<synchronous>, transform_indices = @transform_8, window_bounds = array<i64: 32, 64>}, {pipeline_mode = #tpu.pipeline_mode<synchronous>, transform_indices = @transform_9, window_bounds = array<i64: 32, 64>}, {pipeline_mode = #tpu.pipeline_mode<synchronous>, transform_indices = @transform_10, window_bounds = array<i64: 4, 32>}, {pipeline_mode = #tpu.pipeline_mode<synchronous>, transform_indices = @transform_11, window_bounds = array<i64: 4, 64>}, {pipeline_mode = #tpu.pipeline_mode<synchronous>, transform_indices = @transform_12, window_bounds = array<i64: 4, 64>}, {pipeline_mode = #tpu.pipeline_mode<synchronous>, transform_indices = @transform_13, window_bounds = array<i64: 8, 64>}, {pipeline_mode = #tpu.pipeline_mode<synchronous>, transform_indices = @transform_14, window_bounds = array<i64: 64, 8>}, {pipeline_mode = #tpu.pipeline_mode<synchronous>, transform_indices = @transform_15, window_bounds = array<i64: 64, 8>}, {pipeline_mode = #tpu.pipeline_mode<synchronous>, transform_indices = @transform_16, window_bounds = array<i64: 1, 64>}, {transform_indices = @transform_17, window_bounds = array<i64: 1, 2, 8, 256>}]} {
    %c0 = arith.constant 0 : index
    %c0_0 = arith.constant 0 : index
    %c0_1 = arith.constant 0 : index
    %0 = vector.load %arg1[%c0, %c0_0, %c0_1] : memref<1x8x32xf32, #tpu.memory_space<vmem>>, vector<1x8x32xf32>
    %1 = vector.shape_cast %0 : vector<1x8x32xf32> to vector<8x32xf32>
    %c0_2 = arith.constant 0 : index
    %c0_3 = arith.constant 0 : index
    %2 = vector.load %arg2[%c0_2, %c0_3] : memref<32x32xf32, #tpu.memory_space<vmem>>, vector<32x32xf32>
    %cst = arith.constant dense<0.000000e+00> : vector<8x32xf32>
    %3 = tpu.matmul %1, %2, %cst {dimension_numbers = #tpu.dot_dimension_numbers<[1], [0], [0], [1], [0, 0, 1, 1], [], []>} : vector<8x32xf32>, vector<32x32xf32>, vector<8x32xf32> -> vector<8x32xf32>
    %c0_4 = arith.constant 0 : index
    %c0_5 = arith.constant 0 : index
    %4 = vector.load %arg9[%c0_4, %c0_5] : memref<32x64xf32, #tpu.memory_space<vmem>>, vector<32x64xf32>
    %cst_6 = arith.constant dense<0.000000e+00> : vector<8x64xf32>
    %5 = tpu.matmul %1, %4, %cst_6 {dimension_numbers = #tpu.dot_dimension_numbers<[1], [0], [0], [1], [0, 0, 1, 1], [], []>} : vector<8x32xf32>, vector<32x64xf32>, vector<8x64xf32> -> vector<8x64xf32>
    %c0_7 = arith.constant 0 : index
    %c0_8 = arith.constant 0 : index
    %6 = vector.load %arg10[%c0_7, %c0_8] : memref<32x64xf32, #tpu.memory_space<vmem>>, vector<32x64xf32>
    %cst_9 = arith.constant dense<0.000000e+00> : vector<8x64xf32>
    %7 = tpu.matmul %1, %6, %cst_9 {dimension_numbers = #tpu.dot_dimension_numbers<[1], [0], [0], [1], [0, 0, 1, 1], [], []>} : vector<8x32xf32>, vector<32x64xf32>, vector<8x64xf32> -> vector<8x64xf32>
    %c0_10 = arith.constant 0 : index
    %c0_11 = arith.constant 0 : index
    %8 = vector.load %arg11[%c0_10, %c0_11] : memref<4x32xf32, #tpu.memory_space<vmem>>, vector<4x32xf32>
    %c0_12 = arith.constant 0 : index
    %c0_13 = arith.constant 0 : index
    %9 = vector.load %arg12[%c0_12, %c0_13] : memref<4x64xf32, #tpu.memory_space<vmem>>, vector<4x64xf32>
    %c0_14 = arith.constant 0 : index
    %c0_15 = arith.constant 0 : index
    %10 = vector.load %arg13[%c0_14, %c0_15] : memref<4x64xf32, #tpu.memory_space<vmem>>, vector<4x64xf32>
    %11 = vector.extract_strided_slice %8 {offsets = [0, 0], sizes = [1, 32], strides = [1, 1]} : vector<4x32xf32> to vector<1x32xf32>
    %12 = vector.shape_cast %11 : vector<1x32xf32> to vector<32xf32>
    %13 = vector.shape_cast %12 : vector<32xf32> to vector<1x32xf32>
    %14 = vector.broadcast %13 : vector<1x32xf32> to vector<8x32xf32>
    %15 = arith.addf %3, %14 : vector<8x32xf32>
    %16 = vector.extract_strided_slice %8 {offsets = [1, 0], sizes = [1, 32], strides = [1, 1]} : vector<4x32xf32> to vector<1x32xf32>
    %17 = vector.shape_cast %16 : vector<1x32xf32> to vector<32xf32>
    %18 = vector.shape_cast %17 : vector<32xf32> to vector<1x32xf32>
    %19 = vector.broadcast %18 : vector<1x32xf32> to vector<8x32xf32>
    %20 = arith.addf %3, %19 : vector<8x32xf32>
    %21 = vector.extract_strided_slice %8 {offsets = [2, 0], sizes = [1, 32], strides = [1, 1]} : vector<4x32xf32> to vector<1x32xf32>
    %22 = vector.shape_cast %21 : vector<1x32xf32> to vector<32xf32>
    %23 = vector.shape_cast %22 : vector<32xf32> to vector<1x32xf32>
    %24 = vector.broadcast %23 : vector<1x32xf32> to vector<8x32xf32>
    %25 = arith.addf %3, %24 : vector<8x32xf32>
    %26 = vector.extract_strided_slice %8 {offsets = [3, 0], sizes = [1, 32], strides = [1, 1]} : vector<4x32xf32> to vector<1x32xf32>
    %27 = vector.shape_cast %26 : vector<1x32xf32> to vector<32xf32>
    %28 = vector.shape_cast %27 : vector<32xf32> to vector<1x32xf32>
    %29 = vector.broadcast %28 : vector<1x32xf32> to vector<8x32xf32>
    %30 = arith.addf %3, %29 : vector<8x32xf32>
    %31 = tpu.concatenate %15, %20, %25, %30 in 0 : vector<8x32xf32>, vector<8x32xf32>, vector<8x32xf32>, vector<8x32xf32> -> vector<32x32xf32>
    %32 = vector.extract_strided_slice %9 {offsets = [0, 0], sizes = [1, 64], strides = [1, 1]} : vector<4x64xf32> to vector<1x64xf32>
    %33 = vector.shape_cast %32 : vector<1x64xf32> to vector<64xf32>
    %34 = vector.shape_cast %33 : vector<64xf32> to vector<1x64xf32>
    %35 = vector.broadcast %34 : vector<1x64xf32> to vector<8x64xf32>
    %36 = arith.addf %5, %35 : vector<8x64xf32>
    %37 = vector.extract_strided_slice %9 {offsets = [1, 0], sizes = [1, 64], strides = [1, 1]} : vector<4x64xf32> to vector<1x64xf32>
    %38 = vector.shape_cast %37 : vector<1x64xf32> to vector<64xf32>
    %39 = vector.shape_cast %38 : vector<64xf32> to vector<1x64xf32>
    %40 = vector.broadcast %39 : vector<1x64xf32> to vector<8x64xf32>
    %41 = arith.addf %5, %40 : vector<8x64xf32>
    %42 = vector.extract_strided_slice %9 {offsets = [2, 0], sizes = [1, 64], strides = [1, 1]} : vector<4x64xf32> to vector<1x64xf32>
    %43 = vector.shape_cast %42 : vector<1x64xf32> to vector<64xf32>
    %44 = vector.shape_cast %43 : vector<64xf32> to vector<1x64xf32>
    %45 = vector.broadcast %44 : vector<1x64xf32> to vector<8x64xf32>
    %46 = arith.addf %5, %45 : vector<8x64xf32>
    %47 = vector.extract_strided_slice %9 {offsets = [3, 0], sizes = [1, 64], strides = [1, 1]} : vector<4x64xf32> to vector<1x64xf32>
    %48 = vector.shape_cast %47 : vector<1x64xf32> to vector<64xf32>
    %49 = vector.shape_cast %48 : vector<64xf32> to vector<1x64xf32>
    %50 = vector.broadcast %49 : vector<1x64xf32> to vector<8x64xf32>
    %51 = arith.addf %5, %50 : vector<8x64xf32>
    %52 = tpu.concatenate %36, %41, %46, %51 in 0 : vector<8x64xf32>, vector<8x64xf32>, vector<8x64xf32>, vector<8x64xf32> -> vector<32x64xf32>
    %53 = vector.extract_strided_slice %10 {offsets = [0, 0], sizes = [1, 64], strides = [1, 1]} : vector<4x64xf32> to vector<1x64xf32>
    %54 = vector.shape_cast %53 : vector<1x64xf32> to vector<64xf32>
    %55 = vector.shape_cast %54 : vector<64xf32> to vector<1x64xf32>
    %56 = vector.broadcast %55 : vector<1x64xf32> to vector<8x64xf32>
    %57 = arith.addf %7, %56 : vector<8x64xf32>
    %58 = vector.extract_strided_slice %10 {offsets = [1, 0], sizes = [1, 64], strides = [1, 1]} : vector<4x64xf32> to vector<1x64xf32>
    %59 = vector.shape_cast %58 : vector<1x64xf32> to vector<64xf32>
    %60 = vector.shape_cast %59 : vector<64xf32> to vector<1x64xf32>
    %61 = vector.broadcast %60 : vector<1x64xf32> to vector<8x64xf32>
    %62 = arith.addf %7, %61 : vector<8x64xf32>
    %63 = vector.extract_strided_slice %10 {offsets = [2, 0], sizes = [1, 64], strides = [1, 1]} : vector<4x64xf32> to vector<1x64xf32>
    %64 = vector.shape_cast %63 : vector<1x64xf32> to vector<64xf32>
    %65 = vector.shape_cast %64 : vector<64xf32> to vector<1x64xf32>
    %66 = vector.broadcast %65 : vector<1x64xf32> to vector<8x64xf32>
    %67 = arith.addf %7, %66 : vector<8x64xf32>
    %68 = vector.extract_strided_slice %10 {offsets = [3, 0], sizes = [1, 64], strides = [1, 1]} : vector<4x64xf32> to vector<1x64xf32>
    %69 = vector.shape_cast %68 : vector<1x64xf32> to vector<64xf32>
    %70 = vector.shape_cast %69 : vector<64xf32> to vector<1x64xf32>
    %71 = vector.broadcast %70 : vector<1x64xf32> to vector<8x64xf32>
    %72 = arith.addf %7, %71 : vector<8x64xf32>
    %73 = tpu.concatenate %57, %62, %67, %72 in 0 : vector<8x64xf32>, vector<8x64xf32>, vector<8x64xf32>, vector<8x64xf32> -> vector<32x64xf32>
    %c0_16 = arith.constant 0 : index
    %c0_17 = arith.constant 0 : index
    %74 = vector.load %arg3[%c0_16, %c0_17] : memref<32x32xf32, #tpu.memory_space<vmem>>, vector<32x32xf32>
    %c0_18 = arith.constant 0 : index
    %c0_19 = arith.constant 0 : index
    %75 = vector.load %arg4[%c0_18, %c0_19] : memref<1x32xf32, #tpu.memory_space<vmem>>, vector<1x32xf32>
    %c0_20 = arith.constant 0 : index
    %c0_21 = arith.constant 0 : index
    %76 = vector.load %arg5[%c0_20, %c0_21] : memref<32x32xf32, #tpu.memory_space<vmem>>, vector<32x32xf32>
    %c0_22 = arith.constant 0 : index
    %c0_23 = arith.constant 0 : index
    %77 = vector.load %arg6[%c0_22, %c0_23] : memref<1x32xf32, #tpu.memory_space<vmem>>, vector<1x32xf32>
    %cst_24 = arith.constant dense<0.000000e+00> : vector<32x32xf32>
    %78 = tpu.matmul %31, %74, %cst_24 {dimension_numbers = #tpu.dot_dimension_numbers<[1], [0], [0], [1], [0, 0, 1, 1], [], []>} : vector<32x32xf32>, vector<32x32xf32>, vector<32x32xf32> -> vector<32x32xf32>
    %79 = vector.broadcast %75 : vector<1x32xf32> to vector<32x32xf32>
    %80 = arith.addf %78, %79 : vector<32x32xf32>
    %cst_25 = arith.constant 0.000000e+00 : f32
    %81 = vector.broadcast %cst_25 : f32 to vector<32x32xf32>
    %82 = arith.maximumf %80, %81 : vector<32x32xf32>
    %cst_26 = arith.constant dense<0.000000e+00> : vector<32x32xf32>
    %83 = tpu.matmul %82, %76, %cst_26 {dimension_numbers = #tpu.dot_dimension_numbers<[1], [0], [0], [1], [0, 0, 1, 1], [], []>} : vector<32x32xf32>, vector<32x32xf32>, vector<32x32xf32> -> vector<32x32xf32>
    %84 = vector.broadcast %77 : vector<1x32xf32> to vector<32x32xf32>
    %85 = arith.addf %83, %84 : vector<32x32xf32>
    %cst_27 = arith.constant 0.000000e+00 : f32
    %86 = vector.broadcast %cst_27 : f32 to vector<32x32xf32>
    %87 = arith.maximumf %85, %86 : vector<32x32xf32>
    %88 = arith.addf %31, %87 : vector<32x32xf32>
    %c0_28 = arith.constant 0 : index
    %c0_29 = arith.constant 0 : index
    %89 = vector.load %arg7[%c0_28, %c0_29] : memref<32x16xf32, #tpu.memory_space<vmem>>, vector<32x16xf32>
    %cst_30 = arith.constant dense<0.000000e+00> : vector<32x16xf32>
    %90 = tpu.matmul %88, %89, %cst_30 {dimension_numbers = #tpu.dot_dimension_numbers<[1], [0], [0], [1], [0, 0, 1, 1], [], []>} : vector<32x32xf32>, vector<32x16xf32>, vector<32x16xf32> -> vector<32x16xf32>
    %c0_31 = arith.constant 0 : index
    %c0_32 = arith.constant 0 : index
    %91 = vector.load %arg8[%c0_31, %c0_32] : memref<1x16xf32, #tpu.memory_space<vmem>>, vector<1x16xf32>
    %92 = vector.broadcast %91 : vector<1x16xf32> to vector<32x16xf32>
    %93 = arith.addf %90, %92 : vector<32x16xf32>
    %cst_33 = arith.constant dense<0xFF800000> : vector<32xf32>
    %94 = vector.multi_reduction <maximumf>, %93, %cst_33 [1] : vector<32x16xf32> to vector<32xf32>
    %95 = vector.shape_cast %94 : vector<32xf32> to vector<32x1xf32>
    %96 = vector.broadcast %95 : vector<32x1xf32> to vector<32x16xf32>
    %97 = arith.subf %93, %96 : vector<32x16xf32>
    %98 = vector.broadcast %95 : vector<32x1xf32> to vector<32x16xf32>
    %99 = arith.subf %93, %98 : vector<32x16xf32>
    %100 = math.exp %99 : vector<32x16xf32>
    %cst_34 = arith.constant dense<0.000000e+00> : vector<32xf32>
    %101 = vector.multi_reduction <add>, %100, %cst_34 [1] : vector<32x16xf32> to vector<32xf32>
    %102 = vector.shape_cast %101 : vector<32xf32> to vector<32x1xf32>
    %103 = math.log %102 : vector<32x1xf32>
    %104 = vector.broadcast %103 : vector<32x1xf32> to vector<32x16xf32>
    %105 = arith.subf %97, %104 : vector<32x16xf32>
    %106 = vector.extract_strided_slice %105 {offsets = [0, 0], sizes = [32, 8], strides = [1, 1]} : vector<32x16xf32> to vector<32x8xf32>
    %107 = vector.extract_strided_slice %105 {offsets = [0, 8], sizes = [32, 8], strides = [1, 1]} : vector<32x16xf32> to vector<32x8xf32>
    %c0_35 = arith.constant 0 : index
    %c0_36 = arith.constant 0 : index
    %108 = vector.load %arg17[%c0_35, %c0_36] : memref<1x64xi32, #tpu.memory_space<vmem>>, vector<1x64xi32>
    %c0_37 = arith.constant 0 : index
    %c0_38 = arith.constant 0 : index
    %109 = vector.load %arg14[%c0_37, %c0_38] : memref<8x64xf32, #tpu.memory_space<vmem>>, vector<8x64xf32>
    %c0_39 = arith.constant 0 : index
    %c0_40 = arith.constant 0 : index
    %110 = vector.load %arg15[%c0_39, %c0_40] : memref<64x8xf32, #tpu.memory_space<vmem>>, vector<64x8xf32>
    %111 = vector.extract_strided_slice %52 {offsets = [0, 1], sizes = [32, 63], strides = [1, 1]} : vector<32x64xf32> to vector<32x63xf32>
    %112 = vector.extract_strided_slice %52 {offsets = [0, 0], sizes = [32, 1], strides = [1, 1]} : vector<32x64xf32> to vector<32x1xf32>
    %113 = tpu.concatenate %111, %112 in 1 : vector<32x63xf32>, vector<32x1xf32> -> vector<32x64xf32>
    %114 = vector.extract_strided_slice %52 {offsets = [0, 57], sizes = [32, 7], strides = [1, 1]} : vector<32x64xf32> to vector<32x7xf32>
    %115 = vector.extract_strided_slice %52 {offsets = [0, 0], sizes = [32, 57], strides = [1, 1]} : vector<32x64xf32> to vector<32x57xf32>
    %116 = tpu.concatenate %114, %115 in 1 : vector<32x7xf32>, vector<32x57xf32> -> vector<32x64xf32>
    %c7_i32 = arith.constant 7 : i32
    %117 = vector.broadcast %c7_i32 : i32 to vector<1x64xi32>
    %118 = arith.cmpi slt, %108, %117 : vector<1x64xi32>
    %119 = vector.shape_cast %118 : vector<1x64xi1> to vector<1x64xi1>
    %120 = vector.broadcast %119 : vector<1x64xi1> to vector<32x64xi1>
    %121 = arith.select %120, %113, %116 : vector<32x64xi1>, vector<32x64xf32>
    %122 = arith.maximumf %52, %121 : vector<32x64xf32>
    %123 = vector.extract_strided_slice %122 {offsets = [0, 2], sizes = [32, 62], strides = [1, 1]} : vector<32x64xf32> to vector<32x62xf32>
    %124 = vector.extract_strided_slice %122 {offsets = [0, 0], sizes = [32, 2], strides = [1, 1]} : vector<32x64xf32> to vector<32x2xf32>
    %125 = tpu.concatenate %123, %124 in 1 : vector<32x62xf32>, vector<32x2xf32> -> vector<32x64xf32>
    %126 = vector.extract_strided_slice %122 {offsets = [0, 58], sizes = [32, 6], strides = [1, 1]} : vector<32x64xf32> to vector<32x6xf32>
    %127 = vector.extract_strided_slice %122 {offsets = [0, 0], sizes = [32, 58], strides = [1, 1]} : vector<32x64xf32> to vector<32x58xf32>
    %128 = tpu.concatenate %126, %127 in 1 : vector<32x6xf32>, vector<32x58xf32> -> vector<32x64xf32>
    %c6_i32 = arith.constant 6 : i32
    %129 = vector.broadcast %c6_i32 : i32 to vector<1x64xi32>
    %130 = arith.cmpi slt, %108, %129 : vector<1x64xi32>
    %131 = vector.shape_cast %130 : vector<1x64xi1> to vector<1x64xi1>
    %132 = vector.broadcast %131 : vector<1x64xi1> to vector<32x64xi1>
    %133 = arith.select %132, %125, %128 : vector<32x64xi1>, vector<32x64xf32>
    %134 = arith.maximumf %122, %133 : vector<32x64xf32>
    %135 = vector.extract_strided_slice %134 {offsets = [0, 4], sizes = [32, 60], strides = [1, 1]} : vector<32x64xf32> to vector<32x60xf32>
    %136 = vector.extract_strided_slice %134 {offsets = [0, 0], sizes = [32, 4], strides = [1, 1]} : vector<32x64xf32> to vector<32x4xf32>
    %137 = tpu.concatenate %135, %136 in 1 : vector<32x60xf32>, vector<32x4xf32> -> vector<32x64xf32>
    %138 = vector.extract_strided_slice %134 {offsets = [0, 60], sizes = [32, 4], strides = [1, 1]} : vector<32x64xf32> to vector<32x4xf32>
    %139 = vector.extract_strided_slice %134 {offsets = [0, 0], sizes = [32, 60], strides = [1, 1]} : vector<32x64xf32> to vector<32x60xf32>
    %140 = tpu.concatenate %138, %139 in 1 : vector<32x4xf32>, vector<32x60xf32> -> vector<32x64xf32>
    %c4_i32 = arith.constant 4 : i32
    %141 = vector.broadcast %c4_i32 : i32 to vector<1x64xi32>
    %142 = arith.cmpi slt, %108, %141 : vector<1x64xi32>
    %143 = vector.shape_cast %142 : vector<1x64xi1> to vector<1x64xi1>
    %144 = vector.broadcast %143 : vector<1x64xi1> to vector<32x64xi1>
    %145 = arith.select %144, %137, %140 : vector<32x64xi1>, vector<32x64xf32>
    %146 = arith.maximumf %134, %145 : vector<32x64xf32>
    %147 = arith.subf %52, %146 : vector<32x64xf32>
    %148 = math.exp %147 : vector<32x64xf32>
    %cst_41 = arith.constant dense<0.000000e+00> : vector<32x8xf32>
    %149 = tpu.matmul %148, %110, %cst_41 {dimension_numbers = #tpu.dot_dimension_numbers<[1], [0], [0], [1], [0, 0, 1, 1], [], []>, precision = #tpu.contract_precision<fp32>} : vector<32x64xf32>, vector<64x8xf32>, vector<32x8xf32> -> vector<32x8xf32>
    %150 = math.log %149 : vector<32x8xf32>
    %151 = arith.subf %106, %150 : vector<32x8xf32>
    %cst_42 = arith.constant dense<0.000000e+00> : vector<32x64xf32>
    %152 = tpu.matmul %151, %109, %cst_42 {dimension_numbers = #tpu.dot_dimension_numbers<[1], [0], [0], [1], [0, 0, 1, 1], [], []>, precision = #tpu.contract_precision<fp32>} : vector<32x8xf32>, vector<8x64xf32>, vector<32x64xf32> -> vector<32x64xf32>
    %153 = arith.subf %52, %146 : vector<32x64xf32>
    %154 = arith.addf %153, %152 : vector<32x64xf32>
    %c0_43 = arith.constant 0 : index
    %c0_44 = arith.constant 0 : index
    %155 = vector.load %arg16[%c0_43, %c0_44] : memref<64x8xf32, #tpu.memory_space<vmem>>, vector<64x8xf32>
    %156 = vector.extract_strided_slice %73 {offsets = [0, 8], sizes = [32, 56], strides = [1, 1]} : vector<32x64xf32> to vector<32x56xf32>
    %157 = vector.extract_strided_slice %73 {offsets = [0, 0], sizes = [32, 8], strides = [1, 1]} : vector<32x64xf32> to vector<32x8xf32>
    %158 = tpu.concatenate %156, %157 in 1 : vector<32x56xf32>, vector<32x8xf32> -> vector<32x64xf32>
    %159 = arith.maximumf %73, %158 : vector<32x64xf32>
    %160 = vector.extract_strided_slice %159 {offsets = [0, 16], sizes = [32, 48], strides = [1, 1]} : vector<32x64xf32> to vector<32x48xf32>
    %161 = vector.extract_strided_slice %159 {offsets = [0, 0], sizes = [32, 16], strides = [1, 1]} : vector<32x64xf32> to vector<32x16xf32>
    %162 = tpu.concatenate %160, %161 in 1 : vector<32x48xf32>, vector<32x16xf32> -> vector<32x64xf32>
    %163 = arith.maximumf %159, %162 : vector<32x64xf32>
    %164 = vector.extract_strided_slice %163 {offsets = [0, 32], sizes = [32, 32], strides = [1, 1]} : vector<32x64xf32> to vector<32x32xf32>
    %165 = vector.extract_strided_slice %163 {offsets = [0, 0], sizes = [32, 32], strides = [1, 1]} : vector<32x64xf32> to vector<32x32xf32>
    %166 = tpu.concatenate %164, %165 in 1 : vector<32x32xf32>, vector<32x32xf32> -> vector<32x64xf32>
    %167 = arith.maximumf %163, %166 : vector<32x64xf32>
    %168 = arith.subf %73, %167 : vector<32x64xf32>
    %169 = math.exp %168 : vector<32x64xf32>
    %cst_45 = arith.constant dense<0.000000e+00> : vector<32x8xf32>
    %170 = tpu.matmul %169, %155, %cst_45 {dimension_numbers = #tpu.dot_dimension_numbers<[1], [0], [0], [1], [0, 0, 1, 1], [], []>, precision = #tpu.contract_precision<fp32>} : vector<32x64xf32>, vector<64x8xf32>, vector<32x8xf32> -> vector<32x8xf32>
    %171 = math.log %170 : vector<32x8xf32>
    %172 = arith.subf %107, %171 : vector<32x8xf32>
    %173 = tpu.concatenate %172, %172, %172, %172, %172, %172, %172, %172 in 1 : vector<32x8xf32>, vector<32x8xf32>, vector<32x8xf32>, vector<32x8xf32>, vector<32x8xf32>, vector<32x8xf32>, vector<32x8xf32>, vector<32x8xf32> -> vector<32x64xf32>
    %174 = arith.subf %73, %167 : vector<32x64xf32>
    %175 = arith.addf %174, %173 : vector<32x64xf32>
    %176 = vector.extract_strided_slice %154 {offsets = [0, 0], sizes = [8, 64], strides = [1, 1]} : vector<32x64xf32> to vector<8x64xf32>
    %177 = vector.extract_strided_slice %154 {offsets = [8, 0], sizes = [8, 64], strides = [1, 1]} : vector<32x64xf32> to vector<8x64xf32>
    %178 = vector.extract_strided_slice %154 {offsets = [16, 0], sizes = [8, 64], strides = [1, 1]} : vector<32x64xf32> to vector<8x64xf32>
    %179 = vector.extract_strided_slice %154 {offsets = [24, 0], sizes = [8, 64], strides = [1, 1]} : vector<32x64xf32> to vector<8x64xf32>
    %180 = tpu.concatenate %176, %177, %178, %179 in 1 : vector<8x64xf32>, vector<8x64xf32>, vector<8x64xf32>, vector<8x64xf32> -> vector<8x256xf32>
    %c0_46 = arith.constant 0 : index
    %c0_47 = arith.constant 0 : index
    %c0_48 = arith.constant 0 : index
    %c0_49 = arith.constant 0 : index
    %181 = vector.load %arg18[%c0_46, %c0_47, %c0_48, %c0_49] : memref<1x2x8x256xf32, #tpu.memory_space<vmem>>, vector<1x1x8x256xf32>
    %182 = vector.shape_cast %181 : vector<1x1x8x256xf32> to vector<8x256xf32>
    %183 = vector.shape_cast %180 : vector<8x256xf32> to vector<1x1x8x256xf32>
    tpu.vector_store %arg18[%c0_46, %c0_47, %c0_48, %c0_49], %183 {strides = array<i32>} : memref<1x2x8x256xf32, #tpu.memory_space<vmem>>, vector<1x1x8x256xf32>,
    %184 = vector.extract_strided_slice %175 {offsets = [0, 0], sizes = [8, 64], strides = [1, 1]} : vector<32x64xf32> to vector<8x64xf32>
    %185 = vector.extract_strided_slice %175 {offsets = [8, 0], sizes = [8, 64], strides = [1, 1]} : vector<32x64xf32> to vector<8x64xf32>
    %186 = vector.extract_strided_slice %175 {offsets = [16, 0], sizes = [8, 64], strides = [1, 1]} : vector<32x64xf32> to vector<8x64xf32>
    %187 = vector.extract_strided_slice %175 {offsets = [24, 0], sizes = [8, 64], strides = [1, 1]} : vector<32x64xf32> to vector<8x64xf32>
    %188 = tpu.concatenate %184, %185, %186, %187 in 1 : vector<8x64xf32>, vector<8x64xf32>, vector<8x64xf32>, vector<8x64xf32> -> vector<8x256xf32>
    %c0_50 = arith.constant 0 : index
    %c1 = arith.constant 1 : index
    %c0_51 = arith.constant 0 : index
    %c0_52 = arith.constant 0 : index
    %189 = vector.load %arg18[%c0_50, %c1, %c0_51, %c0_52] : memref<1x2x8x256xf32, #tpu.memory_space<vmem>>, vector<1x1x8x256xf32>
    %190 = vector.shape_cast %189 : vector<1x1x8x256xf32> to vector<8x256xf32>
    %191 = vector.shape_cast %188 : vector<8x256xf32> to vector<1x1x8x256xf32>
    tpu.vector_store %arg18[%c0_50, %c1, %c0_51, %c0_52], %191 {strides = array<i32>} : memref<1x2x8x256xf32, #tpu.memory_space<vmem>>, vector<1x1x8x256xf32>,
    return
  }
  func.func @transform_0(%arg0: i32) -> (i32, i32, i32) {
    %c0_i32 = arith.constant 0 : i32
    %c0_i32_0 = arith.constant 0 : i32
    %c0_i32_1 = arith.constant 0 : i32
    return %arg0, %c0_i32, %c0_i32_0 : i32, i32, i32
  }
  func.func @transform_1(%arg0: i32) -> (i32, i32) {
    %c0_i32 = arith.constant 0 : i32
    %c0_i32_0 = arith.constant 0 : i32
    %c0_i32_1 = arith.constant 0 : i32
    return %c0_i32, %c0_i32_0 : i32, i32
  }
  func.func @transform_2(%arg0: i32) -> (i32, i32) {
    %c0_i32 = arith.constant 0 : i32
    %c0_i32_0 = arith.constant 0 : i32
    %c0_i32_1 = arith.constant 0 : i32
    return %c0_i32, %c0_i32_0 : i32, i32
  }
  func.func @transform_3(%arg0: i32) -> (i32, i32) {
    %c0_i32 = arith.constant 0 : i32
    %c0_i32_0 = arith.constant 0 : i32
    %c0_i32_1 = arith.constant 0 : i32
    return %c0_i32, %c0_i32_0 : i32, i32
  }
  func.func @transform_4(%arg0: i32) -> (i32, i32) {
    %c0_i32 = arith.constant 0 : i32
    %c0_i32_0 = arith.constant 0 : i32
    %c0_i32_1 = arith.constant 0 : i32
    return %c0_i32, %c0_i32_0 : i32, i32
  }
  func.func @transform_5(%arg0: i32) -> (i32, i32) {
    %c0_i32 = arith.constant 0 : i32
    %c0_i32_0 = arith.constant 0 : i32
    %c0_i32_1 = arith.constant 0 : i32
    return %c0_i32, %c0_i32_0 : i32, i32
  }
  func.func @transform_6(%arg0: i32) -> (i32, i32) {
    %c0_i32 = arith.constant 0 : i32
    %c0_i32_0 = arith.constant 0 : i32
    %c0_i32_1 = arith.constant 0 : i32
    return %c0_i32, %c0_i32_0 : i32, i32
  }
  func.func @transform_7(%arg0: i32) -> (i32, i32) {
    %c0_i32 = arith.constant 0 : i32
    %c0_i32_0 = arith.constant 0 : i32
    %c0_i32_1 = arith.constant 0 : i32
    return %c0_i32, %c0_i32_0 : i32, i32
  }
  func.func @transform_8(%arg0: i32) -> (i32, i32) {
    %c0_i32 = arith.constant 0 : i32
    %c0_i32_0 = arith.constant 0 : i32
    %c0_i32_1 = arith.constant 0 : i32
    return %c0_i32, %c0_i32_0 : i32, i32
  }
  func.func @transform_9(%arg0: i32) -> (i32, i32) {
    %c0_i32 = arith.constant 0 : i32
    %c0_i32_0 = arith.constant 0 : i32
    %c0_i32_1 = arith.constant 0 : i32
    return %c0_i32, %c0_i32_0 : i32, i32
  }
  func.func @transform_10(%arg0: i32) -> (i32, i32) {
    %c0_i32 = arith.constant 0 : i32
    %c0_i32_0 = arith.constant 0 : i32
    %c0_i32_1 = arith.constant 0 : i32
    return %c0_i32, %c0_i32_0 : i32, i32
  }
  func.func @transform_11(%arg0: i32) -> (i32, i32) {
    %c0_i32 = arith.constant 0 : i32
    %c0_i32_0 = arith.constant 0 : i32
    %c0_i32_1 = arith.constant 0 : i32
    return %c0_i32, %c0_i32_0 : i32, i32
  }
  func.func @transform_12(%arg0: i32) -> (i32, i32) {
    %c0_i32 = arith.constant 0 : i32
    %c0_i32_0 = arith.constant 0 : i32
    %c0_i32_1 = arith.constant 0 : i32
    return %c0_i32, %c0_i32_0 : i32, i32
  }
  func.func @transform_13(%arg0: i32) -> (i32, i32) {
    %c0_i32 = arith.constant 0 : i32
    %c0_i32_0 = arith.constant 0 : i32
    %c0_i32_1 = arith.constant 0 : i32
    return %c0_i32, %c0_i32_0 : i32, i32
  }
  func.func @transform_14(%arg0: i32) -> (i32, i32) {
    %c0_i32 = arith.constant 0 : i32
    %c0_i32_0 = arith.constant 0 : i32
    %c0_i32_1 = arith.constant 0 : i32
    return %c0_i32, %c0_i32_0 : i32, i32
  }
  func.func @transform_15(%arg0: i32) -> (i32, i32) {
    %c0_i32 = arith.constant 0 : i32
    %c0_i32_0 = arith.constant 0 : i32
    %c0_i32_1 = arith.constant 0 : i32
    return %c0_i32, %c0_i32_0 : i32, i32
  }
  func.func @transform_16(%arg0: i32) -> (i32, i32) {
    %c0_i32 = arith.constant 0 : i32
    %c0_i32_0 = arith.constant 0 : i32
    %c0_i32_1 = arith.constant 0 : i32
    return %c0_i32, %c0_i32_0 : i32, i32
  }
  func.func @transform_17(%arg0: i32) -> (i32, i32, i32, i32) {
    %c0_i32 = arith.constant 0 : i32
    %c0_i32_0 = arith.constant 0 : i32
    %c0_i32_1 = arith.constant 0 : i32
    %c0_i32_2 = arith.constant 0 : i32
    return %arg0, %c0_i32, %c0_i32_0, %c0_i32_1 : i32, i32, i32, i32
  }
}

</mosaic_0001>

<bundles_post_ra>
// kernel: neural_lpcfg_forward.2
= control target key start
LH: loop header
LB: loop body
LE: loop exit
PB: predicated region body
PF: predicated region fallthrough
CT: control target
= control target key end

     0   :  { %s2126_s0 = inlined_call_operand.vmem [shape: f32[1,32], index: 0, kind: input, shape index: {}]   ;;  %s2127_s1 = inlined_call_operand.vmem [shape: f32[8,32], index: 1, kind: input, shape index: {}]   ;;  %s2128_s2 = inlined_call_operand.vmem [shape: f32[32,32], index: 2, kind: input, shape index: {}]   ;;  %s2129_s3 = inlined_call_operand.hbm [shape: f32[1,32], index: 3, kind: input, shape index: {}]   ;;  %s2130_s4 = inlined_call_operand.vmem [shape: f32[32,32], index: 4, kind: input, shape index: {}]   ;;  %s2131_s5 = inlined_call_operand.hbm [shape: f32[1,32], index: 5, kind: input, shape index: {}]   ;;  %s2132_s6 = inlined_call_operand.vmem [shape: f32[32,32], index: 6, kind: input, shape index: {}]   ;;  %s2133_s7 = inlined_call_operand.hbm [shape: f32[1,32], index: 7, kind: input, shape index: {}]   ;;  %s2134_s8 = inlined_call_operand.vmem [shape: f32[32,32], index: 8, kind: input, shape index: {}]   ;;  %s2135_s9 = inlined_call_operand.hbm [shape: f32[1,32], index: 9, kind: input, shape index: {}]   ;;  %s2136_s10 = inlined_call_operand.vmem [shape: f32[32,32], index: 10, kind: input, shape index: {}]   ;;  %s2137_s11 = inlined_call_operand.hbm [shape: f32[1,32], index: 11, kind: input, shape index: {}]   ;;  %s2138_s12 = inlined_call_operand.vmem [shape: f32[32,4], index: 12, kind: input, shape index: {}]   ;;  %s2139_s13 = inlined_call_operand.hbm [shape: f32[1,4], index: 13, kind: input, shape index: {}]   ;;  %s2140_s14 = inlined_call_operand.vmem [shape: f32[32,32], index: 14, kind: input, shape index: {}]   ;;  %s2141_s15 = inlined_call_operand.hbm [shape: f32[1,32], index: 15, kind: input, shape index: {}]   ;;  %s2142_s16 = inlined_call_operand.vmem [shape: f32[32,32], index: 16, kind: input, shape index: {}]   ;;  %s2143_s17 = inlined_call_operand.vmem [shape: f32[1,32], index: 17, kind: input, shape index: {}]   ;;  %s2144_s18 = inlined_call_operand.vmem [shape: f32[32,32], index: 18, kind: input, shape index: {}]   ;;  %s2145_s19 = inlined_call_operand.vmem [shape: f32[1,32], index: 19, kind: input, shape index: {}]   ;;  %s2146_s20 = inlined_call_operand.vmem [shape: f32[32,32], index: 20, kind: input, shape index: {}]   ;;  %s2147_s21 = inlined_call_operand.vmem [shape: f32[1,32], index: 21, kind: input, shape index: {}]   ;;  %s2148_s22 = inlined_call_operand.vmem [shape: f32[32,32], index: 22, kind: input, shape index: {}]   ;;  %s2149_s23 = inlined_call_operand.vmem [shape: f32[1,32], index: 23, kind: input, shape index: {}]   ;;  %s2150_s24 = inlined_call_operand.vmem [shape: f32[32,64], index: 24, kind: input, shape index: {}]   ;;  %s2151_s25 = inlined_call_operand.vmem [shape: f32[1,64], index: 25, kind: input, shape index: {}]   ;;  %s2152_s26 = inlined_call_operand.vmem [shape: f32[1,4], index: 26, kind: output, shape index: {0}]   ;;  %s2153_s27 = inlined_call_operand.vmem [shape: f32[8,64], index: 27, kind: output, shape index: {1}]  }
   0x1   :  { %2164 = sst [smem:[#allocation17_spill]] %s2126_s0 }
   0x2   :  { %2165 = sst [smem:[#allocation18_spill]] %s2127_s1 }
   0x3   :  { %2166 = sst [smem:[#allocation19_spill]] %s2128_s2 }
   0x4   :  { %2167 = sst [smem:[#allocation20_spill]] %s2129_s3 }
   0x5   :  { %2168 = sst [smem:[#allocation21_spill]] %s2130_s4 }
   0x6   :  { %2169 = sst [smem:[#allocation22_spill]] %s2131_s5 }
   0x7   :  { %2170 = sst [smem:[#allocation23_spill]] %s2132_s6 }
   0x8   :  { %2171 = sst [smem:[#allocation24_spill]] %s2133_s7 }
   0x9   :  { %2172 = sst [smem:[#allocation25_spill]] %s2134_s8 }
   0xa   :  { %2173 = sst [smem:[#allocation26_spill]] %s2135_s9 }
   0xb   :  { %2174 = sst [smem:[#allocation27_spill]] %s2136_s10 }
   0xc   :  { %2175 = sst [smem:[#allocation28_spill]] %s2137_s11 }
   0xd   :  { %33 = vsyncpa [#allocation3], 0 }
   0xe   :  { %34 = vsyncpa [#allocation5], 0 }
   0xf   :  { %35 = vsyncpa [#allocation8], 0 }
  0x10   :  { %36 = vsyncpa [#allocation11], 0  ;;  %s1655_s7 = smov [#allocation4]   ;;  %s1656_s8 = smov [#allocation7]  }
  0x11   :  { %s61_s4 = sshll.u32 %s1655_s7, 4  ;;  %s85_s30 = sshll.u32 %s1656_s8, 4  ;;  %s62_s4 = int_to_ptr.vmem [resolvable:$true] %s61_s4  ;;  %s86_s30 = int_to_ptr.vmem [resolvable:$true] %s85_s30 }
  0x12   :  { %s2176_s28 = sld [smem:[#allocation22_spill]] }
  0x18   :  { %s1493_s0 = scalar_lea.hbm %s2176_s28, 16 }
  0x19   :  { %p1494_p0 = scmp.ne.s32.totalorder %s2176_s28, %s1493_s0  ;;  %p1497_p1 = scmp.lt.u32.totalorder %s1493_s0, %s2176_s28 }
  0x1b   :  { %p1499_p2 = pnand %p1497_p1, %p1494_p0 }
  0x1d   :  { %1502 = shalt.err (!%p1499_p2)
}
  0x1e   :  { %s1503_s11 = scalar_lea.vmem %s62_s4, 16  ;;  %s1507_s2 = scalar_lea.vmem %s62_s4, 32 }
  0x1f   :  { %p1504_p3 = scmp.ne.s32.totalorder %s62_s4, %s1503_s11  ;;  %p1508_p4 = scmp.lt.s32.totalorder %s62_s4, %s62_s4 }
  0x20   :  { %p1509_p5 = scmp.lt.s32.totalorder %s1507_s2, %s1503_s11 }
  0x22   :  { %p1510_p6 = por %p1509_p5, %p1508_p4 }
  0x24   :  { %p1511_p7 = pnand %p1510_p6, %p1504_p3 }
  0x26   :  { %1514 = shalt.err (!%p1511_p7)
}
  0x27   :  { %64 = dma.hbm_to_vmem [thread:$0]  %s2176_s28, 16, %s62_s4, [#allocation5]  }
  0x28   :  { %s2177_s5 = sld [smem:[#allocation26_spill]] }
  0x2e   :  { %s1515_s10 = scalar_lea.hbm %s2177_s5, 16 }
  0x2f   :  { %p1516_p8 = scmp.ne.s32.totalorder %s2177_s5, %s1515_s10  ;;  %p1519_p9 = scmp.lt.u32.totalorder %s1515_s10, %s2177_s5 }
  0x31   :  { %p1521_p10 = pnand %p1519_p9, %p1516_p8 }
  0x33   :  { %1524 = shalt.err (!%p1521_p10)
}
  0x34   :  { %s1525_s11 = scalar_lea.vmem %s86_s30, 16  ;;  %s1529_s2 = scalar_lea.vmem %s86_s30, 32 }
  0x35   :  { %p1526_p11 = scmp.ne.s32.totalorder %s86_s30, %s1525_s11  ;;  %p1530_p12 = scmp.lt.s32.totalorder %s86_s30, %s86_s30 }
  0x36   :  { %p1531_p13 = scmp.lt.s32.totalorder %s1529_s2, %s1525_s11 }
  0x38   :  { %p1532_p0 = por %p1531_p13, %p1530_p12 }
  0x3a   :  { %p1533_p1 = pnand %p1532_p0, %p1526_p11 }
  0x3c   :  { %1536 = shalt.err (!%p1533_p1)
}
  0x3d   :  { %88 = dma.hbm_to_vmem [thread:$0]  %s2177_s5, 16, %s86_s30, [#allocation8]  }
  0x3e   :  { %s1657_s3 = smov [#allocation10]   ;;  %s1658_s8 = smov [#allocation2]  }
  0x3f   :  { %s109_s7 = sshll.u32 %s1657_s3, 4  ;;  %s49_s9 = sshll.u32 %s1658_s8, 4  ;;  %s110_s7 = int_to_ptr.vmem [resolvable:$true] %s109_s7  ;;  %s50_s9 = int_to_ptr.vmem [resolvable:$true] %s49_s9 }
  0x40   :  { %s1537_s0 = scalar_lea.hbm %s2139_s13, 16 }
  0x41   :  { %p1538_p2 = scmp.ne.s32.totalorder %s2139_s13, %s1537_s0  ;;  %p1541_p3 = scmp.lt.u32.totalorder %s1537_s0, %s2139_s13 }
  0x43   :  { %p1543_p4 = pnand %p1541_p3, %p1538_p2 }
  0x45   :  { %1546 = shalt.err (!%p1543_p4)
}
  0x46   :  { %s1547_s30 = scalar_lea.vmem %s110_s7, 16  ;;  %s1551_s5 = scalar_lea.vmem %s110_s7, 32 }
  0x47   :  { %p1548_p5 = scmp.ne.s32.totalorder %s110_s7, %s1547_s30  ;;  %p1552_p6 = scmp.lt.s32.totalorder %s110_s7, %s110_s7 }
  0x48   :  { %p1553_p7 = scmp.lt.s32.totalorder %s1551_s5, %s1547_s30 }
  0x4a   :  { %p1554_p8 = por %p1553_p7, %p1552_p6 }
  0x4c   :  { %p1555_p9 = pnand %p1554_p8, %p1548_p5 }
  0x4e   :  { %1558 = shalt.err (!%p1555_p9)
}
  0x4f   :  { %112 = dma.hbm_to_vmem [thread:$0]  %s2139_s13, 16, %s110_s7, [#allocation11]  }
  0x50   :  { %s2178_s10 = sld [smem:[#allocation20_spill]] }
  0x56   :  { %s1559_s29 = scalar_lea.hbm %s2178_s10, 16 }
  0x57   :  { %p1560_p10 = scmp.ne.s32.totalorder %s2178_s10, %s1559_s29  ;;  %p1563_p11 = scmp.lt.u32.totalorder %s1559_s29, %s2178_s10 }
  0x59   :  { %p1565_p12 = pnand %p1563_p11, %p1560_p10 }
  0x5b   :  { %1568 = shalt.err (!%p1565_p12)
}
  0x5c   :  { %s1569_s2 = scalar_lea.vmem %s50_s9, 16  ;;  %s1573_s30 = scalar_lea.vmem %s50_s9, 32 }
  0x5d   :  { %p1570_p13 = scmp.ne.s32.totalorder %s50_s9, %s1569_s2  ;;  %p1574_p0 = scmp.lt.s32.totalorder %s50_s9, %s50_s9 }
  0x5e   :  { %p1575_p1 = scmp.lt.s32.totalorder %s1573_s30, %s1569_s2 }
  0x60   :  { %p1576_p2 = por %p1575_p1, %p1574_p0 }
  0x62   :  { %p1577_p3 = pnand %p1576_p2, %p1570_p13 }
  0x64   :  { %1580 = shalt.err (!%p1577_p3)
}
  0x65   :  { %52 = dma.hbm_to_vmem [thread:$0]  %s2178_s10, 16, %s50_s9, [#allocation3]  }
  0x66   :  { %s1659_s5 = smov [#allocation6]   ;;  %s1660_s28 = smov [#allocation9]  }
  0x67   :  { %s73_s4 = sshll.u32 %s1659_s5, 4  ;;  %s97_s3 = sshll.u32 %s1660_s28, 4  ;;  %s74_s4 = int_to_ptr.vmem [resolvable:$true] %s73_s4  ;;  %s98_s3 = int_to_ptr.vmem [resolvable:$true] %s97_s3 }
  0x68   :  { %s2179_s1 = sld [smem:[#allocation24_spill]] }
  0x6e   :  { %s1581_s0 = scalar_lea.hbm %s2179_s1, 16 }
  0x6f   :  { %p1582_p4 = scmp.ne.s32.totalorder %s2179_s1, %s1581_s0  ;;  %p1585_p5 = scmp.lt.u32.totalorder %s1581_s0, %s2179_s1 }
  0x71   :  { %p1587_p6 = pnand %p1585_p5, %p1582_p4 }
  0x73   :  { %1590 = shalt.err (!%p1587_p6)
}
  0x74   :  { %s1591_s9 = scalar_lea.vmem %s74_s4, 16  ;;  %s1595_s10 = scalar_lea.vmem %s74_s4, 32 }
  0x75   :  { %p1592_p7 = scmp.ne.s32.totalorder %s74_s4, %s1591_s9  ;;  %p1596_p8 = scmp.lt.s32.totalorder %s74_s4, %s74_s4 }
  0x76   :  { %p1597_p9 = scmp.lt.s32.totalorder %s1595_s10, %s1591_s9 }
  0x78   :  { %p1598_p10 = por %p1597_p9, %p1596_p8 }
  0x7a   :  { %p1599_p11 = pnand %p1598_p10, %p1592_p7 }
  0x7c   :  { %1602 = shalt.err (!%p1599_p11)
}
  0x7d   :  { %76 = dma.hbm_to_vmem [thread:$0]  %s2179_s1, 16, %s74_s4, [#allocation5]  }
  0x7e   :  { %s2180_s8 = sld [smem:[#allocation28_spill]] }
  0x84   :  { %s1603_s29 = scalar_lea.hbm %s2180_s8, 16 }
  0x85   :  { %p1604_p12 = scmp.ne.s32.totalorder %s2180_s8, %s1603_s29  ;;  %p1607_p13 = scmp.lt.u32.totalorder %s1603_s29, %s2180_s8 }
  0x87   :  { %p1609_p0 = pnand %p1607_p13, %p1604_p12 }
  0x89   :  { %1612 = shalt.err (!%p1609_p0)
}
  0x8a   :  { %s1613_s30 = scalar_lea.vmem %s98_s3, 16  ;;  %s1617_s9 = scalar_lea.vmem %s98_s3, 32 }
  0x8b   :  { %p1614_p1 = scmp.ne.s32.totalorder %s98_s3, %s1613_s30  ;;  %p1618_p2 = scmp.lt.s32.totalorder %s98_s3, %s98_s3 }
  0x8c   :  { %p1619_p3 = scmp.lt.s32.totalorder %s1617_s9, %s1613_s30 }
  0x8e   :  { %p1620_p4 = por %p1619_p3, %p1618_p2 }
  0x90   :  { %p1621_p5 = pnand %p1620_p4, %p1614_p1 }
  0x92   :  { %1624 = shalt.err (!%p1621_p5)
}
  0x93   :  { %100 = dma.hbm_to_vmem [thread:$0]  %s2180_s8, 16, %s98_s3, [#allocation8]  }
  0x94   :  { %s1661_s10 = smov [#allocation12]   ;;  %s1625_s28 = scalar_lea.hbm %s2141_s15, 16 }
  0x95   :  { %s121_s13 = sshll.u32 %s1661_s10, 4  ;;  %p1626_p6 = scmp.ne.s32.totalorder %s2141_s15, %s1625_s28  ;;  %s122_s13 = int_to_ptr.vmem [resolvable:$true] %s121_s13 }
  0x96   :  { %p1629_p7 = scmp.lt.u32.totalorder %s1625_s28, %s2141_s15 }
  0x98   :  { %p1631_p8 = pnand %p1629_p7, %p1626_p6 }
  0x9a   :  { %1634 = shalt.err (!%p1631_p8)
}
  0x9b   :  { %s1635_s2 = scalar_lea.vmem %s122_s13, 16  ;;  %s1639_s3 = scalar_lea.vmem %s122_s13, 32 }
  0x9c   :  { %p1636_p9 = scmp.ne.s32.totalorder %s122_s13, %s1635_s2  ;;  %p1640_p10 = scmp.lt.s32.totalorder %s122_s13, %s122_s13 }
  0x9d   :  { %p1641_p11 = scmp.lt.s32.totalorder %s1639_s3, %s1635_s2 }
  0x9f   :  { %p1642_p12 = por %p1641_p11, %p1640_p10 }
  0xa1   :  { %p1643_p13 = pnand %p1642_p12, %p1636_p9 }
  0xa3   :  { %1646 = shalt.err (!%p1643_p13)
}
  0xa4   :  { %124 = dma.hbm_to_vmem [thread:$0]  %s2141_s15, 16, %s122_s13, [#allocation11]  }
  0xa5   :  { %1647 = dma.done.wait [#allocation3], 16  }
  0xa6   :  { %1648 = vsyncadd [#allocation3], 4294967280 }
  0xa7   :  { %1649 = dma.done.wait [#allocation5], 32  }
  0xa8   :  { %1650 = vsyncadd [#allocation5], 4294967264 }
  0xa9   :  { %1651 = dma.done.wait [#allocation8], 32  }
  0xaa   :  { %1652 = vsyncadd [#allocation8], 4294967264 }
  0xab   :  { %1653 = dma.done.wait [#allocation11], 32  }
  0xac   :  { %1654 = vsyncadd [#allocation11], 4294967264  ;;  %v1662_v0 = vmov 0.0|0.0   ;;  %vm1663_vm0 = vmmov 0   ;;  %v1664_v1 = vmov 0.0   ;;  %s2181_s4 = sld [smem:[#allocation19_spill]] }
  0xad   :  { %1403 = vmatprep.subr.bf16.mxu0 %v1662_v0  ;;  %1279 = vmatprep.mubr.msk.f32.mxu0 %vm1663_vm0, %v1664_v1  ;;  %s2182_s0 = sld [smem:[#allocation21_spill]]  ;;  %s2183_s30 = sld [smem:[#allocation17_spill]]  ;;  %vm227_vm1 = vcmask 261120   ;;  %v170_v18 = vld [vmem:[#allocation2] sm:$0x1]  ;;  %v192_v49 = vld [vmem:[%s2138_s12 + $0x8] sm:$0xff] }
  0xae   :  { %1409 = vmatprep.subr.bf16.mxu1 %v1662_v0  ;;  %1290 = vmatprep.mubr.msk.f32.mxu1 %vm1663_vm0, %v1664_v1  ;;  %s2184_s7 = sld [smem:[#allocation23_spill]]  ;;  %v175_v25 = vld [vmem:[#allocation4] sm:$0x1]  ;;  %s2185_s8 = sld [smem:[#allocation25_spill]]  ;;  %v180_v39 = vld [vmem:[#allocation6] sm:$0x1] }
  0xaf   :  { %s2186_s5 = sld [smem:[#allocation27_spill]]  ;;  %v191_v48 = vld [vmem:[%s2138_s12] sm:$0xff]  ;;  %v197_v53 = vld [vmem:[%s2140_s14 + $0x8] sm:$0xff]  ;;  %v198_v59 = vld [vmem:[%s2140_s14 + $0x10] sm:$0xff]  ;;  %vm672_vm2 = vcmask 24576   ;;  %vm1167_vm3 = vcmask 523264  }
  0xb0   :  { %v1434_v50 = vpack.c.bf16 %v192_v49, %v191_v48  ;;  %v185_v51 = vld [vmem:[#allocation7] sm:$0x1]  ;;  %v199_v60 = vld [vmem:[%s2140_s14 + $0x18] sm:$0xff]  ;;  %v193_v63 = vld [vmem:[%s2138_s12 + $0x10] sm:$0xff] }
  0xb1   :  { %v196_v52 = vld [vmem:[%s2140_s14] sm:$0xff]  ;;  %v1443_v61 = vpack.c.bf16 %v199_v60, %v198_v59  ;;  %v217_v48 = vld [vmem:[%s2148_s22 + $0x8] sm:$0xff] }
  0xb2   :  { %v166_v2 = vld [vmem:[%s2181_s4] sm:$0xff]  ;;  %v167_v3 = vld [vmem:[%s2181_s4 + $0x8] sm:$0xff]  ;;  %v168_v4 = vld [vmem:[%s2181_s4 + $0x10] sm:$0xff]  ;;  %v1440_v57 = vpack.c.bf16 %v197_v53, %v196_v52 }
  0xb3   :  { %v1404_v5 = vpack.c.bf16 %v167_v3, %v166_v2  ;;  %v169_v6 = vld [vmem:[%s2181_s4 + $0x18] sm:$0xff]  ;;  %v171_v7 = vld [vmem:[%s2182_s0] sm:$0xff]  ;;  %v172_v8 = vld [vmem:[%s2182_s0 + $0x8] sm:$0xff] }
  0xb4   :  { %v1407_v9 = vpack.c.bf16 %v169_v6, %v168_v4  ;;  %v1410_v10 = vpack.c.bf16 %v172_v8, %v171_v7  ;;  %v226_v11 = vld [vmem:[%s2183_s30] sm:$0x1]  ;;  %v173_v12 = vld [vmem:[%s2182_s0 + $0x10] sm:$0xff]  ;;  %v174_v13 = vld [vmem:[%s2182_s0 + $0x18] sm:$0xff]  ;;  %s2187_s0 = sld [smem:[#allocation18_spill]] }
  0xb5   :  { %1405 = vmatpush3.bf16.msra.mxu0 %v1404_v5  ;;  %v1413_v14 = vpack.c.bf16 %v174_v13, %v173_v12  ;;  %v176_v15 = vld [vmem:[%s2184_s7] sm:$0xff]  ;;  %v177_v16 = vld [vmem:[%s2184_s7 + $0x8] sm:$0xff]  ;;  %v178_v22 = vld [vmem:[%s2184_s7 + $0x10] sm:$0xff] }
  0xb6   :  { %1406 = vmatprep.subr.bf16.mxu0 %v1662_v0  ;;  %1411 = vmatpush3.bf16.msra.mxu1 %v1410_v10  ;;  %v1416_v17 = vpack.c.bf16 %v177_v16, %v176_v15  ;;  %v179_v23 = vld [vmem:[%s2184_s7 + $0x18] sm:$0xff]  ;;  %v181_v30 = vld [vmem:[%s2185_s8] sm:$0xff]  ;;  %v182_v31 = vld [vmem:[%s2185_s8 + $0x8] sm:$0xff] }
  0xb7   :  { %1412 = vmatprep.subr.bf16.mxu1 %v1662_v0  ;;  %v1419_v24 = vpack.c.bf16 %v179_v23, %v178_v22  ;;  %v1422_v32 = vpack.c.bf16 %v182_v31, %v181_v30  ;;  %v183_v33 = vld [vmem:[%s2185_s8 + $0x10] sm:$0xff]  ;;  %v184_v34 = vld [vmem:[%s2185_s8 + $0x18] sm:$0xff]  ;;  %v186_v36 = vld [vmem:[%s2186_s5] sm:$0xff] }
  0xb8   :  { %v1425_v35 = vpack.c.bf16 %v184_v34, %v183_v33  ;;  %v187_v37 = vld [vmem:[%s2186_s5 + $0x8] sm:$0xff]  ;;  %v188_v45 = vld [vmem:[%s2186_s5 + $0x10] sm:$0xff]  ;;  %v189_v46 = vld [vmem:[%s2186_s5 + $0x18] sm:$0xff] }
  0xb9   :  { %1408 = vmatpush3.bf16.msra.mxu0 %v1407_v9  ;;  %v1428_v38 = vpack.c.bf16 %v187_v37, %v186_v36  ;;  %v1431_v47 = vpack.c.bf16 %v189_v46, %v188_v45  ;;  %v194_v2 = vld [vmem:[%s2138_s12 + $0x18] sm:$0xff]  ;;  %v190_v4 = vld [vmem:[#allocation9] sm:$0x1]  ;;  %v201_v8 = vld [vmem:[%s2142_s16] sm:$0xff] }
  0xba   :  { %1415 = vmatprep.subr.bf16.mxu0 %v1662_v0  ;;  %1414 = vmatpush3.bf16.msra.mxu1 %v1413_v14  ;;  %v686_v62 = vld [vmem:[%s2187_s0] sm:$0xff]  ;;  %v1437_v3 = vpack.c.bf16 %v194_v2, %v193_v63  ;;  %v202_v9 = vld [vmem:[%s2142_s16 + $0x8] sm:$0xff]  ;;  %v203_v13 = vld [vmem:[%s2142_s16 + $0x10] sm:$0xff] }
  0xbb   :  { %1421 = vmatprep.subr.bf16.mxu1 %v1662_v0  ;;  %v204_v14 = vld [vmem:[%s2142_s16 + $0x18] sm:$0xff]  ;;  %v1199_v15 = vld [vmem:[#allocation12] ss:$0 sm:$0xff]  ;;  %v208_v23 = vld [vmem:[%s2144_s18 + $0x10] sm:$0xff] }
  0xbc   :  { %1280 = vmatmul.mubr.msk.f32.vlgmr.msra.gmra.mrb[0].mxu0 %vm227_vm1, %v226_v11  ;;  %v1446_v11 = vpack.c.bf16 %v202_v9, %v201_v8  ;;  %v1201_v31 = vld [vmem:[%s2143_s17] ss:$0 sm:$0xff]  ;;  %v212_v37 = vld [vmem:[%s2146_s20 + $0x8] sm:$0xff]  ;;  %v223_v8 = vld [vmem:[%s2150_s24 + $0x10] sm:$0xff] }
  0xbd   :  { %1301 = vmatprep.mubr.msk.f32.mxu0 %vm1663_vm0, %v1664_v1  ;;  %1417 = vmatpush3.bf16.msra.mxu0 %v1416_v17  ;;  %v1449_v17 = vpack.c.bf16 %v204_v14, %v203_v13  ;;  %v211_v36 = vld [vmem:[%s2146_s20] sm:$0xff]  ;;  %v224_v9 = vld [vmem:[%s2150_s24 + $0x18] sm:$0xff] }
  0xbe   :  { %1418 = vmatprep.subr.bf16.mxu0 %v1662_v0 }
  0xc1   :  { %1420 = vmatpush3.bf16.msra.mxu0 %v1419_v24  ;;  %v209_v24 = vld [vmem:[%s2144_s18 + $0x18] sm:$0xff] }
  0xc2   :  { %1427 = vmatprep.subr.bf16.mxu0 %v1662_v0 }
 0x18f   :  { %v297_v19 = vpop.f32.mrb[0].mxu0 }
 0x190   :  { %v298_v20 = vadd.f32 %v297_v19, %v170_v18  ;;  %v1281_v21 = vpop.f32.mrb[1].mxu0 }
 0x191   :  { %v207_v21 = vld [vmem:[%s2144_s18 + $0x8] sm:$0xff] }
 0x192   :  { %1291 = vmatmul.mubr.msk.f32.vlgmr.msra.gmra.mrb[0].mxu1 %vm227_vm1, %v298_v20 }
 0x193   :  { %1312 = vmatprep.mubr.msk.f32.mxu1 %vm1663_vm0, %v1664_v1  ;;  %1423 = vmatpush3.bf16.msra.mxu1 %v1422_v32 }
 0x194   :  { %1424 = vmatprep.subr.bf16.mxu1 %v1662_v0 }
 0x197   :  { %1426 = vmatpush3.bf16.msra.mxu1 %v1425_v35 }
 0x198   :  { %1433 = vmatprep.subr.bf16.mxu1 %v1662_v0 }
 0x265   :  { %v370_v26 = vpop.f32.mrb[0].mxu1 }
 0x266   :  { %v371_v27 = vadd.f32 %v370_v26, %v175_v25  ;;  %v1292_v28 = vpop.f32.mrb[1].mxu1  ;;  %v1455_v25 = vpack.c.bf16 %v209_v24, %v208_v23  ;;  %v195_v26 = vld [vmem:[#allocation10] sm:$0x1] }
 0x268   :  { %v374_v29 = vmax.f32 %v371_v27, 0.0 }
 0x26a   :  { %1302 = vmatmul.mubr.msk.f32.vlgmr.msra.gmra.mrb[2].mxu0 %vm227_vm1, %v374_v29 }
 0x26b   :  { %1323 = vmatprep.mubr.msk.f32.mxu0 %vm1663_vm0, %v1664_v1  ;;  %1429 = vmatpush3.bf16.msra.mxu0 %v1428_v38  ;;  %v1458_v38 = vpack.c.bf16 %v212_v37, %v211_v36 }
 0x26c   :  { %1430 = vmatprep.subr.bf16.mxu0 %v1662_v0 }
 0x26f   :  { %1432 = vmatpush3.bf16.msra.mxu0 %v1431_v47  ;;  %v216_v47 = vld [vmem:[%s2148_s22] sm:$0xff] }
 0x270   :  { %1439 = vmatprep.subr.bf16.mxu0 %v1662_v0  ;;  %v1464_v49 = vpack.c.bf16 %v217_v48, %v216_v47 }
 0x33d   :  { %v444_v40 = vpop.f32.mrb[2].mxu0 }
 0x33e   :  { %v445_v41 = vadd.f32 %v444_v40, %v180_v39  ;;  %v1303_v42 = vpop.f32.mrb[3].mxu0  ;;  %v213_v39 = vld [vmem:[%s2146_s20 + $0x10] sm:$0xff]  ;;  %v214_v40 = vld [vmem:[%s2146_s20 + $0x18] sm:$0xff] }
 0x340   :  { %v448_v43 = vmax.f32 %v445_v41, 0.0  ;;  %v1461_v41 = vpack.c.bf16 %v214_v40, %v213_v39 }
 0x342   :  { %v449_v44 = vadd.f32 %v448_v43, %v298_v20  ;;  %v206_v20 = vld [vmem:[%s2144_s18] sm:$0xff] }
 0x343   :  { %v1452_v22 = vpack.c.bf16 %v207_v21, %v206_v20 }
 0x344   :  { %1313 = vmatmul.mubr.msk.f32.vlgmr.msra.gmra.mrb[2].mxu1 %vm227_vm1, %v449_v44 }
 0x345   :  { %1334 = vmatprep.mubr.msk.f32.mxu1 %vm1663_vm0, %v1664_v1  ;;  %1435 = vmatpush3.bf16.msra.mxu1 %v1434_v50  ;;  %v1203_v50 = vld [vmem:[%s2145_s19] ss:$0 sm:$0xff] }
 0x346   :  { %1436 = vmatprep.subr.bf16.mxu1 %v1662_v0 }
 0x349   :  { %1438 = vmatpush3.bf16.msra.mxu1 %v1437_v3 }
 0x34a   :  { %1445 = vmatprep.subr.bf16.mxu1 %v1662_v0 }
 0x417   :  { %v519_v54 = vpop.f32.mrb[2].mxu1 }
 0x418   :  { %v520_v55 = vadd.f32 %v519_v54, %v185_v51  ;;  %v1314_v56 = vpop.f32.mrb[3].mxu1 }
 0x41a   :  { %v523_v58 = vmax.f32 %v520_v55, 0.0 }
 0x41c   :  { %1324 = vmatmul.mubr.msk.f32.vlgmr.msra.gmra.mrb[4].mxu0 %vm227_vm1, %v523_v58  ;;  %v219_v58 = vld [vmem:[%s2148_s22 + $0x18] sm:$0xff] }
 0x41d   :  { %1441 = vmatpush3.bf16.msra.mxu0 %v1440_v57  ;;  %1345 = vmatprep.mubr.msk.f32.mxu0 %vm1663_vm0, %v1664_v1  ;;  %v218_v57 = vld [vmem:[%s2148_s22 + $0x10] sm:$0xff] }
 0x41e   :  { %1442 = vmatprep.subr.bf16.mxu0 %v1662_v0  ;;  %v1467_v60 = vpack.c.bf16 %v219_v58, %v218_v57 }
 0x421   :  { %1444 = vmatpush3.bf16.msra.mxu0 %v1443_v61 }
 0x422   :  { %1451 = vmatprep.subr.bf16.mxu0 %v1662_v0 }
 0x424   :  { %1346 = vmatmul.mubr.msk.f32.vlgmr.msra.gmra.mrb[6].mxu0 %vm227_vm1, %v686_v62 }
 0x425   :  { %1367 = vmatprep.mubr.msk.f32.mxu0 %vm1663_vm0, %v1664_v1  ;;  %1453 = vmatpush3.bf16.msra.mxu0 %v1452_v22 }
 0x426   :  { %1454 = vmatprep.subr.bf16.mxu0 %v1662_v0 }
 0x429   :  { %1456 = vmatpush3.bf16.msra.mxu0 %v1455_v25 }
 0x42a   :  { %1463 = vmatprep.subr.bf16.mxu0 %v1662_v0 }
 0x4ef   :  { %v593_v5 = vpop.f32.mrb[4].mxu0 }
 0x4f0   :  { %v594_v6 = vadd.f32 %v593_v5, %v190_v4  ;;  %v1325_v7 = vpop.f32.mrb[5].mxu0  ;;  %v221_v5 = vld [vmem:[%s2150_s24] sm:$0xff] }
 0x4f2   :  { %v597_v10 = vmax.f32 %v594_v6, 0.0  ;;  %v222_v6 = vld [vmem:[%s2150_s24 + $0x8] sm:$0xff] }
 0x4f3   :  { %v1470_v7 = vpack.c.bf16 %v222_v6, %v221_v5 }
 0x4f4   :  { %v598_v12 = vadd.f32 %v597_v10, %v449_v44  ;;  %v1473_v10 = vpack.c.bf16 %v224_v9, %v223_v8 }
 0x4f6   :  { %1335 = vmatmul.mubr.msk.f32.vlgmr.msra.gmra.mrb[4].mxu1 %vm227_vm1, %v598_v12 }
 0x4f7   :  { %1447 = vmatpush3.bf16.msra.mxu1 %v1446_v11  ;;  %v762_v16 = vpop.f32.mrb[6].mxu0  ;;  %1356 = vmatprep.mubr.msk.f32.mxu1 %vm1663_vm0, %v1664_v1  ;;  %v1207_v11 = vld [vmem:[%s2149_s23] ss:$0 sm:$0xff] }
 0x4f8   :  { %1448 = vmatprep.subr.bf16.mxu1 %v1662_v0  ;;  %v1347_v18 = vpop.f32.mrb[7].mxu0  ;;  %v763_v19 = vadd.f32 %v1199_v15, %v762_v16 }
 0x4fb   :  { %1450 = vmatpush3.bf16.msra.mxu1 %v1449_v17 }
 0x4fc   :  { %1457 = vmatprep.subr.bf16.mxu1 %v1662_v0 }
 0x4fe   :  { %1357 = vmatmul.mubr.msk.f32.vlgmr.msra.gmra.mrb[6].mxu1 %vm227_vm1, %v763_v19 }
 0x4ff   :  { %1378 = vmatprep.mubr.msk.f32.mxu1 %vm1663_vm0, %v1664_v1  ;;  %1459 = vmatpush3.bf16.msra.mxu1 %v1458_v38 }
 0x500   :  { %1460 = vmatprep.subr.bf16.mxu1 %v1662_v0 }
 0x503   :  { %1462 = vmatpush3.bf16.msra.mxu1 %v1461_v41 }
 0x504   :  { %1469 = vmatprep.subr.bf16.mxu1 %v1662_v0 }
 0x5c9   :  { %v668_v27 = vpop.f32.mrb[4].mxu1 }
 0x5ca   :  { %v669_v28 = vadd.f32 %v668_v27, %v195_v26  ;;  %v1336_v29 = vpop.f32.mrb[5].mxu1 }
 0x5cc   :  { %v673_v30 = vsel %vm672_vm2, %v669_v28, -inf }
 0x5cd   :  { %674 = vmax.xlane.f32.xlu0 %v673_v30 }
 0x5d1   :  { %v841_v32 = vpop.f32.mrb[6].mxu1 }
 0x5d2   :  { %v842_v33 = vadd.f32 %v1201_v31, %v841_v32  ;;  %v1358_v34 = vpop.f32.mrb[7].mxu1 }
 0x5d4   :  { %v845_v35 = vmax.f32 %v842_v33, 0.0 }
 0x5d6   :  { %1368 = vmatmul.mubr.msk.f32.vlgmr.msra.gmra.mrb[8].mxu0 %vm227_vm1, %v845_v35 }
 0x5d7   :  { %1389 = vmatprep.mubr.msk.f32.mxu0 %vm1663_vm0, %v1664_v1  ;;  %1465 = vmatpush3.bf16.msra.mxu0 %v1464_v49 }
 0x5d8   :  { %1466 = vmatprep.subr.bf16.mxu0 %v1662_v0 }
 0x5db   :  { %1468 = vmatpush3.bf16.msra.mxu0 %v1467_v60 }
 0x65a   :  { %v675_v42 = vpop.xlane.xlu0 %674 }
 0x65b   :  { %v676_v43 = vsub.f32 %v669_v28, %v675_v42 }
 0x65d   :  { %v677_v44 = vmul.f32 1.442695, %v676_v43 }
 0x65f   :  { %1485 = vpow2.f32 %v677_v44 }
 0x669   :  { %v1486_v45 = vpop.eup %1485 }
 0x66a   :  { %v679_v46 = vsel %vm672_vm2, %v1486_v45, 0.0 }
 0x66b   :  { %680 = vadd.xlane.f32.xlu1 %v679_v46 }
 0x6a9   :  { %v921_v51 = vpop.f32.mrb[8].mxu0 }
 0x6aa   :  { %v922_v52 = vadd.f32 %v1203_v50, %v921_v51  ;;  %v1369_v53 = vpop.f32.mrb[9].mxu0 }
 0x6ac   :  { %v925_v54 = vmax.f32 %v922_v52, 0.0 }
 0x6ae   :  { %v926_v55 = vadd.f32 %v925_v54, %v763_v19 }
 0x6b0   :  { %1379 = vmatmul.mubr.msk.f32.vlgmr.msra.gmra.mrb[8].mxu1 %vm227_vm1, %v926_v55 }
 0x6b1   :  { %1400 = vmatprep.mubr.msk.f32.mxu1 %vm1663_vm0, %v1664_v1  ;;  %v1205_v1 = vld [vmem:[%s2147_s21] ss:$0 sm:$0xff]  ;;  %1471 = vmatpush3.bf16.msra.mxu1 %v1470_v7 }
 0x6b2   :  { %1472 = vmatprep.subr.bf16.mxu1 %v1662_v0  ;;  %v1209_v0 = vld [vmem:[%s2151_s25] ss:$0 sm:$0xff] }
 0x6b5   :  { %1474 = vmatpush3.bf16.msra.mxu1 %v1473_v10 }
 0x6f8   :  { %v681_v56 = vpop.xlane.xlu1 %680 }
 0x6f9   :  { %1487 = vlog2.f32 %v681_v56 }
 0x703   :  { %v1488_v59 = vpop.eup %1487 }
 0x704   :  { %v683_v61 = vmul.f32 0.6931472, %v1488_v59 }
 0x706   :  { %v684_v62 = vsub.f32 %v676_v43, %v683_v61 }
 0x708   :  { %685 = vst.msk [vmem:[%s2152_s26] sm:$0x1] %vm672_vm2, %v684_v62 }
 0x783   :  { %v1002_v63 = vpop.f32.mrb[8].mxu1 }
 0x784   :  { %v1003_v2 = vadd.f32 %v1205_v1, %v1002_v63  ;;  %v1380_v3 = vpop.f32.mrb[9].mxu1 }
 0x786   :  { %v1006_v4 = vmax.f32 %v1003_v2, 0.0 }
 0x788   :  { %1390 = vmatmul.mubr.msk.f32.vlgmr.msra.gmra.mrb[10].mxu0 %vm227_vm1, %v1006_v4 }
 0x85b   :  { %v1082_v12 = vpop.f32.mrb[10].mxu0 }
 0x85c   :  { %v1083_v13 = vadd.f32 %v1207_v11, %v1082_v12  ;;  %v1391_v14 = vpop.f32.mrb[11].mxu0 }
 0x85e   :  { %v1086_v15 = vmax.f32 %v1083_v13, 0.0 }
 0x860   :  { %v1087_v16 = vadd.f32 %v1086_v15, %v926_v55 }
 0x862   :  { %1401 = vmatmul.mubr.msk.f32.vlgmr.msra.gmra.mrb[10].mxu1 %vm227_vm1, %v1087_v16 }
 0x935   :  { %v1163_v17 = vpop.f32.mrb[10].mxu1 }
 0x936   :  { %v1164_v18 = vadd.f32 %v1209_v0, %v1163_v17  ;;  %v1402_v19 = vpop.f32.mrb[11].mxu1 }
 0x938   :  { %v1168_v20 = vsel %vm1167_vm3, %v1164_v18, -inf }
 0x939   :  { %1169 = vmax.xlane.f32.xlu0 %v1168_v20 }
 0x9c6   :  { %v1170_v21 = vpop.xlane.xlu0 %1169 }
 0x9c7   :  { %v1171_v22 = vsub.f32 %v1164_v18, %v1170_v21 }
 0x9c9   :  { %v1172_v23 = vmul.f32 1.442695, %v1171_v22 }
 0x9cb   :  { %1489 = vpow2.f32 %v1172_v23 }
 0x9d5   :  { %v1490_v24 = vpop.eup %1489 }
 0x9d6   :  { %v1174_v25 = vsel %vm1167_vm3, %v1490_v24, 0.0 }
 0x9d7   :  { %1175 = vadd.xlane.f32.xlu1 %v1174_v25 }
 0xa64   :  { %v1176_v26 = vpop.xlane.xlu1 %1175 }
 0xa65   :  { %1491 = vlog2.f32 %v1176_v26 }
 0xa6f   :  { %v1492_v27 = vpop.eup %1491 }
 0xa70   :  { %v1178_v28 = vmul.f32 0.6931472, %v1492_v27 }
 0xa72   :  { %v1179_v29 = vsub.f32 %v1171_v22, %v1178_v28 }
 0xa74   :  { %1180 = vst.msk [vmem:[%s2153_s27] sm:$0xff] %vm1167_vm3, %v1179_v29 }
 0xa75   :  { %1189 = vsyncpa [#allocation3], 1 }
 0xa76   :  { %1190 = vsyncpa [#allocation5], 1 }
 0xa77   :  { %1191 = vsyncpa [#allocation8], 1 }
 0xa78   :  { %1192 = vsyncpa [#allocation11], 1 }

// kernel: neural_lpcfg_forward.3
= control target key start
LH: loop header
LB: loop body
LE: loop exit
PB: predicated region body
PF: predicated region fallthrough
CT: control target
= control target key end

     0   :  { %s4928_s24 = smov 0   ;;  %s5973_s0 = inlined_call_operand.vmem [shape: f32[2,8,32], index: 0, kind: input, shape index: {}]   ;;  %s5974_s1 = inlined_call_operand.vmem [shape: f32[32,32], index: 1, kind: input, shape index: {}]   ;;  %s5975_s2 = inlined_call_operand.vmem [shape: f32[32,32], index: 2, kind: input, shape index: {}]   ;;  %s5976_s3 = inlined_call_operand.vmem [shape: f32[1,32], index: 3, kind: input, shape index: {}]   ;;  %s5977_s4 = inlined_call_operand.vmem [shape: f32[32,32], index: 4, kind: input, shape index: {}]   ;;  %s5978_s5 = inlined_call_operand.vmem [shape: f32[1,32], index: 5, kind: input, shape index: {}]   ;;  %s5979_s6 = inlined_call_operand.vmem [shape: f32[32,16], index: 6, kind: input, shape index: {}]   ;;  %s5980_s7 = inlined_call_operand.vmem [shape: f32[1,16], index: 7, kind: input, shape index: {}]   ;;  %s5981_s8 = inlined_call_operand.vmem [shape: f32[32,64], index: 8, kind: input, shape index: {}]   ;;  %s5982_s9 = inlined_call_operand.vmem [shape: f32[32,64], index: 9, kind: input, shape index: {}]   ;;  %s5983_s10 = inlined_call_operand.vmem [shape: f32[4,32], index: 10, kind: input, shape index: {}]   ;;  %s5984_s11 = inlined_call_operand.vmem [shape: f32[4,64], index: 11, kind: input, shape index: {}]   ;;  %s5985_s12 = inlined_call_operand.vmem [shape: f32[4,64], index: 12, kind: input, shape index: {}]   ;;  %s5986_s13 = inlined_call_operand.vmem [shape: f32[8,64], index: 13, kind: input, shape index: {}]   ;;  %s5987_s14 = inlined_call_operand.vmem [shape: f32[64,8], index: 14, kind: input, shape index: {}]   ;;  %s5988_s15 = inlined_call_operand.vmem [shape: f32[64,8], index: 15, kind: input, shape index: {}]   ;;  %s5989_s16 = inlined_call_operand.vmem [shape: s32[1,64], index: 16, kind: input, shape index: {}]   ;;  %s5990_s17 = inlined_call_operand.vmem [shape: f32[2,2,8,256], index: 17, kind: output, shape index: {}]  }
   0x1   :  { %6000 = sst [smem:[#allocation2_spill]] %s5973_s0 }
   0x2   :  { %6001 = sst [smem:[#allocation3_spill]] %s5974_s1 }
   0x3 LB: > { %s3795_s25 = sadd.s32 4294967295, %s4809_s24   ;;  %p3799_p0 = scmp.ge.s32.totalorder %s4809_s24, 1  ;;  %s4809_s24 = sphi %s4928_s24, %s27_s24  }
   0x4   : > { %p486_p1 = scmp.lt.s32.totalorder %s4809_s24, 3 }
   0x6   : > { %p487_p2 = pnand %p3799_p0, %p486_p1 }
   0x7   : > { %s6002_s28 = sld [smem:[#allocation3_spill]] (!%p487_p2)  ;;  %v4811_v3 = vmov (!%p487_p2), 0.0|0.0   ;;  %vm4812_vm0 = vmmov (!%p487_p2), 0   ;;  %v4813_v6 = vmov (!%p487_p2), 0.0   ;;  %p537_p3 = scmp.lt.s32.totalorder (!%p487_p2), %s3795_s25, 1  ;;  %v836_v7 = vld [vmem:[%s5975_s2] sm:$0xff] (!%p487_p2)  ;;  %v776_v21 = vlaneseq (!%p487_p2) }
   0x8   : > { %490 = sbr.rel (%p487_p2) target bundleno = 2041 (0x7f9), region = 88  ;;  %4426 = vmatprep.subr.bf16.mxu0 (!%p487_p2), %v4811_v3  ;;  %4047 = vmatprep.mubr.msk.f32.mxu0 (!%p487_p2), %vm4812_vm0, %v4813_v6  ;;  %v837_v9 = vld [vmem:[%s5975_s2 + $0x8] sm:$0xff] (!%p487_p2)  ;;  %v625_v10 = vld [vmem:[%s5981_s8] sm:$0xff] (!%p487_p2)  ;;  %s6003_s1 = sld [smem:[#allocation2_spill]] (!%p487_p2)  ;;  %vm551_vm1 = vcmask (!%p487_p2), 261120   ;;  %v627_v15 = vld [vmem:[%s5981_s8 + $0x10] sm:$0xff] (!%p487_p2) }
   0x9   : > { %v626_v11 = vld [vmem:[%s5981_s8 + $0x8] sm:$0xff] (!%p487_p2)  ;;  %v4444_v12 = vpack.c.bf16 (!%p487_p2), %v837_v9, %v836_v7  ;;  %v628_v16 = vld [vmem:[%s5981_s8 + $0x18] sm:$0xff] (!%p487_p2)  ;;  %v838_v18 = vld [vmem:[%s5975_s2 + $0x10] sm:$0xff] (!%p487_p2)  ;;  %v777_v22 = vshrl.u32 (!%p487_p2), %v776_v21, 7  ;;  %s5992_s21 = smov (!%p487_p2), 71   ;;  %s4815_s22 = smov (!%p487_p2), 127  }
   0xa   : > { %v4433_v14 = vpack.c.bf16 (!%p487_p2), %v626_v11, %v625_v10  ;;  %v4436_v17 = vpack.c.bf16 (!%p487_p2), %v628_v16, %v627_v15  ;;  %v839_v19 = vld [vmem:[%s5975_s2 + $0x18] sm:$0xff] (!%p487_p2)  ;;  %v773_v25 = vld [vmem:[%s5983_s10] sm:$0xf] (!%p487_p2)  ;;  %s4816_s23 = smov (!%p487_p2), 7   ;;  %s4817_s26 = smov (!%p487_p2), 63   ;;  %v700_v50 = vld [vmem:[%s5982_s9 + $0x8] sm:$0xff] (!%p487_p2) }
   0xb   : > { %4445 = vmatprep.subr.bf16.mxu1 (!%p487_p2), %v4444_v12  ;;  %v4448_v20 = vpack.c.bf16 (!%p487_p2), %v839_v19, %v838_v18  ;;  %v4992_v23 = vsub.s32 (!%p487_p2), 1, %v777_v22  ;;  %v4994_v24 = vsub.s32 (!%p487_p2), 0, %v777_v22  ;;  %v4999_v26 = vsub.s32 (!%p487_p2), 2, %v777_v22  ;;  %v774_v36 = vld [vmem:[%s5984_s11] sm:$0xf] (!%p487_p2)  ;;  %v701_v51 = vld [vmem:[%s5982_s9 + $0x10] sm:$0xff] (!%p487_p2) }
   0xc   : > { %4447 = vmatpush3.bf16.msra.mxu1 (!%p487_p2), %v4444_v12  ;;  %v5003_v29 = vsub.s32 (!%p487_p2), 3, %v777_v22  ;;  %v699_v49 = vld [vmem:[%s5982_s9] sm:$0xff] (!%p487_p2)  ;;  %v702_v53 = vld [vmem:[%s5982_s9 + $0x18] sm:$0xff] (!%p487_p2)  ;;  %v842_v55 = vld [vmem:[%s5977_s4 + $0x8] sm:$0xff] (!%p487_p2)  ;;  %v4818_v62 = vmov (!%p487_p2), 0   ;;  %vm1288_vm3 = vcmask (!%p487_p2), 56320  }
   0xd   : > { %v547_v0 = vld [vmem:[%s6002_s28] sm:$0xff] (!%p487_p2)  ;;  %v548_v1 = vld [vmem:[%s6002_s28 + $0x8] sm:$0xff] (!%p487_p2)  ;;  %v549_v2 = vld [vmem:[%s6002_s28 + $0x10] sm:$0xff] (!%p487_p2)  ;;  %4449 = vmatprep.subr.bf16.mxu1 (!%p487_p2), %v4448_v20  ;;  %v784_v27 = vrot.slane (!%p487_p2), %v773_v25, %v4992_v23  ;;  %v779_v28 = vrot.slane (!%p487_p2), %v773_v25, %v4994_v24  ;;  %v789_v30 = vrot.slane (!%p487_p2), %v773_v25, %v4999_v26  ;;  %v799_v38 = vrot.slane (!%p487_p2), %v774_v36, %v4994_v24  ;;  %s4821_s27 = smov (!%p487_p2), 6   ;;  %s4822_s29 = smov (!%p487_p2), 70  }
   0xe   : > { %v4427_v4 = vpack.c.bf16 (!%p487_p2), %v548_v1, %v547_v0  ;;  %v550_v5 = vld [vmem:[%s6002_s28 + $0x18] sm:$0xff] (!%p487_p2)  ;;  %v794_v35 = vrot.slane (!%p487_p2), %v773_v25, %v5003_v29  ;;  %v804_v43 = vrot.slane (!%p487_p2), %v774_v36, %v4992_v23  ;;  %v809_v45 = vrot.slane (!%p487_p2), %v774_v36, %v4999_v26  ;;  %v841_v54 = vld [vmem:[%s5977_s4] sm:$0xff] (!%p487_p2)  ;;  %v843_v58 = vld [vmem:[%s5977_s4 + $0x10] sm:$0xff] (!%p487_p2)  ;;  %s4826_s18 = smov (!%p487_p2), 68   ;;  %s4830_s19 = smov (!%p487_p2), 112  }
   0xf   : > { %v4430_v8 = vpack.c.bf16 %v550_v5, %v549_v2  ;;  %s6019_s25 = smov (!%p537_p3, %s3795_s25), 1  ;;  %v814_v47 = vrot.slane %v774_v36, %v5003_v29  ;;  %v4439_v52 = vpack.c.bf16 %v700_v50, %v699_v49  ;;  %v4442_v56 = vpack.c.bf16 %v702_v53, %v701_v51  ;;  %v844_v59 = vld [vmem:[%s5977_s4 + $0x18] sm:$0xff]  ;;  %v5088_v61 = vld [vmem:[%s5989_s16] sm:$0x1]  ;;  %s4836_s0 = smov 40  }
  0x10   : > { %4428 = vmatpush3.bf16.msra.mxu0 %v4427_v4  ;;  %s3800_s30 = sshll.u32 %s6019_s25, 3  ;;  %4451 = vmatpush3.bf16.msra.mxu1 %v4448_v20  ;;  %v4452_v57 = vpack.c.bf16 %v842_v55, %v841_v54  ;;  %v4456_v60 = vpack.c.bf16 %v844_v59, %v843_v58  ;;  %vm1293_vm2 = vcmp.lt.s32.totalorder %v5088_v61, 7  ;;  %vm1259_vm4 = vcmask 515072  }
  0x11   : > { %4429 = vmatprep.subr.bf16.mxu0 %v4811_v3  ;;  %s540_s20 = scalar_lea.vmem %s6003_s1, %s3800_s30  ;;  %v1294_v63 = vsel %vm1293_vm2, 1, %v4818_v62  ;;  %s4819_s1 = smov 62   ;;  %vm1370_vm6 = vcmp.lt.s32.totalorder %v5088_v61, 6  ;;  %vm1336_vm7 = vcmask 506880   ;;  %vm1365_vm8 = vcmask 48128  }
  0x12   : > { %v4969_v13 = vld [vmem:[%s540_s20] sm:$0xff]  ;;  %v1298_v0 = vrot.slane %v1294_v63, %v4994_v24  ;;  %s4820_s20 = smov 126   ;;  %v1371_v59 = vsel %vm1370_vm6, 1, %v4818_v62  ;;  %s4825_s30 = smov 4   ;;  %vm1447_vm10 = vcmp.lt.s32.totalorder %v5088_v61, 4  ;;  %vm1413_vm11 = vcmask 490496  }
  0x13   : > { %vm1442_vm12 = vcmask 31744   ;;  %vm1474_vm14 = vcmask 523264   ;;  %vm1172_vm15 = vcmask 130048   ;;  %vm2830_vm2 = vcmask 392192  }
  0x14   : > { %4431 = vmatpush3.bf16.msra.mxu0 %v4430_v8  ;;  %vm5093_vm5 = vcmp.eq.s32.totalorder %v1298_v0, 1 }
  0x15   : > { %4432 = vmatprep.subr.bf16.mxu0 %v4811_v3 }
  0x17   : > { %4048 = vmatmul.mubr.msk.f32.vlgmr.msra.gmra.mrb[0].mxu0 %vm551_vm1, %v4969_v13 }
  0x18   : > { %4434 = vmatpush3.bf16.msra.mxu0 %v4433_v14  ;;  %4058 = vmatprep.mubr.msk.f32.mxu0 %vm4812_vm0, %v4813_v6 }
  0x19   : > { %4435 = vmatprep.subr.bf16.mxu0 %v4811_v3 }
  0x1c   : > { %4437 = vmatpush3.bf16.msra.mxu0 %v4436_v17 }
  0x1d   : > { %4438 = vmatprep.subr.bf16.mxu0 %v4811_v3 }
  0x1f   : > { %4059 = vmatmul.mubr.msk.f32.vlgmr.msra.gmra.mrb[2].mxu0 %vm551_vm1, %v4969_v13 }
  0x20   : > { %4069 = vmatprep.mubr.msk.f32.mxu0 %vm4812_vm0, %v4813_v6  ;;  %4440 = vmatpush3.bf16.msra.mxu0 %v4439_v52  ;;  %vm2793_vm0 = vcmask 457728  }
  0x21   : > { %4441 = vmatprep.subr.bf16.mxu0 %v4811_v3 }
  0x24   : > { %4443 = vmatpush3.bf16.msra.mxu0 %v4442_v56 }
  0x25   : > { %4453 = vmatprep.subr.bf16.mxu0 %v4452_v57 }
  0x27   : > { %4070 = vmatmul.mubr.msk.f32.vlgmr.msra.gmra.mrb[4].mxu0 %vm551_vm1, %v4969_v13 }
  0x28   : > { %4455 = vmatpush3.bf16.msra.mxu0 %v4452_v57 }
  0x29   : > { %4457 = vmatprep.subr.bf16.mxu0 %v4456_v60 }
  0x2c   : > { %4459 = vmatpush3.bf16.msra.mxu0 %v4456_v60  ;;  %v1375_v60 = vrot.slane %v1371_v59, %v4994_v24  ;;  %v1230_v59 = vld [vmem:[%s5987_s14 + $0x38] sm:$0xff] }
  0x2e   : > { %vm5168_vm9 = vcmp.eq.s32.totalorder %v1375_v60, 1 }
  0xea   : > { %v621_v31 = vpop.f32.mrb[0].mxu0 }
  0xeb   : > { %v5006_v32 = vadd.f32 %v784_v27, %v621_v31  ;;  %v4049_v33 = vpop.f32.mrb[1].mxu0  ;;  %v5008_v34 = vadd.f32 %v779_v28, %v621_v31  ;;  %v5014_v37 = vadd.f32 %v789_v30, %v621_v31  ;;  %v5023_v39 = vadd.f32 %v794_v35, %v621_v31 }
  0xed   : > { %4080 = vmatprep.mubr.msk.f32.mxu1 %vm551_vm1, %v5008_v34 }
  0xee   : > { %4081 = vmatmul.mubr.msk.f32.vlgmr.msra.gmra.mrb[0].mxu1 %vm551_vm1, %v5006_v32 }
  0xef   : > { %4083 = vmatprep.mubr.msk.f32.mxu1 %vm551_vm1, %v5014_v37 }
  0xf2   : > { %v695_v40 = vpop.f32.mrb[2].mxu0  ;;  %4084 = vmatmul.mubr.msk.f32.gmra.mrb[2].mxu1 %vm551_vm1, %v5023_v39 }
  0xf3   : > { %v5027_v41 = vadd.f32 %v799_v38, %v695_v40  ;;  %v4060_v42 = vpop.f32.mrb[3].mxu0  ;;  %v5033_v44 = vadd.f32 %v804_v43, %v695_v40  ;;  %v5040_v46 = vadd.f32 %v809_v45, %v695_v40  ;;  %v5048_v48 = vadd.f32 %v814_v47, %v695_v40  ;;  %v3806_v43 = vld [vmem:[%s5976_s3] ss:$0 sm:$0xff] }
  0xf5   : > { %1264 = vrot.lane.b32.xlu1 %v5027_v41, %s5992_s21  ;;  %1235 = vrot.lane.b32.xlu0 %v5027_v41, %s4815_s22 }
  0xf9   : > { %1276 = vrot.lane.b32.xlu1 %v5027_v41, %s4816_s23  ;;  %1247 = vrot.lane.b32.xlu0 %v5027_v41, %s4817_s26 }
  0xfd   : > { %1249 = vrot.lane.b32.xlu1 %v5033_v44, %s4817_s26  ;;  %1237 = vrot.lane.b32.xlu0 %v5033_v44, %s4815_s22 }
 0x101   : > { %1278 = vrot.lane.b32.xlu1 %v5033_v44, %s4816_s23  ;;  %1266 = vrot.lane.b32.xlu0 %v5033_v44, %s5992_s21 }
 0x105   : > { %1251 = vrot.lane.b32.xlu1 %v5040_v46, %s4817_s26  ;;  %1239 = vrot.lane.b32.xlu0 %v5040_v46, %s4815_s22 }
 0x109   : > { %1280 = vrot.lane.b32.xlu1 %v5040_v46, %s4816_s23  ;;  %1268 = vrot.lane.b32.xlu0 %v5040_v46, %s5992_s21  ;;  %s4823_s21 = smov 60  }
 0x10d   : > { %1253 = vrot.lane.b32.xlu1 %v5048_v48, %s4817_s26  ;;  %1241 = vrot.lane.b32.xlu0 %v5048_v48, %s4815_s22  ;;  %s6004_s22 = smov 71   ;;  %s4824_s26 = smov 124  }
 0x111   : > { %1282 = vrot.lane.b32.xlu1 %v5048_v48, %s4816_s23  ;;  %1270 = vrot.lane.b32.xlu0 %v5048_v48, %s6004_s22  ;;  %s4829_s23 = smov 48   ;;  %s4837_s22 = smov 64  }
 0x167   : > { %v1265_v1 = vpop.permute.xlu1 %1264  ;;  %v1236_v2 = vpop.permute.xlu0 %1235 }
 0x16b   : > { %v1277_v4 = vpop.permute.xlu1 %1276  ;;  %v1248_v5 = vpop.permute.xlu0 %1247 }
 0x16c   : > { %v1289_v6 = vsel %vm1288_vm3, %v1265_v1, %v1277_v4  ;;  %v1260_v7 = vsel %vm1259_vm4, %v1236_v2, %v1248_v5 }
 0x16d   : > { %v1300_v8 = vsel %vm5093_vm5, %v1260_v7, %v1289_v6 }
 0x16e   : > { %v5102_v9 = vmax.f32 %v5027_v41, %v1300_v8 }
 0x16f   : > { %v1250_v10 = vpop.permute.xlu1 %1249  ;;  %v1238_v11 = vpop.permute.xlu0 %1237 }
 0x170   : > { %1324 = vrot.lane.b32.xlu1 %v5102_v9, %s4819_s1  ;;  %1312 = vrot.lane.b32.xlu0 %v5102_v9, %s4820_s20  ;;  %v1261_v12 = vsel %vm1259_vm4, %v1238_v11, %v1250_v10 }
 0x173   : > { %v1279_v13 = vpop.permute.xlu1 %1278  ;;  %v1267_v14 = vpop.permute.xlu0 %1266 }
 0x174   : > { %v1290_v15 = vsel %vm1288_vm3, %v1267_v14, %v1279_v13  ;;  %1353 = vrot.lane.b32.xlu1 %v5102_v9, %s4821_s27  ;;  %1341 = vrot.lane.b32.xlu0 %v5102_v9, %s4822_s29 }
 0x175   : > { %v1301_v16 = vsel %vm5093_vm5, %v1261_v12, %v1290_v15 }
 0x176   : > { %v5117_v17 = vmax.f32 %v5033_v44, %v1301_v16 }
 0x177   : > { %v1252_v18 = vpop.permute.xlu1 %1251  ;;  %v1240_v19 = vpop.permute.xlu0 %1239 }
 0x178   : > { %1326 = vrot.lane.b32.xlu1 %v5117_v17, %s4819_s1  ;;  %1314 = vrot.lane.b32.xlu0 %v5117_v17, %s4820_s20  ;;  %v1262_v20 = vsel %vm1259_vm4, %v1240_v19, %v1252_v18  ;;  %v1223_v19 = vld [vmem:[%s5987_s14] sm:$0xff] }
 0x17b   : > { %v1281_v21 = vpop.permute.xlu1 %1280  ;;  %v1269_v22 = vpop.permute.xlu0 %1268 }
 0x17c   : > { %v1291_v25 = vsel %vm1288_vm3, %v1269_v22, %v1281_v21  ;;  %1355 = vrot.lane.b32.xlu1 %v5117_v17, %s4821_s27  ;;  %1343 = vrot.lane.b32.xlu0 %v5117_v17, %s4822_s29  ;;  %v1488_v21 = vand.u32 4294901760, %v1223_v19 }
 0x17d   : > { %v1302_v27 = vsel %vm5093_vm5, %v1262_v20, %v1291_v25  ;;  %v1224_v20 = vld [vmem:[%s5987_s14 + $0x8] sm:$0xff] }
 0x17e   : > { %v5132_v28 = vmax.f32 %v5040_v46, %v1302_v27  ;;  %v1491_v22 = vand.u32 4294901760, %v1224_v20 }
 0x17f   : > { %v1254_v30 = vpop.permute.xlu1 %1253  ;;  %v1242_v31 = vpop.permute.xlu0 %1241 }
 0x180   : > { %1328 = vrot.lane.b32.xlu1 %v5132_v28, %s4819_s1  ;;  %1316 = vrot.lane.b32.xlu0 %v5132_v28, %s4820_s20  ;;  %v1263_v33 = vsel %vm1259_vm4, %v1242_v31, %v1254_v30  ;;  %v5204_v30 = vpack.c.bf16 %v1491_v22, %v1488_v21  ;;  %vm3689_vm4 = vcmask 195584  }
 0x182   : > { %4469 = vmatprep.subr.bf16.mxu0 %v5204_v30 }
 0x183   : > { %v1283_v35 = vpop.permute.xlu1 %1282  ;;  %v1271_v36 = vpop.permute.xlu0 %1270 }
 0x184   : > { %v1292_v38 = vsel %vm1288_vm3, %v1271_v36, %v1283_v35  ;;  %1357 = vrot.lane.b32.xlu1 %v5132_v28, %s4821_s27  ;;  %1345 = vrot.lane.b32.xlu0 %v5132_v28, %s4822_s29  ;;  %v1226_v35 = vld [vmem:[%s5987_s14 + $0x18] sm:$0xff]  ;;  %vm2165_vm3 = vcmask 64512  }
 0x185   : > { %v1303_v40 = vsel %vm5093_vm5, %v1263_v33, %v1292_v38  ;;  %v1225_v33 = vld [vmem:[%s5987_s14 + $0x10] sm:$0xff]  ;;  %vm3698_vm5 = vcmask 326656  }
 0x186   : > { %v5147_v42 = vmax.f32 %v5048_v48, %v1303_v40  ;;  %v1494_v38 = vand.u32 4294901760, %v1225_v33  ;;  %v1497_v40 = vand.u32 4294901760, %v1226_v35 }
 0x188   : > { %1330 = vrot.lane.b32.xlu1 %v5147_v42, %s4819_s1  ;;  %1318 = vrot.lane.b32.xlu0 %v5147_v42, %s4820_s20 }
 0x18c   : > { %1359 = vrot.lane.b32.xlu1 %v5147_v42, %s4821_s27  ;;  %1347 = vrot.lane.b32.xlu0 %v5147_v42, %s4822_s29  ;;  %s4834_s27 = smov 16   ;;  %s4835_s29 = smov 24  }
 0x1c1   : > { %v4082_v45 = vpop.f32.mrb[0].mxu1 }
 0x1c2   : > { %v936_v47 = vadd.f32 %v4082_v45, %v3806_v43  ;;  %v930_v49 = vpop.f32.mrb[1].mxu1 }
 0x1c3   : > { %v931_v50 = vadd.f32 %v3806_v43, %v930_v49  ;;  %v5224_v49 = vpack.c.bf16 %v1497_v40, %v1494_v38 }
 0x1c4   : > { %v950_v53 = vmax.f32 %v936_v47, 0.0 }
 0x1c5   : > { %v949_v51 = vmax.f32 %v931_v50, 0.0  ;;  %v4085_v52 = vpop.f32.mrb[2].mxu1  ;;  %v1227_v50 = vld [vmem:[%s5987_s14 + $0x20] sm:$0xff] }
 0x1c6   : > { %v946_v54 = vadd.f32 %v4085_v52, %v3806_v43  ;;  %v940_v55 = vpop.f32.mrb[3].mxu1 }
 0x1c7   : > { %v941_v56 = vadd.f32 %v3806_v43, %v940_v55  ;;  %4094 = vmatprep.mubr.msk.f32.mxu0 %vm551_vm1, %v949_v51  ;;  %v1500_v51 = vand.u32 4294901760, %v1227_v50 }
 0x1c8   : > { %4095 = vmatmul.mubr.msk.f32.vlgmr.msra.gmra.mrb[6].mxu0 %vm551_vm1, %v950_v53  ;;  %v952_v58 = vmax.f32 %v946_v54, 0.0 }
 0x1c9   : > { %v951_v57 = vmax.f32 %v941_v56, 0.0  ;;  %4471 = vmatpush3.bf16.msra.mxu0 %v5204_v30 }
 0x1ca   : > { %4473 = vmatprep.subr.bf16.mxu0 %v5224_v49 }
 0x1cb   : > { %4097 = vmatprep.mubr.msk.f32.mxu0 %vm551_vm1, %v951_v57 }
 0x1cc   : > { %4098 = vmatmul.mubr.msk.f32.gmra.mrb[8].mxu0 %vm551_vm1, %v952_v58  ;;  %v1229_v58 = vld [vmem:[%s5987_s14 + $0x30] sm:$0xff] }
 0x1cd   : > { %4475 = vmatpush3.bf16.msra.mxu0 %v5224_v49 }
 0x1e2   : > { %v1325_v63 = vpop.permute.xlu1 %1324  ;;  %v1313_v0 = vpop.permute.xlu0 %1312 }
 0x1e3   : > { %v1337_v1 = vsel %vm1336_vm7, %v1313_v0, %v1325_v63  ;;  %v1506_v63 = vand.u32 4294901760, %v1229_v58  ;;  %v1509_v0 = vand.u32 4294901760, %v1230_v59 }
 0x1e6   : > { %v1354_v3 = vpop.permute.xlu1 %1353  ;;  %v1342_v4 = vpop.permute.xlu0 %1341 }
 0x1e7   : > { %v1366_v5 = vsel %vm1365_vm8, %v1342_v4, %v1354_v3  ;;  %v1602_v3 = vsub.f32 %v1223_v19, %v1488_v21  ;;  %v1609_v4 = vsub.f32 %v1224_v20, %v1491_v22  ;;  %v1630_v20 = vsub.f32 %v1227_v50, %v1500_v51 }
 0x1e8   : > { %v1377_v6 = vsel %vm5168_vm9, %v1337_v1, %v1366_v5  ;;  %v5259_v5 = vpack.c.bf16 %v1509_v0, %v1506_v63 }
 0x1e9   : > { %v5176_v7 = vmax.f32 %v5102_v9, %v1377_v6  ;;  %v1603_v2 = vand.u32 4294901760, %v1602_v3  ;;  %v1610_v6 = vand.u32 4294901760, %v1609_v4 }
 0x1ea   : > { %v1327_v8 = vpop.permute.xlu1 %1326  ;;  %v1315_v10 = vpop.permute.xlu0 %1314 }
 0x1eb   : > { %1401 = vrot.lane.b32.xlu1 %v5176_v7, %s4823_s21  ;;  %1389 = vrot.lane.b32.xlu0 %v5176_v7, %s4824_s26  ;;  %v1338_v11 = vsel %vm1336_vm7, %v1315_v10, %v1327_v8  ;;  %v1611_v8 = vsub.f32 %v1609_v4, %v1610_v6  ;;  %v1616_v10 = vsub.f32 %v1225_v33, %v1494_v38 }
 0x1ee   : > { %v1356_v12 = vpop.permute.xlu1 %1355  ;;  %v1344_v13 = vpop.permute.xlu0 %1343 }
 0x1ef   : > { %v1367_v14 = vsel %vm1365_vm8, %v1344_v13, %v1356_v12  ;;  %1430 = vrot.lane.b32.xlu1 %v5176_v7, %s4825_s30  ;;  %1418 = vrot.lane.b32.xlu0 %v5176_v7, %s4826_s18  ;;  %v1612_v13 = vand.u32 4294901760, %v1611_v8  ;;  %v1067_v8 = vld [vmem:[%s5979_s6 + $0x18] sm:$0xff] }
 0x1f0   : > { %v1378_v9 = vsel %vm5168_vm9, %v1338_v11, %v1367_v14  ;;  %v1623_v11 = vsub.f32 %v1226_v35, %v1497_v40  ;;  %v1617_v14 = vand.u32 4294901760, %v1616_v10  ;;  %v1644_v35 = vsub.f32 %v1229_v58, %v1506_v63  ;;  %v1064_v58 = vld [vmem:[%s5979_s6] sm:$0xff] }
 0x1f1   : > { %v5191_v15 = vmax.f32 %v5117_v17, %v1378_v9  ;;  %v5288_v63 = vpack.c.bf16 %v1609_v4, %v1602_v3  ;;  %v5302_v4 = vpack.c.bf16 %v1610_v6, %v1603_v2 }
 0x1f2   : > { %v1329_v16 = vpop.permute.xlu1 %1328  ;;  %v1317_v18 = vpop.permute.xlu0 %1316  ;;  %v1624_v9 = vand.u32 4294901760, %v1623_v11 }
 0x1f3   : > { %1403 = vrot.lane.b32.xlu1 %v5191_v15, %s4823_s21  ;;  %1391 = vrot.lane.b32.xlu0 %v5191_v15, %s4824_s26  ;;  %v1339_v17 = vsel %vm1336_vm7, %v1317_v18, %v1329_v16  ;;  %v1618_v18 = vsub.f32 %v1616_v10, %v1617_v14 }
 0x1f4   : > { %v1625_v19 = vsub.f32 %v1623_v11, %v1624_v9 }
 0x1f5   : > { %v1619_v22 = vand.u32 4294901760, %v1618_v18 }
 0x1f6   : > { %v1358_v25 = vpop.permute.xlu1 %1357  ;;  %v1346_v27 = vpop.permute.xlu0 %1345 }
 0x1f7   : > { %v1368_v31 = vsel %vm1365_vm8, %v1346_v27, %v1358_v25  ;;  %1432 = vrot.lane.b32.xlu1 %v5191_v15, %s4825_s30  ;;  %1420 = vrot.lane.b32.xlu0 %v5191_v15, %s4826_s18  ;;  %v1631_v25 = vand.u32 4294901760, %v1630_v20 }
 0x1f8   : > { %v1379_v36 = vsel %vm5168_vm9, %v1339_v17, %v1368_v31  ;;  %v1626_v17 = vand.u32 4294901760, %v1625_v19  ;;  %v5304_v19 = vpack.c.bf16 %v1624_v9, %v1617_v14 }
 0x1f9   : > { %v5221_v43 = vmax.f32 %v5132_v28, %v1379_v36  ;;  %v1228_v28 = vld [vmem:[%s5987_s14 + $0x28] sm:$0xff]  ;;  %v1632_v33 = vsub.f32 %v1630_v20, %v1631_v25  ;;  %v1651_v36 = vsub.f32 %v1230_v59, %v1509_v0 }
 0x1fa   : > { %v1331_v45 = vpop.permute.xlu1 %1330  ;;  %v1319_v47 = vpop.permute.xlu0 %1318  ;;  %v1503_v52 = vand.u32 4294901760, %v1228_v28  ;;  %v5274_v31 = vpack.c.bf16 %v1626_v17, %v1619_v22  ;;  %v1065_v59 = vld [vmem:[%s5979_s6 + $0x8] sm:$0xff] }
 0x1fb   : > { %1405 = vrot.lane.b32.xlu1 %v5221_v43, %s4823_s21  ;;  %1393 = vrot.lane.b32.xlu0 %v5221_v43, %s4824_s26  ;;  %v1340_v53 = vsel %vm1336_vm7, %v1319_v47, %v1331_v45  ;;  %v1633_v40 = vand.u32 4294901760, %v1632_v33  ;;  %v1645_v45 = vand.u32 4294901760, %v1644_v35  ;;  %v1652_v47 = vand.u32 4294901760, %v1651_v36 }
 0x1fc   : > { %v5239_v56 = vpack.c.bf16 %v1503_v52, %v1500_v51  ;;  %v1637_v21 = vsub.f32 %v1228_v28, %v1503_v52  ;;  %v4460_v0 = vpack.c.bf16 %v1065_v59, %v1064_v58 }
 0x1fd   : > { %v1646_v51 = vsub.f32 %v1644_v35, %v1645_v45  ;;  %v1653_v52 = vsub.f32 %v1651_v36, %v1652_v47  ;;  %v5308_v17 = vpack.c.bf16 %v1652_v47, %v1645_v45 }
 0x1fe   : > { %v1360_v54 = vpop.permute.xlu1 %1359  ;;  %v1348_v55 = vpop.permute.xlu0 %1347  ;;  %4477 = vmatprep.subr.bf16.mxu0 %v5239_v56  ;;  %v1638_v27 = vand.u32 4294901760, %v1637_v21  ;;  %4461 = vmatprep.subr.bf16.mxu1 %v4460_v0  ;;  %v5298_v18 = vpack.c.bf16 %v1637_v21, %v1630_v20 }
 0x1ff   : > { %v1369_v57 = vsel %vm1365_vm8, %v1348_v55, %v1360_v54  ;;  %1434 = vrot.lane.b32.xlu1 %v5221_v43, %s4825_s30  ;;  %1422 = vrot.lane.b32.xlu0 %v5221_v43, %s4826_s18  ;;  %v1647_v55 = vand.u32 4294901760, %v1646_v51 }
 0x200   : > { %v1380_v60 = vsel %vm5168_vm9, %v1340_v53, %v1369_v57  ;;  %4479 = vmatpush3.bf16.msra.mxu0 %v5239_v56  ;;  %v1639_v38 = vsub.f32 %v1637_v21, %v1638_v27  ;;  %v5276_v53 = vpop.f32.mrb[4].mxu0  ;;  %v1654_v57 = vand.u32 4294901760, %v1653_v52  ;;  %4463 = vmatpush3.bf16.msra.mxu1 %v4460_v0  ;;  %v5306_v22 = vpack.c.bf16 %v1638_v27, %v1631_v25 }
 0x201   : > { %v5256_v1 = vmax.f32 %v5147_v42, %v1380_v60  ;;  %4481 = vmatprep.subr.bf16.mxu0 %v5259_v5  ;;  %v1604_v42 = vsub.f32 %v1602_v3, %v1603_v2  ;;  %v4071_v50 = vpop.f32.mrb[5].mxu0  ;;  %v5300_v3 = vpack.c.bf16 %v1651_v36, %v1644_v35 }
 0x202   : > { %v1640_v54 = vand.u32 4294901760, %v1639_v38  ;;  %v5280_v60 = vpack.c.bf16 %v1654_v57, %v1647_v55 }
 0x203   : > { %1407 = vrot.lane.b32.xlu1 %v5256_v1, %s4823_s21  ;;  %1395 = vrot.lane.b32.xlu0 %v5256_v1, %s4824_s26  ;;  %v1605_v12 = vand.u32 4294901760, %v1604_v42  ;;  %v1066_v42 = vld [vmem:[%s5979_s6 + $0x10] sm:$0xff]  ;;  %s4831_s21 = smov 32   ;;  %s4832_s26 = smov 96  }
 0x204   : > { %4483 = vmatpush3.bf16.msra.mxu0 %v5259_v5  ;;  %v5278_v28 = vpack.c.bf16 %v1640_v54, %v1633_v40 }
 0x205   : > { %v5271_v16 = vpack.c.bf16 %v1612_v13, %v1605_v12  ;;  %v5296_v12 = vpack.c.bf16 %v1623_v11, %v1616_v10  ;;  %v4464_v13 = vpack.c.bf16 %v1067_v8, %v1066_v42  ;;  %v1448_v10 = vsel %vm1447_vm10, 1, %v4818_v62 }
 0x206   : > { %v1452_v11 = vrot.slane %v1448_v10, %v4994_v24 }
 0x207   : > { %1436 = vrot.lane.b32.xlu1 %v5256_v1, %s4825_s30  ;;  %1424 = vrot.lane.b32.xlu0 %v5256_v1, %s4826_s18  ;;  %s4827_s30 = smov 120   ;;  %s4828_s18 = smov 56  }
 0x208   : > { %4485 = vmatprep.subr.bf16.mxu0 %v5271_v16  ;;  %4465 = vmatprep.subr.bf16.mxu1 %v4464_v13  ;;  %vm5314_vm13 = vcmp.eq.s32.totalorder %v1452_v11, 1 }
 0x209   : > { %4467 = vmatpush3.bf16.msra.mxu1 %v4464_v13 }
 0x25d   : > { %v1402_v33 = vpop.permute.xlu1 %1401  ;;  %v1390_v20 = vpop.permute.xlu0 %1389 }
 0x25e   : > { %v1414_v21 = vsel %vm1413_vm11, %v1390_v20, %v1402_v33 }
 0x261   : > { %v1431_v6 = vpop.permute.xlu1 %1430  ;;  %v1419_v14 = vpop.permute.xlu0 %1418 }
 0x262   : > { %v1443_v9 = vsel %vm1442_vm12, %v1419_v14, %v1431_v6 }
 0x263   : > { %v1454_v61 = vsel %vm5314_vm13, %v1414_v21, %v1443_v9 }
 0x264   : > { %v1458_v62 = vmax.f32 %v5176_v7, %v1454_v61 }
 0x265   : > { %v1404_v25 = vpop.permute.xlu1 %1403  ;;  %v1392_v27 = vpop.permute.xlu0 %1391 }
 0x266   : > { %v5323_v35 = vsub.f32 %v5027_v41, %v1458_v62  ;;  %v1415_v38 = vsel %vm1413_vm11, %v1392_v27, %v1404_v25 }
 0x268   : > { %v1466_v36 = vmul.f32 1.442695, %v5323_v35 }
 0x269   : > { %v1433_v40 = vpop.permute.xlu1 %1432  ;;  %v1421_v45 = vpop.permute.xlu0 %1420 }
 0x26a   : > { %4755 = vpow2.f32 %v1466_v36  ;;  %v1444_v47 = vsel %vm1442_vm12, %v1421_v45, %v1433_v40 }
 0x26b   : > { %v1455_v54 = vsel %vm5314_vm13, %v1415_v38, %v1444_v47 }
 0x26c   : > { %v1459_v50 = vmax.f32 %v5191_v15, %v1455_v54 }
 0x26d   : > { %v1406_v7 = vpop.permute.xlu1 %1405  ;;  %v1394_v51 = vpop.permute.xlu0 %1393 }
 0x26e   : > { %v5332_v52 = vsub.f32 %v5033_v44, %v1459_v50  ;;  %v1416_v55 = vsel %vm1413_vm11, %v1394_v51, %v1406_v7 }
 0x270   : > { %v1468_v41 = vmul.f32 1.442695, %v5332_v52 }
 0x271   : > { %v1435_v57 = vpop.permute.xlu1 %1434  ;;  %v1423_v58 = vpop.permute.xlu0 %1422 }
 0x272   : > { %4757 = vpow2.f32 %v1468_v41  ;;  %v1445_v59 = vsel %vm1442_vm12, %v1423_v58, %v1435_v57 }
 0x273   : > { %v1456_v0 = vsel %vm5314_vm13, %v1416_v55, %v1445_v59 }
 0x274   : > { %v4756_v42 = vpop.eup %4755  ;;  %v1460_v15 = vmax.f32 %v5221_v43, %v1456_v0 }
 0x275   : > { %v1408_v8 = vpop.permute.xlu1 %1407  ;;  %v1396_v13 = vpop.permute.xlu0 %1395  ;;  %v1476_v44 = vsel %vm1474_vm14, %v4756_v42, 0 }
 0x276   : > { %v5342_v10 = vsub.f32 %v5040_v46, %v1460_v15  ;;  %v5344_v11 = vand.u32 4294901760, %v1476_v44  ;;  %v1417_v20 = vsel %vm1413_vm11, %v1396_v13, %v1408_v8 }
 0x278   : > { %v1470_v33 = vmul.f32 1.442695, %v5342_v10  ;;  %v5349_v21 = vsub.f32 %v1476_v44, %v5344_v11 }
 0x279   : > { %v1437_v6 = vpop.permute.xlu1 %1436  ;;  %v1425_v14 = vpop.permute.xlu0 %1424 }
 0x27a   : > { %4759 = vpow2.f32 %v1470_v33  ;;  %v1446_v43 = vsel %vm1442_vm12, %v1425_v14, %v1437_v6  ;;  %v1562_v9 = vand.u32 4294901760, %v5349_v21 }
 0x27b   : > { %v1457_v46 = vsel %vm5314_vm13, %v1417_v20, %v1446_v43 }
 0x27c   : > { %v4758_v61 = vpop.eup %4757  ;;  %v1461_v62 = vmax.f32 %v5256_v1, %v1457_v46  ;;  %v1563_v25 = vsub.f32 %v5349_v21, %v1562_v9 }
 0x27d   : > { %v1479_v27 = vsel %vm1474_vm14, %v4758_v61, 0 }
 0x27e   : > { %v5361_v36 = vsub.f32 %v5048_v48, %v1461_v62  ;;  %v1564_v38 = vand.u32 4294901760, %v1563_v25  ;;  %v5363_v40 = vand.u32 4294901760, %v1479_v27 }
 0x280   : > { %v1472_v45 = vmul.f32 1.442695, %v5361_v36  ;;  %4130 = vmatprep.mubr.f32.mxu0 %v1564_v38  ;;  %v5367_v2 = vsub.f32 %v1479_v27, %v5363_v40 }
 0x282   : > { %4761 = vpow2.f32 %v1472_v45  ;;  %v1572_v1 = vand.u32 4294901760, %v5367_v2 }
 0x284   : > { %v4760_v47 = vpop.eup %4759  ;;  %v1573_v54 = vsub.f32 %v5367_v2, %v1572_v1 }
 0x285   : > { %v1482_v48 = vsel %vm1474_vm14, %v4760_v47, 0 }
 0x286   : > { %v1574_v50 = vand.u32 4294901760, %v1573_v54  ;;  %v5374_v7 = vand.u32 4294901760, %v1482_v48 }
 0x288   : > { %4131 = vmatmul.mubr.f32.vlgmr.msra.gmra.mrb[10].mxu0 %v1574_v50  ;;  %v5377_v51 = vsub.f32 %v1482_v48, %v5374_v7 }
 0x289   : > { %4487 = vmatpush3.bf16.msra.mxu0 %v5271_v16 }
 0x28a   : > { %4489 = vmatprep.subr.bf16.mxu0 %v5274_v31  ;;  %v1582_v41 = vand.u32 4294901760, %v5377_v51 }
 0x28c   : > { %v4762_v55 = vpop.eup %4761  ;;  %v1583_v57 = vsub.f32 %v5377_v51, %v1582_v41 }
 0x28d   : > { %4491 = vmatpush3.bf16.msra.mxu0 %v5274_v31  ;;  %v1485_v58 = vsel %vm1474_vm14, %v4762_v55, 0  ;;  %v3811_v31 = vld [vmem:[%s5978_s5] ss:$0 sm:$0xff] }
 0x28e   : > { %v1584_v59 = vand.u32 4294901760, %v1583_v57  ;;  %4493 = vmatprep.subr.bf16.mxu0 %v5278_v28  ;;  %v5388_v0 = vand.u32 4294901760, %v1485_v58 }
 0x290   : > { %4133 = vmatprep.mubr.f32.mxu0 %v1584_v59  ;;  %v1591_v16 = vsub.f32 %v1485_v58, %v5388_v0 }
 0x291   : > { %4495 = vmatpush3.bf16.msra.mxu0 %v5278_v28 }
 0x292   : > { %4497 = vmatprep.subr.bf16.mxu0 %v5280_v60  ;;  %v1592_v42 = vand.u32 4294901760, %v1591_v16 }
 0x294   : > { %v1593_v15 = vsub.f32 %v1591_v16, %v1592_v42 }
 0x295   : > { %4499 = vmatpush3.bf16.msra.mxu0 %v5280_v60 }
 0x296   : > { %v1594_v8 = vand.u32 4294901760, %v1593_v15  ;;  %4501 = vmatprep.subr.bf16.mxu0 %v5288_v63 }
 0x298   : > { %4134 = vmatmul.mubr.f32.gmra.mrb[12].mxu0 %v1594_v8 }
 0x299   : > { %4152 = vmatprep.mubr.f32.mxu0 %v5344_v11 }
 0x29b   : > { %v4096_v13 = vpop.f32.mrb[6].mxu0 }
 0x29c   : > { %v1043_v44 = vadd.f32 %v4096_v13, %v3811_v31  ;;  %v1037_v33 = vpop.f32.mrb[7].mxu0  ;;  %4153 = vmatmul.mubr.f32.vlgmr.msra.gmra.mrb[10].mxu0 %v5363_v40 }
 0x29d   : > { %v1038_v28 = vadd.f32 %v3811_v31, %v1037_v33  ;;  %4503 = vmatpush3.bf16.msra.mxu0 %v5288_v63  ;;  %4155 = vmatprep.mubr.f32.mxu0 %v5374_v7 }
 0x29e   : > { %v1057_v60 = vmax.f32 %v1043_v44, 0.0  ;;  %4505 = vmatprep.subr.bf16.mxu0 %v5296_v12 }
 0x29f   : > { %v1056_v20 = vmax.f32 %v1038_v28, 0.0  ;;  %v4099_v6 = vpop.f32.mrb[8].mxu0 }
 0x2a0   : > { %v1053_v14 = vadd.f32 %v4099_v6, %v3811_v31  ;;  %v1047_v43 = vpop.f32.mrb[9].mxu0  ;;  %4156 = vmatmul.mubr.f32.gmra.mrb[12].mxu0 %v5388_v0  ;;  %v1061_v63 = vadd.f32 %v1057_v60, %v5006_v32  ;;  %v3816_v32 = vld [vmem:[%s5980_s7] ss:$0 sm:$0xff] }
 0x2a1   : > { %v1060_v46 = vadd.f32 %v1056_v20, %v5008_v34  ;;  %v1048_v61 = vadd.f32 %v3811_v31, %v1047_v43  ;;  %4507 = vmatpush3.bf16.msra.mxu0 %v5296_v12  ;;  %4174 = vmatprep.mubr.f32.mxu0 %v5349_v21 }
 0x2a2   : > { %v1059_v62 = vmax.f32 %v1053_v14, 0.0  ;;  %4509 = vmatprep.subr.bf16.mxu0 %v5298_v18 }
 0x2a3   : > { %v1058_v25 = vmax.f32 %v1048_v61, 0.0  ;;  %4108 = vmatprep.mubr.msk.f32.mxu1 %vm551_vm1, %v1060_v46 }
 0x2a4   : > { %4109 = vmatmul.mubr.msk.f32.vlgmr.msra.gmra.mrb[4].mxu1 %vm551_vm1, %v1061_v63  ;;  %v1063_v34 = vadd.f32 %v1059_v62, %v5023_v39 }
 0x2a5   : > { %v1062_v27 = vadd.f32 %v1058_v25, %v5014_v37  ;;  %4511 = vmatpush3.bf16.msra.mxu0 %v5298_v18 }
 0x2a6   : > { %4513 = vmatprep.subr.bf16.mxu0 %v5300_v3 }
 0x2a7   : > { %4111 = vmatprep.mubr.msk.f32.mxu1 %vm551_vm1, %v1062_v27 }
 0x2a8   : > { %4112 = vmatmul.mubr.msk.f32.gmra.mrb[6].mxu1 %vm551_vm1, %v1063_v34 }
 0x2a9   : > { %4515 = vmatpush3.bf16.msra.mxu0 %v5300_v3 }
 0x2aa   : > { %4517 = vmatprep.subr.bf16.mxu0 %v5204_v30 }
 0x2ac   : > { %4175 = vmatmul.mubr.f32.vlgmr.msra.gmra.mrb[10].mxu0 %v5367_v2 }
 0x2ad   : > { %4177 = vmatprep.mubr.f32.mxu0 %v5377_v51  ;;  %4519 = vmatpush3.bf16.msra.mxu0 %v5204_v30 }
 0x2ae   : > { %4521 = vmatprep.subr.bf16.mxu0 %v5224_v49 }
 0x2b0   : > { %4178 = vmatmul.mubr.f32.gmra.mrb[12].mxu0 %v1591_v16 }
 0x2b1   : > { %4523 = vmatpush3.bf16.msra.mxu0 %v5224_v49  ;;  %4196 = vmatprep.mubr.f32.mxu0 %v1562_v9 }
 0x2b2   : > { %4525 = vmatprep.subr.bf16.mxu0 %v5239_v56 }
 0x2b5   : > { %4527 = vmatpush3.bf16.msra.mxu0 %v5239_v56 }
 0x2b6   : > { %4529 = vmatprep.subr.bf16.mxu0 %v5259_v5 }
 0x2b9   : > { %4531 = vmatpush3.bf16.msra.mxu0 %v5259_v5 }
 0x2ba   : > { %4533 = vmatprep.subr.bf16.mxu0 %v5302_v4 }
 0x2bc   : > { %4197 = vmatmul.mubr.f32.vlgmr.msra.gmra.mrb[10].mxu0 %v1572_v1 }
 0x2bd   : > { %4199 = vmatprep.mubr.f32.mxu0 %v1582_v41  ;;  %4535 = vmatpush3.bf16.msra.mxu0 %v5302_v4 }
 0x2be   : > { %4537 = vmatprep.subr.bf16.mxu0 %v5304_v19 }
 0x2c0   : > { %4200 = vmatmul.mubr.f32.gmra.mrb[12].mxu0 %v1592_v42 }
 0x2c1   : > { %4539 = vmatpush3.bf16.msra.mxu0 %v5304_v19  ;;  %4218 = vmatprep.mubr.f32.mxu0 %v5344_v11 }
 0x2c2   : > { %4541 = vmatprep.subr.bf16.mxu0 %v5306_v22 }
 0x2c5   : > { %4543 = vmatpush3.bf16.msra.mxu0 %v5306_v22  ;;  %v775_v22 = vld [vmem:[%s5985_s12] sm:$0xf] }
 0x2c6   : > { %4545 = vmatprep.subr.bf16.mxu0 %v5308_v17  ;;  %v824_v9 = vrot.slane %v775_v22, %v4992_v23  ;;  %v834_v23 = vrot.slane %v775_v22, %v5003_v29 }
 0x2c8   : > { %v5479_v38 = vadd.f32 %v824_v9, %v5276_v53  ;;  %v5491_v45 = vadd.f32 %v834_v23, %v5276_v53 }
 0x2c9   : > { %4547 = vmatpush3.bf16.msra.mxu0 %v5308_v17 }
 0x2ca   : > { %4549 = vmatprep.subr.bf16.mxu0 %v5204_v30 }
 0x2cc   : > { %4219 = vmatmul.mubr.f32.vlgmr.msra.gmra.mrb[10].mxu0 %v5363_v40 }
 0x2cd   : > { %4221 = vmatprep.mubr.f32.mxu0 %v5374_v7  ;;  %4551 = vmatpush3.bf16.msra.mxu0 %v5204_v30 }
 0x2ce   : > { %4553 = vmatprep.subr.bf16.mxu0 %v5224_v49 }
 0x2d0   : > { %4222 = vmatmul.mubr.f32.gmra.mrb[12].mxu0 %v5388_v0 }
 0x2d1   : > { %4555 = vmatpush3.bf16.msra.mxu0 %v5224_v49  ;;  %4240 = vmatprep.mubr.f32.mxu0 %v5344_v11  ;;  %v819_v11 = vrot.slane %v775_v22, %v4994_v24 }
 0x2d2   : > { %4557 = vmatprep.subr.bf16.mxu0 %v5239_v56 }
 0x2d3   : > { %v5473_v21 = vadd.f32 %v819_v11, %v5276_v53 }
 0x2d5   : > { %4559 = vmatpush3.bf16.msra.mxu0 %v5239_v56 }
 0x2d6   : > { %4561 = vmatprep.subr.bf16.mxu0 %v5259_v5 }
 0x2d9   : > { %4563 = vmatpush3.bf16.msra.mxu0 %v5259_v5 }
 0x2dc   : > { %4241 = vmatmul.mubr.f32.vlgmr.msra.gmra.mrb[10].mxu0 %v5363_v40  ;;  %v829_v40 = vrot.slane %v775_v22, %v4999_v26  ;;  %v2757_v22 = vld [vmem:[%s5988_s15] sm:$0xff] }
 0x2dd   : > { %4243 = vmatprep.mubr.f32.mxu0 %v5374_v7  ;;  %v2900_v9 = vand.u32 4294901760, %v2757_v22 }
 0x2de   : > { %v5486_v24 = vadd.f32 %v829_v40, %v5276_v53 }
 0x2df   : > { %v5583_v23 = vsub.f32 %v2757_v22, %v2900_v9 }
 0x2e0   : > { %4244 = vmatmul.mubr.f32.gmra.mrb[12].mxu0 %v5388_v0 }
 0x377   : > { %v4110_v37 = vpop.f32.mrb[4].mxu1 }
 0x378   : > { %v5461_v39 = vadd.f32 %v4110_v37, %v3816_v32  ;;  %v1153_v30 = vpop.f32.mrb[5].mxu1 }
 0x379   : > { %v1154_v49 = vadd.f32 %v3816_v32, %v1153_v30 }
 0x37a   : > { %v1176_v56 = vsel %vm1172_vm15, %v5461_v39, -inf }
 0x37b   : > { %1177 = vmax.xlane.f32.xlu1 %v1176_v56  ;;  %v4113_v5 = vpop.f32.mrb[6].mxu1  ;;  %v1173_v12 = vsel %vm1172_vm15, %v1154_v49, -inf }
 0x37c   : > { %v1163_v18 = vpop.f32.mrb[7].mxu1  ;;  %1174 = vmax.xlane.f32.xlu0 %v1173_v12  ;;  %v1169_v4 = vadd.f32 %v4113_v5, %v3816_v32 }
 0x37d   : > { %v1164_v3 = vadd.f32 %v3816_v32, %v1163_v18 }
 0x37e   : > { %v1182_v17 = vsel %vm1172_vm15, %v1169_v4, -inf }
 0x37f   : > { %v1179_v19 = vsel %vm1172_vm15, %v1164_v3, -inf }
 0x380   : > { %1180 = vmax.xlane.f32.xlu0 %v1179_v19 }
 0x384   : > { %1183 = vmax.xlane.f32.xlu0 %v1182_v17  ;;  %v2758_v17 = vld [vmem:[%s5988_s15 + $0x8] sm:$0xff] }
 0x385   : > { %v2903_v40 = vand.u32 4294901760, %v2758_v17 }
 0x38c   : > { %2769 = vrot.lane.b32.xlu1 %v5473_v21, %s4827_s30 }
 0x390   : > { %2771 = vrot.lane.b32.xlu1 %v5479_v38, %s4827_s30 }
 0x394   : > { %2783 = vrot.lane.b32.xlu1 %v5479_v38, %s4828_s18 }
 0x398   : > { %2785 = vrot.lane.b32.xlu1 %v5486_v24, %s4828_s18 }
 0x39a   : > { %2781 = vrot.lane.b32.xlu0 %v5473_v21, %s4828_s18 }
 0x39c   : > { %2787 = vrot.lane.b32.xlu1 %v5491_v45, %s4828_s18 }
 0x39e   : > { %2773 = vrot.lane.b32.xlu0 %v5486_v24, %s4827_s30 }
 0x3a2   : > { %2775 = vrot.lane.b32.xlu0 %v5491_v45, %s4827_s30 }
 0x3af   : > { %v5499_v26 = vpop.f32.mrb[10].mxu0 }
 0x3b0   : > { %v5501_v2 = vpop.f32.mrb[11].mxu0 }
 0x3b3   : > { %v5503_v29 = vpop.f32.mrb[12].mxu0 }
 0x3b4   : > { %v5505_v1 = vpop.f32.mrb[13].mxu0 }
 0x408   : > { %v1178_v53 = vpop.xlane.xlu1 %1177 }
 0x409   : > { %v1175_v47 = vpop.xlane.xlu0 %1174  ;;  %v5537_v60 = vsub.f32 %v5461_v39, %v1178_v53  ;;  %v1222_v39 = vld [vmem:[%s5986_s13] sm:$0xff]  ;;  %v5585_v53 = vsub.f32 %v2758_v17, %v2903_v40 }
 0x40a   : > { %v5527_v8 = vsub.f32 %v1154_v49, %v1175_v47  ;;  %v5555_v30 = vand.u32 4294901760, %v1222_v39  ;;  %v2759_v47 = vld [vmem:[%s5988_s15 + $0x10] sm:$0xff] }
 0x40b   : > { %v1191_v20 = vmul.f32 1.442695, %v5537_v60 }
 0x40c   : > { %v2770_v54 = vpop.permute.xlu1 %2769  ;;  %v1189_v31 = vmul.f32 1.442695, %v5527_v8  ;;  %4246 = vmatprep.subr.mxu1 %v5555_v30  ;;  %v5560_v49 = vsub.f32 %v1222_v39, %v5555_v30 }
 0x40d   : > { %v1181_v48 = vpop.xlane.xlu0 %1180  ;;  %4247 = vmatpush3.msra.mxu1 %v5555_v30 }
 0x40e   : > { %4763 = vpow2.f32 %v1189_v31  ;;  %v5532_v44 = vsub.f32 %v1164_v3, %v1181_v48  ;;  %v5563_v56 = vand.u32 4294901760, %v5560_v49 }
 0x410   : > { %v2772_v50 = vpop.permute.xlu1 %2771  ;;  %v1193_v28 = vmul.f32 1.442695, %v5532_v44  ;;  %v2288_v5 = vsub.f32 %v5560_v49, %v5563_v56 }
 0x411   : > { %v1184_v7 = vpop.xlane.xlu0 %1183 }
 0x412   : > { %v5530_v13 = vsub.f32 %v1169_v4, %v1184_v7  ;;  %v5567_v12 = vand.u32 4294901760, %v2288_v5  ;;  %v5999_v7 = vand.u32 4294901760, %v5585_v53 }
 0x414   : > { %v2784_v51 = vpop.permute.xlu1 %2783  ;;  %v1195_v33 = vmul.f32 1.442695, %v5530_v13  ;;  %4254 = vmatprep.subr.mxu1 %v5567_v12 }
 0x415   : > { %v2782_v41 = vpop.permute.xlu0 %2781  ;;  %v2795_v58 = vsel %vm2793_vm0, %v2772_v50, %v2784_v51  ;;  %v3015_v50 = vand.u32 4294901760, %v5583_v23  ;;  %v2906_v51 = vand.u32 4294901760, %v2759_v47 }
 0x416   : > { %v2794_v55 = vsel %vm2793_vm0, %v2770_v54, %v2782_v41  ;;  %v5514_v42 = vmax.f32 %v5479_v38, %v2795_v58  ;;  %4765 = vpow2.f32 %v1195_v33  ;;  %v2760_v54 = vld [vmem:[%s5988_s15 + $0x18] sm:$0xff]  ;;  %v2761_v33 = vld [vmem:[%s5988_s15 + $0x20] sm:$0xff] }
 0x417   : > { %v2798_v57 = vmax.f32 %v5473_v21, %v2794_v55  ;;  %4767 = vpow2.f32 %v1193_v28  ;;  %v2909_v41 = vand.u32 4294901760, %v2760_v54  ;;  %v3016_v58 = vsub.f32 %v5583_v23, %v3015_v50 }
 0x418   : > { %v2786_v59 = vpop.permute.xlu1 %2785  ;;  %v4764_v6 = vpop.eup %4763  ;;  %4769 = vpow2.f32 %v1191_v20 }
 0x419   : > { %2818 = vrot.lane.b32.xlu0 %v2798_v57, %s4829_s23  ;;  %2806 = vrot.lane.b32.xlu1 %v2798_v57, %s4830_s19  ;;  %v2774_v0 = vpop.permute.xlu0 %2773  ;;  %v1197_v14 = vsel %vm1172_vm15, %v4764_v6, 0.0  ;;  %v5609_v31 = vsub.f32 %v2760_v54, %v2909_v41  ;;  %v3017_v6 = vand.u32 4294901760, %v3016_v58  ;;  %v5636_v39 = vpack.c.bf16 %v2909_v41, %v2906_v51 }
 0x41a   : > { %v2796_v16 = vsel %vm2793_vm0, %v2774_v0, %v2786_v59  ;;  %v3023_v59 = vsub.f32 %v5585_v53, %v5999_v7  ;;  %v5605_v0 = vsub.f32 %v2759_v47, %v2906_v51  ;;  %4771 = vlog2.f32 %v5501_v2 }
 0x41b   : > { %v5517_v15 = vmax.f32 %v5486_v24, %v2796_v16  ;;  %v5607_v16 = vpack.c.bf16 %v2903_v40, %v2900_v9 }
 0x41c   : > { %v2788_v27 = vpop.permute.xlu1 %2787 }
 0x41d   : > { %2808 = vrot.lane.b32.xlu1 %v5514_v42, %s4830_s19  ;;  %2810 = vrot.lane.b32.xlu0 %v5517_v15, %s4830_s19  ;;  %v2776_v34 = vpop.permute.xlu0 %2775 }
 0x41e   : > { %v2797_v32 = vsel %vm2793_vm0, %v2776_v34, %v2788_v27  ;;  %4565 = vmatprep.subr.bf16.mxu0 %v5607_v16 }
 0x41f   : > { %v5546_v37 = vmax.f32 %v5491_v45, %v2797_v32  ;;  %4567 = vmatpush3.bf16.msra.mxu0 %v5607_v16 }
 0x420   : > { %v4766_v43 = vpop.eup %4765  ;;  %4569 = vmatprep.subr.bf16.mxu0 %v5636_v39 }
 0x421   : > { %2820 = vrot.lane.b32.xlu1 %v5514_v42, %s4829_s23  ;;  %v1206_v46 = vsel %vm1172_vm15, %v4766_v43, 0.0  ;;  %v4768_v61 = vpop.eup %4767  ;;  %v5998_v43 = vand.u32 4294901760, %v5605_v0 }
 0x422   : > { %v1203_v63 = vsel %vm1172_vm15, %v4768_v61, 0.0  ;;  %v4770_v62 = vpop.eup %4769 }
 0x423   : > { %v1200_v25 = vsel %vm1172_vm15, %v4770_v62, 0.0  ;;  %v3030_v34 = vsub.f32 %v5605_v0, %v5998_v43  ;;  %4571 = vmatpush3.bf16.msra.mxu0 %v5636_v39 }
 0x425   : > { %2822 = vrot.lane.b32.xlu1 %v5517_v15, %s4829_s23 }
 0x43c   : > { %1198 = vadd.xlane.f32.xlu0 %v1197_v14  ;;  %v3024_v14 = vand.u32 4294901760, %v3023_v59 }
 0x43e   : > { %v5629_v27 = vpack.c.bf16 %v3024_v14, %v3017_v6 }
 0x440   : > { %1207 = vadd.xlane.f32.xlu0 %v1206_v46  ;;  %v2912_v46 = vand.u32 4294901760, %v2761_v33 }
 0x442   : > { %v5634_v32 = vsub.f32 %v2761_v33, %v2912_v46 }
 0x444   : > { %1204 = vadd.xlane.f32.xlu0 %v1203_v63  ;;  %v5997_v63 = vand.u32 4294901760, %v5609_v31  ;;  %v5996_v22 = vand.u32 4294901760, %v5634_v32 }
 0x446   : > { %v3037_v5 = vsub.f32 %v5609_v31, %v5997_v63  ;;  %v3044_v47 = vsub.f32 %v5634_v32, %v5996_v22 }
 0x448   : > { %v3038_v9 = vand.u32 4294901760, %v3037_v5  ;;  %v3045_v58 = vand.u32 4294901760, %v3044_v47 }
 0x449   : > { %1201 = vadd.xlane.f32.xlu1 %v1200_v25 }
 0x45a   : > { %2824 = vrot.lane.b32.xlu1 %v5546_v37, %s4829_s23  ;;  %2812 = vrot.lane.b32.xlu0 %v5546_v37, %s4830_s19 }
 0x48b   : > { %v2807_v18 = vpop.permute.xlu1 %2806  ;;  %v2819_v3 = vpop.permute.xlu0 %2818 }
 0x48c   : > { %v2831_v4 = vsel %vm2830_vm2, %v2807_v18, %v2819_v3  ;;  %v2764_v3 = vld [vmem:[%s5988_s15 + $0x38] sm:$0xff] }
 0x48d   : > { %v5571_v19 = vmax.f32 %v2798_v57, %v2831_v4  ;;  %v3031_v4 = vand.u32 4294901760, %v3030_v34 }
 0x48f   : > { %v2809_v11 = vpop.permute.xlu1 %2808  ;;  %2855 = vrot.lane.b32.xlu1 %v5571_v19, %s4831_s21  ;;  %2843 = vrot.lane.b32.xlu0 %v5571_v19, %s4832_s26  ;;  %v2811_v28 = vpop.permute.xlu0 %2810  ;;  %v5664_v51 = vpack.c.bf16 %v3038_v9, %v3031_v4 }
 0x493   : > { %v2821_v48 = vpop.permute.xlu1 %2820 }
 0x494   : > { %v2832_v55 = vsel %vm2830_vm2, %v2809_v11, %v2821_v48  ;;  %v2921_v11 = vand.u32 4294901760, %v2764_v3 }
 0x495   : > { %v5597_v57 = vmax.f32 %v5514_v42, %v2832_v55  ;;  %v2762_v42 = vld [vmem:[%s5988_s15 + $0x28] sm:$0xff] }
 0x496   : > { %v2915_v62 = vand.u32 4294901760, %v2762_v42  ;;  %v5662_v48 = vsub.f32 %v2764_v3, %v2921_v11  ;;  %v4772_v3 = vpop.eup %4771 }
 0x497   : > { %v2823_v20 = vpop.permute.xlu1 %2822  ;;  %2857 = vrot.lane.b32.xlu1 %v5597_v57, %s4831_s21  ;;  %2845 = vrot.lane.b32.xlu0 %v5597_v57, %s4832_s26  ;;  %v2154_v9 = vmul.f32 0.6931472, %v4772_v3 }
 0x498   : > { %v2833_v61 = vsel %vm2830_vm2, %v2811_v28, %v2823_v20  ;;  %v5641_v18 = vsub.f32 %v2762_v42, %v2915_v62  ;;  %v5666_v41 = vpack.c.bf16 %v2915_v62, %v2912_v46  ;;  %v5993_v33 = vand.u32 4294901760, %v5662_v48 }
 0x499   : > { %v5626_v25 = vmax.f32 %v5517_v15, %v2833_v61  ;;  %v2763_v15 = vld [vmem:[%s5988_s15 + $0x30] sm:$0xff] }
 0x49a   : > { %v2918_v17 = vand.u32 4294901760, %v2763_v15  ;;  %v5995_v40 = vand.u32 4294901760, %v5641_v18  ;;  %4573 = vmatprep.subr.bf16.mxu0 %v5666_v41  ;;  %v3065_v6 = vsub.f32 %v5662_v48, %v5993_v33 }
 0x49b   : > { %2859 = vrot.lane.b32.xlu1 %v5626_v25, %s4831_s21  ;;  %2847 = vrot.lane.b32.xlu0 %v5626_v25, %s4832_s26 }
 0x49c   : > { %v5660_v54 = vsub.f32 %v2763_v15, %v2918_v17  ;;  %v3051_v55 = vsub.f32 %v5641_v18, %v5995_v40  ;;  %4575 = vmatpush3.bf16.msra.mxu0 %v5666_v41  ;;  %v5675_v28 = vpack.c.bf16 %v2921_v11, %v2918_v17  ;;  %v3066_v61 = vand.u32 4294901760, %v3065_v6 }
 0x49e   : > { %v5994_v59 = vand.u32 4294901760, %v5660_v54  ;;  %v3052_v42 = vand.u32 4294901760, %v3051_v55  ;;  %4577 = vmatprep.subr.bf16.mxu0 %v5675_v28  ;;  %v5706_v55 = vpack.c.bf16 %v5641_v18, %v5634_v32 }
 0x4a0   : > { %v3058_v20 = vsub.f32 %v5660_v54, %v5994_v59  ;;  %v5683_v14 = vpack.c.bf16 %v3052_v42, %v3045_v58  ;;  %4579 = vmatpush3.bf16.msra.mxu0 %v5675_v28 }
 0x4a2   : > { %v3059_v46 = vand.u32 4294901760, %v3058_v20 }
 0x4a4   : > { %v5687_v62 = vpack.c.bf16 %v3066_v61, %v3059_v46 }
 0x4c9   : > { %v1199_v34 = vpop.xlane.xlu0 %1198 }
 0x4ca   : > { %4773 = vlog2.f32 %v1199_v34 }
 0x4cd   : > { %v1208_v5 = vpop.xlane.xlu0 %1207 }
 0x4ce   : > { %4775 = vlog2.f32 %v1208_v5 }
 0x4cf   : > { %4777 = vlog2.f32 %v5503_v29  ;;  %v5698_v29 = vpack.c.bf16 %v5585_v53, %v5583_v23 }
 0x4d0   : > { %4779 = vlog2.f32 %v5505_v1  ;;  %v5702_v1 = vpack.c.bf16 %v5609_v31, %v5605_v0 }
 0x4d1   : > { %v1205_v15 = vpop.xlane.xlu0 %1204 }
 0x4d2   : > { %4781 = vlog2.f32 %v1205_v15 }
 0x4d3   : > { %4783 = vlog2.f32 %v5499_v26  ;;  %v5710_v26 = vpack.c.bf16 %v5662_v48, %v5660_v54 }
 0x4d4   : > { %v4774_v4 = vpop.eup %4773 }
 0x4d5   : > { %v1210_v17 = vmul.f32 0.6931472, %v4774_v4  ;;  %v2813_v20 = vpop.permute.xlu0 %2812 }
 0x4d6   : > { %v1202_v11 = vpop.xlane.xlu1 %1201 }
 0x4d7   : > { %v5694_v2 = vsub.f32 %v5527_v8, %v1210_v17  ;;  %4785 = vlog2.f32 %v1202_v11 }
 0x4d8   : > { %v4776_v47 = vpop.eup %4775 }
 0x4d9   : > { %v4778_v8 = vpop.eup %4777  ;;  %v2161_v58 = vsub.f32 %v5694_v2, %v2154_v9  ;;  %v1216_v42 = vmul.f32 0.6931472, %v4776_v47 }
 0x4da   : > { %v2825_v6 = vpop.permute.xlu1 %2824  ;;  %v4780_v46 = vpop.eup %4779  ;;  %v2160_v3 = vmul.f32 0.6931472, %v4778_v8 }
 0x4db   : > { %v2167_v61 = vsel %vm2165_vm3, %v2161_v58, 0  ;;  %v5715_v34 = vsub.f32 %v5530_v13, %v1216_v42  ;;  %v2834_v5 = vsel %vm2830_vm2, %v2813_v20, %v2825_v6  ;;  %v2158_v47 = vmul.f32 0.6931472, %v4780_v46 }
 0x4dc   : > { %v4782_v15 = vpop.eup %4781  ;;  %v5718_v4 = vand.u32 4294901760, %v2167_v61  ;;  %v5721_v17 = vmax.f32 %v5546_v37, %v2834_v5 }
 0x4dd   : > { %v1214_v11 = vmul.f32 0.6931472, %v4782_v15  ;;  %v2164_v9 = vsub.f32 %v5715_v34, %v2160_v3  ;;  %v4784_v8 = vpop.eup %4783 }
 0x4de   : > { %2861 = vrot.lane.b32.xlu1 %v5721_v17, %s4831_s21  ;;  %2849 = vrot.lane.b32.xlu0 %v5721_v17, %s4832_s26  ;;  %v2245_v13 = vsub.f32 %v2167_v61, %v5718_v4  ;;  %v2156_v33 = vmul.f32 0.6931472, %v4784_v8  ;;  %s4833_s26 = smov 8  }
 0x4df   : > { %v5730_v58 = vsub.f32 %v5532_v44, %v1214_v11  ;;  %v2176_v6 = vsel %vm2165_vm3, %v2164_v9, 0 }
 0x4e0   : > { %v2246_v42 = vand.u32 4294901760, %v2245_v13  ;;  %v5740_v44 = vand.u32 4294901760, %v2176_v6 }
 0x4e1   : > { %v4786_v20 = vpop.eup %4785  ;;  %v2163_v37 = vsub.f32 %v5730_v58, %v2158_v47 }
 0x4e2   : > { %v1212_v5 = vmul.f32 0.6931472, %v4786_v20  ;;  %v2247_v15 = vsub.f32 %v2245_v13, %v2246_v42 }
 0x4e3   : > { %v2173_v3 = vsel %vm2165_vm3, %v2163_v37, 0  ;;  %v2275_v37 = vsub.f32 %v2176_v6, %v5740_v44 }
 0x4e4   : > { %v5735_v59 = vand.u32 4294901760, %v2173_v3  ;;  %v5738_v61 = vsub.f32 %v5537_v60, %v1212_v5  ;;  %v2248_v46 = vand.u32 4294901760, %v2247_v15 }
 0x4e5   : > { %v2276_v60 = vand.u32 4294901760, %v2275_v37 }
 0x4e6   : > { %v2162_v11 = vsub.f32 %v5738_v61, %v2156_v33  ;;  %4248 = vmatprep.mubr.f32.mxu1 %v2248_v46  ;;  %v2265_v47 = vsub.f32 %v2173_v3, %v5735_v59 }
 0x4e7   : > { %v2277_v43 = vsub.f32 %v2275_v37, %v2276_v60 }
 0x4e8   : > { %v2170_v9 = vsel %vm2165_vm3, %v2162_v11, 0  ;;  %v2266_v8 = vand.u32 4294901760, %v2265_v47 }
 0x4e9   : > { %v5745_v20 = vand.u32 4294901760, %v2170_v9  ;;  %v2278_v33 = vand.u32 4294901760, %v2277_v43 }
 0x4ea   : > { %v2267_v5 = vsub.f32 %v2265_v47, %v2266_v8 }
 0x4eb   : > { %v2255_v40 = vsub.f32 %v2170_v9, %v5745_v20 }
 0x4ec   : > { %v2268_v7 = vand.u32 4294901760, %v2267_v5 }
 0x4ed   : > { %v2256_v22 = vand.u32 4294901760, %v2255_v40 }
 0x4ef   : > { %v2257_v15 = vsub.f32 %v2255_v40, %v2256_v22 }
 0x4f1   : > { %v2258_v63 = vand.u32 4294901760, %v2257_v15 }
 0x4f3   : > { %4249 = vmatmul.mubr.f32.vlgmr.msra.gmra.mrb[8].mxu1 %v2258_v63 }
 0x4f4   : > { %4251 = vmatprep.mubr.f32.mxu1 %v2268_v7  ;;  %4255 = vmatpush3.msra.mxu1 %v5567_v12 }
 0x4f5   : > { %4262 = vmatprep.subr.mxu1 %v5560_v49 }
 0x4f7   : > { %4252 = vmatmul.mubr.f32.gmra.mrb[10].mxu1 %v2278_v33 }
 0x4f8   : > { %4256 = vmatprep.mubr.f32.mxu1 %v5718_v4 }
 0x4fb   : > { %4257 = vmatmul.mubr.f32.vlgmr.msra.gmra.mrb[8].mxu1 %v5745_v20 }
 0x4fc   : > { %4259 = vmatprep.mubr.f32.mxu1 %v5735_v59  ;;  %4263 = vmatpush3.msra.mxu1 %v5560_v49 }
 0x4fd   : > { %4270 = vmatprep.subr.mxu1 %v5555_v30 }
 0x4ff   : > { %4260 = vmatmul.mubr.f32.gmra.mrb[10].mxu1 %v5740_v44 }
 0x500   : > { %4264 = vmatprep.mubr.f32.mxu1 %v2245_v13 }
 0x501   : > { %v2856_v7 = vpop.permute.xlu1 %2855  ;;  %v2844_v63 = vpop.permute.xlu0 %2843 }
 0x502   : > { %v2867_v12 = vsel %vm551_vm1, %v2844_v63, %v2856_v7 }
 0x503   : > { %v2871_v43 = vmax.f32 %v5571_v19, %v2867_v12  ;;  %4265 = vmatmul.mubr.f32.vlgmr.msra.gmra.mrb[8].mxu1 %v2255_v40 }
 0x504   : > { %4267 = vmatprep.mubr.f32.mxu1 %v2265_v47  ;;  %4271 = vmatpush3.msra.mxu1 %v5555_v30 }
 0x505   : > { %v5761_v6 = vsub.f32 %v5473_v21, %v2871_v43  ;;  %4278 = vmatprep.subr.mxu1 %v5563_v56 }
 0x507   : > { %v2879_v49 = vmul.f32 1.442695, %v5761_v6  ;;  %4268 = vmatmul.mubr.f32.gmra.mrb[10].mxu1 %v2275_v37 }
 0x508   : > { %4272 = vmatprep.mubr.f32.mxu1 %v2246_v42 }
 0x509   : > { %4787 = vpow2.f32 %v2879_v49  ;;  %v2858_v13 = vpop.permute.xlu1 %2857  ;;  %v2846_v3 = vpop.permute.xlu0 %2845 }
 0x50a   : > { %v2868_v46 = vsel %vm551_vm1, %v2846_v3, %v2858_v13 }
 0x50b   : > { %v2872_v19 = vmax.f32 %v5597_v57, %v2868_v46  ;;  %4273 = vmatmul.mubr.f32.vlgmr.msra.gmra.mrb[8].mxu1 %v2256_v22 }
 0x50c   : > { %4275 = vmatprep.mubr.f32.mxu1 %v2266_v8  ;;  %4279 = vmatpush3.msra.mxu1 %v5563_v56 }
 0x50d   : > { %v5769_v21 = vsub.f32 %v5479_v38, %v2872_v19  ;;  %v2860_v40 = vpop.permute.xlu1 %2859  ;;  %v2848_v11 = vpop.permute.xlu0 %2847  ;;  %4286 = vmatprep.subr.mxu1 %v5555_v30 }
 0x50e   : > { %v2869_v42 = vsel %vm551_vm1, %v2848_v11, %v2860_v40 }
 0x50f   : > { %v2881_v47 = vmul.f32 1.442695, %v5769_v21  ;;  %v2873_v9 = vmax.f32 %v5626_v25, %v2869_v42  ;;  %4276 = vmatmul.mubr.f32.gmra.mrb[10].mxu1 %v2276_v60  ;;  %v6012_v42 = vand.u32 4294901760, %v5605_v0 }
 0x510   : > { %4280 = vmatprep.mubr.f32.mxu1 %v5718_v4 }
 0x511   : > { %4789 = vpow2.f32 %v2881_v47  ;;  %v5777_v57 = vsub.f32 %v5486_v24, %v2873_v9  ;;  %v6013_v47 = vand.u32 4294901760, %v5609_v31 }
 0x513   : > { %v4788_v56 = vpop.eup %4787  ;;  %v2883_v38 = vmul.f32 1.442695, %v5777_v57  ;;  %4281 = vmatmul.mubr.f32.vlgmr.msra.gmra.mrb[8].mxu1 %v5745_v20  ;;  %v4632_v9 = vpack.c.bf16 %v6013_v47, %v6012_v42 }
 0x514   : > { %4283 = vmatprep.mubr.f32.mxu1 %v5735_v59  ;;  %4287 = vmatpush3.msra.mxu1 %v5555_v30  ;;  %v2888_v22 = vsel %vm1474_vm14, %v4788_v56, 0  ;;  %v6014_v56 = vand.u32 4294901760, %v5634_v32 }
 0x515   : > { %4791 = vpow2.f32 %v2883_v38  ;;  %4581 = vmatprep.subr.bf16.mxu1 %v5629_v27  ;;  %v5785_v25 = vand.u32 4294901760, %v2888_v22  ;;  %v6015_v38 = vand.u32 4294901760, %v5641_v18 }
 0x517   : > { %4284 = vmatmul.mubr.f32.gmra.mrb[10].mxu1 %v5740_v44  ;;  %v5789_v24 = vsub.f32 %v2888_v22, %v5785_v25  ;;  %v4636_v23 = vpack.c.bf16 %v6015_v38, %v6014_v56 }
 0x518   : > { %4288 = vmatprep.mubr.f32.mxu1 %v5718_v4 }
 0x519   : > { %v2974_v37 = vand.u32 4294901760, %v5789_v24 }
 0x51b   : > { %v4790_v8 = vpop.eup %4789  ;;  %4289 = vmatmul.mubr.f32.vlgmr.msra.gmra.mrb[8].mxu1 %v5745_v20  ;;  %v2975_v30 = vsub.f32 %v5789_v24, %v2974_v37 }
 0x51c   : > { %4583 = vmatpush3.bf16.msra.mxu1 %v5629_v27  ;;  %4291 = vmatprep.mubr.f32.mxu1 %v5735_v59  ;;  %v2891_v60 = vsel %vm1474_vm14, %v4790_v8, 0 }
 0x51d   : > { %4585 = vmatprep.subr.bf16.mxu1 %v5664_v51  ;;  %v2976_v5 = vand.u32 4294901760, %v2975_v30  ;;  %v5801_v15 = vand.u32 4294901760, %v2891_v60 }
 0x51f   : > { %v4792_v4 = vpop.eup %4791  ;;  %4292 = vmatmul.mubr.f32.gmra.mrb[10].mxu1 %v5740_v44  ;;  %4310 = vmatprep.mubr.f32.mxu0 %v2976_v5  ;;  %v2983_v20 = vsub.f32 %v2891_v60, %v5801_v15 }
 0x520   : > { %4587 = vmatpush3.bf16.msra.mxu1 %v5664_v51  ;;  %4332 = vmatprep.mubr.f32.mxu1 %v5785_v25  ;;  %v2894_v27 = vsel %vm1474_vm14, %v4792_v4, 0 }
 0x521   : > { %4589 = vmatprep.subr.bf16.mxu1 %v5683_v14  ;;  %v2984_v59 = vand.u32 4294901760, %v2983_v20  ;;  %v5809_v33 = vand.u32 4294901760, %v2894_v27 }
 0x523   : > { %v2985_v7 = vsub.f32 %v2983_v20, %v2984_v59  ;;  %v2993_v63 = vsub.f32 %v2894_v27, %v5809_v33 }
 0x524   : > { %4591 = vmatpush3.bf16.msra.mxu1 %v5683_v14 }
 0x525   : > { %4593 = vmatprep.subr.bf16.mxu1 %v5687_v62  ;;  %v2986_v44 = vand.u32 4294901760, %v2985_v7  ;;  %v2994_v12 = vand.u32 4294901760, %v2993_v63 }
 0x527   : > { %4311 = vmatmul.mubr.f32.vlgmr.msra.gmra.mrb[14].mxu0 %v2986_v44  ;;  %v2995_v51 = vsub.f32 %v2993_v63, %v2994_v12 }
 0x528   : > { %4595 = vmatpush3.bf16.msra.mxu1 %v5687_v62 }
 0x529   : > { %v2996_v43 = vand.u32 4294901760, %v2995_v51  ;;  %4597 = vmatprep.subr.bf16.mxu1 %v5698_v29 }
 0x52b   : > { %4333 = vmatmul.mubr.f32.vlgmr.msra.gmra.mrb[12].mxu1 %v5801_v15  ;;  %4313 = vmatprep.mubr.f32.mxu0 %v2996_v43 }
 0x52c   : > { %4335 = vmatprep.mubr.f32.mxu1 %v5809_v33  ;;  %4599 = vmatpush3.bf16.msra.mxu1 %v5698_v29 }
 0x52d   : > { %4601 = vmatprep.subr.bf16.mxu1 %v5702_v1 }
 0x530   : > { %4603 = vmatpush3.bf16.msra.mxu1 %v5702_v1 }
 0x531   : > { %4605 = vmatprep.subr.bf16.mxu1 %v5706_v55 }
 0x534   : > { %4607 = vmatpush3.bf16.msra.mxu1 %v5706_v55 }
 0x535   : > { %4609 = vmatprep.subr.bf16.mxu1 %v5710_v26 }
 0x538   : > { %4611 = vmatpush3.bf16.msra.mxu1 %v5710_v26 }
 0x539   : > { %4613 = vmatprep.subr.bf16.mxu1 %v5607_v16 }
 0x550   : > { %v2862_v14 = vpop.permute.xlu1 %2861  ;;  %v2850_v62 = vpop.permute.xlu0 %2849 }
 0x551   : > { %v2870_v49 = vsel %vm551_vm1, %v2850_v62, %v2862_v14 }
 0x552   : > { %v2874_v29 = vmax.f32 %v5721_v17, %v2870_v49  ;;  %v6011_v17 = vand.u32 4294901760, %v5585_v53  ;;  %v6016_v53 = vand.u32 4294901760, %v5660_v54 }
 0x554   : > { %v5829_v13 = vsub.f32 %v5491_v45, %v2874_v29  ;;  %v4628_v11 = vpack.c.bf16 %v6011_v17, %v3015_v50  ;;  %v6017_v50 = vand.u32 4294901760, %v5662_v48 }
 0x556   : > { %v2885_v1 = vmul.f32 1.442695, %v5829_v13  ;;  %v4640_v0 = vpack.c.bf16 %v6017_v50, %v6016_v53 }
 0x558   : > { %4793 = vpow2.f32 %v2885_v1 }
 0x562   : > { %v4794_v3 = vpop.eup %4793 }
 0x563   : > { %v2897_v55 = vsel %vm1474_vm14, %v4794_v3, 0 }
 0x564   : > { %v3002_v46 = vand.u32 4294901760, %v2897_v55 }
 0x566   : > { %4336 = vmatmul.mubr.f32.gmra.mrb[14].mxu1 %v3002_v46  ;;  %v3003_v26 = vsub.f32 %v2897_v55, %v3002_v46 }
 0x567   : > { %4354 = vmatprep.mubr.f32.mxu1 %v5789_v24 }
 0x568   : > { %v3004_v19 = vand.u32 4294901760, %v3003_v26 }
 0x56a   : > { %4355 = vmatmul.mubr.f32.vlgmr.msra.gmra.mrb[12].mxu1 %v2983_v20  ;;  %v3005_v40 = vsub.f32 %v3003_v26, %v3004_v19 }
 0x56b   : > { %4615 = vmatpush3.bf16.msra.mxu1 %v5607_v16  ;;  %4357 = vmatprep.mubr.f32.mxu1 %v2993_v63 }
 0x56c   : > { %4617 = vmatprep.subr.bf16.mxu1 %v5636_v39  ;;  %v3006_v45 = vand.u32 4294901760, %v3005_v40 }
 0x56e   : > { %4314 = vmatmul.mubr.f32.gmra.mrb[16].mxu0 %v3006_v45  ;;  %4358 = vmatmul.mubr.f32.gmra.mrb[14].mxu1 %v3003_v26 }
 0x56f   : > { %4619 = vmatpush3.bf16.msra.mxu1 %v5636_v39  ;;  %4376 = vmatprep.mubr.f32.mxu1 %v2974_v37 }
 0x570   : > { %4621 = vmatprep.subr.bf16.mxu1 %v5666_v41 }
 0x573   : > { %4623 = vmatpush3.bf16.msra.mxu1 %v5666_v41 }
 0x574   : > { %4625 = vmatprep.subr.bf16.mxu1 %v5675_v28 }
 0x577   : > { %4627 = vmatpush3.bf16.msra.mxu1 %v5675_v28 }
 0x578   : > { %4629 = vmatprep.subr.bf16.mxu1 %v4628_v11 }
 0x57a   : > { %4377 = vmatmul.mubr.f32.vlgmr.msra.gmra.mrb[12].mxu1 %v2984_v59 }
 0x57b   : > { %4379 = vmatprep.mubr.f32.mxu1 %v2994_v12  ;;  %4631 = vmatpush3.bf16.msra.mxu1 %v4628_v11 }
 0x57c   : > { %4633 = vmatprep.subr.bf16.mxu1 %v4632_v9 }
 0x57e   : > { %4380 = vmatmul.mubr.f32.gmra.mrb[14].mxu1 %v3004_v19 }
 0x57f   : > { %4635 = vmatpush3.bf16.msra.mxu1 %v4632_v9  ;;  %4398 = vmatprep.mubr.f32.mxu1 %v5785_v25 }
 0x580   : > { %4637 = vmatprep.subr.bf16.mxu1 %v4636_v23 }
 0x583   : > { %4639 = vmatpush3.bf16.msra.mxu1 %v4636_v23 }
 0x584   : > { %4641 = vmatprep.subr.bf16.mxu1 %v4640_v0 }
 0x587   : > { %4643 = vmatpush3.bf16.msra.mxu1 %v4640_v0 }
 0x588   : > { %4645 = vmatprep.subr.bf16.mxu1 %v5607_v16 }
 0x58a   : > { %4399 = vmatmul.mubr.f32.vlgmr.msra.gmra.mrb[12].mxu1 %v5801_v15 }
 0x58b   : > { %4401 = vmatprep.mubr.f32.mxu1 %v5809_v33  ;;  %4647 = vmatpush3.bf16.msra.mxu1 %v5607_v16 }
 0x58c   : > { %4649 = vmatprep.subr.bf16.mxu1 %v5636_v39 }
 0x58e   : > { %4402 = vmatmul.mubr.f32.gmra.mrb[14].mxu1 %v3002_v46 }
 0x58f   : > { %4651 = vmatpush3.bf16.msra.mxu1 %v5636_v39  ;;  %4420 = vmatprep.mubr.f32.mxu1 %v5785_v25 }
 0x590   : > { %4653 = vmatprep.subr.bf16.mxu1 %v5666_v41 }
 0x593   : > { %4655 = vmatpush3.bf16.msra.mxu1 %v5666_v41 }
 0x594   : > { %4657 = vmatprep.subr.bf16.mxu1 %v5675_v28 }
 0x597   : > { %4659 = vmatpush3.bf16.msra.mxu1 %v5675_v28 }
 0x59a   : > { %4421 = vmatmul.mubr.f32.vlgmr.msra.gmra.mrb[12].mxu1 %v5801_v15 }
 0x59b   : > { %4423 = vmatprep.mubr.f32.mxu1 %v5809_v33 }
 0x59e   : > { %4424 = vmatmul.mubr.f32.gmra.mrb[14].mxu1 %v3002_v46 }
 0x5ee   : > { %v5873_v16 = vpop.f32.mrb[8].mxu1 }
 0x5ef   : > { %v5875_v31 = vpop.f32.mrb[9].mxu1 }
 0x5f2   : > { %v4293_v32 = vpop.f32.mrb[10].mxu1 }
 0x5f3   : > { %v5877_v39 = vpop.f32.mrb[11].mxu1  ;;  %v2756_v43 = vadd.f32 %v4293_v32, %v5361_v36  ;;  %v2754_v36 = vadd.f32 %v5873_v16, %v5332_v52 }
 0x5fa   : > { %v4312_v18 = vpop.f32.mrb[14].mxu0 }
 0x5fb   : > { %v2978_v54 = vpop.f32.mrb[15].mxu0 }
 0x641   : > { %v4315_v48 = vpop.f32.mrb[16].mxu0 }
 0x642   : > { %v2998_v41 = vpop.f32.mrb[17].mxu0 }
 0x66d   : > { %v4422_v22 = vpop.f32.mrb[12].mxu1 }
 0x66e   : > { %v4660_v25 = vadd.f32 %v4422_v22, %v4312_v18  ;;  %v3543_v24 = vpop.f32.mrb[13].mxu1 }
 0x66f   : > { %v4661_v28 = vadd.f32 %v3543_v24, %v2978_v54 }
 0x670   : > { %4795 = vlog2.f32 %v4660_v25  ;;  %v2755_v25 = vadd.f32 %v5877_v39, %v5342_v10 }
 0x671   : > { %v4425_v37 = vpop.f32.mrb[14].mxu1  ;;  %4797 = vlog2.f32 %v4661_v28 }
 0x672   : > { %v4662_v8 = vadd.f32 %v4425_v37, %v4315_v48  ;;  %v3555_v30 = vpop.f32.mrb[15].mxu1 }
 0x673   : > { %v4663_v60 = vadd.f32 %v3555_v30, %v2998_v41 }
 0x674   : > { %4799 = vlog2.f32 %v4662_v8 }
 0x675   : > { %4801 = vlog2.f32 %v4663_v60 }
 0x67a   : > { %v4796_v5 = vpop.eup %4795 }
 0x67b   : > { %v3568_v15 = vmul.f32 0.6931472, %v4796_v5  ;;  %v4798_v4 = vpop.eup %4797 }
 0x67c   : > { %v3566_v27 = vmul.f32 0.6931472, %v4798_v4 }
 0x67d   : > { %3579 = vrot.lane.b32.xlu0 %v3568_v15, %s4833_s26 }
 0x67e   : > { %v4800_v20 = vpop.eup %4799 }
 0x67f   : > { %v3572_v59 = vmul.f32 0.6931472, %v4800_v20  ;;  %v4802_v33 = vpop.eup %4801 }
 0x680   : > { %v3570_v7 = vmul.f32 0.6931472, %v4802_v33 }
 0x681   : > { %3577 = vrot.lane.b32.xlu0 %v3566_v27, %s4833_s26  ;;  %3583 = vrot.lane.b32.xlu1 %v3572_v59, %s4833_s26 }
 0x685   : > { %3581 = vrot.lane.b32.xlu1 %v3570_v7, %s4833_s26 }
 0x6ef   : > { %v3580_v63 = vpop.permute.xlu0 %3579 }
 0x6f0   : > { %v3590_v44 = vsub.f32 %v5738_v61, %v3580_v63 }
 0x6f2   : > { %3599 = vrot.lane.b32.xlu0 %v3590_v44, %s4827_s30 }
 0x6f3   : > { %v3584_v12 = vpop.permute.xlu1 %3583  ;;  %v3578_v61 = vpop.permute.xlu0 %3577 }
 0x6f4   : > { %v3592_v51 = vsub.f32 %v5715_v34, %v3584_v12  ;;  %v3589_v34 = vsub.f32 %v5694_v2, %v3578_v61 }
 0x6f6   : > { %3611 = vrot.lane.b32.xlu0 %v3590_v44, %s4833_s26  ;;  %3603 = vrot.lane.b32.xlu1 %v3592_v51, %s4827_s30 }
 0x6f7   : > { %v3582_v14 = vpop.permute.xlu1 %3581 }
 0x6f8   : > { %v5899_v62 = vsub.f32 %v5730_v58, %v3582_v14  ;;  %v2753_v14 = vadd.f32 %v5875_v31, %v5323_v35 }
 0x6fa   : > { %3623 = vrot.lane.b32.xlu0 %v3590_v44, %s4834_s27  ;;  %3615 = vrot.lane.b32.xlu1 %v3592_v51, %s4833_s26 }
 0x6fe   : > { %3635 = vrot.lane.b32.xlu0 %v3590_v44, %s4835_s29  ;;  %3627 = vrot.lane.b32.xlu1 %v3592_v51, %s4834_s27 }
 0x702   : > { %3647 = vrot.lane.b32.xlu0 %v3590_v44, %s4831_s21  ;;  %3639 = vrot.lane.b32.xlu1 %v3592_v51, %s4835_s29 }
 0x706   : > { %3659 = vrot.lane.b32.xlu0 %v3590_v44, %s4836_s0  ;;  %3651 = vrot.lane.b32.xlu1 %v3592_v51, %s4831_s21 }
 0x70a   : > { %3671 = vrot.lane.b32.xlu0 %v3590_v44, %s4829_s23  ;;  %3663 = vrot.lane.b32.xlu1 %v3592_v51, %s4836_s0 }
 0x70e   : > { %3597 = vrot.lane.b32.xlu0 %v3589_v34, %s4827_s30  ;;  %3675 = vrot.lane.b32.xlu1 %v3592_v51, %s4829_s23 }
 0x712   : > { %3609 = vrot.lane.b32.xlu0 %v3589_v34, %s4833_s26  ;;  %3720 = vrot.lane.b32.xlu1 %v2756_v43, %s4837_s22 }
 0x716   : > { %3621 = vrot.lane.b32.xlu0 %v3589_v34, %s4834_s27  ;;  %3601 = vrot.lane.b32.xlu1 %v5899_v62, %s4827_s30  ;;  %s3825_s30 = sshll.u32 %s6019_s25, 5 }
 0x717   : > { %s5940_s18 = scalar_lea.vmem %s5990_s17, %s3825_s30 }
 0x71a   : > { %3633 = vrot.lane.b32.xlu0 %v3589_v34, %s4835_s29  ;;  %3613 = vrot.lane.b32.xlu1 %v5899_v62, %s4833_s26 }
 0x71e   : > { %3645 = vrot.lane.b32.xlu0 %v3589_v34, %s4831_s21  ;;  %3625 = vrot.lane.b32.xlu1 %v5899_v62, %s4834_s27 }
 0x722   : > { %3657 = vrot.lane.b32.xlu0 %v3589_v34, %s4836_s0  ;;  %3637 = vrot.lane.b32.xlu1 %v5899_v62, %s4835_s29 }
 0x726   : > { %3669 = vrot.lane.b32.xlu0 %v3589_v34, %s4829_s23  ;;  %3649 = vrot.lane.b32.xlu1 %v5899_v62, %s4831_s21 }
 0x72a   : > { %3716 = vrot.lane.b32.xlu0 %v2754_v36, %s4837_s22  ;;  %3661 = vrot.lane.b32.xlu1 %v5899_v62, %s4836_s0 }
 0x72e   : > { %3673 = vrot.lane.b32.xlu1 %v5899_v62, %s4829_s23 }
 0x764   : > { %v3600_v2 = vpop.permute.xlu0 %3599 }
 0x765   : > { %v3682_v19 = vsel %vm2165_vm3, %v3600_v2, %v3590_v44 }
 0x768   : > { %v3612_v58 = vpop.permute.xlu0 %3611  ;;  %v3604_v49 = vpop.permute.xlu1 %3603 }
 0x769   : > { %v3686_v52 = vsel %vm1172_vm15, %v3682_v19, %v3612_v58  ;;  %v3684_v42 = vsel %vm2165_vm3, %v3604_v49, %v3592_v51 }
 0x76c   : > { %v3624_v29 = vpop.permute.xlu0 %3623  ;;  %v3616_v1 = vpop.permute.xlu1 %3615 }
 0x76d   : > { %v3691_v17 = vsel %vm3689_vm4, %v3686_v52, %v3624_v29  ;;  %v3688_v9 = vsel %vm1172_vm15, %v3684_v42, %v3616_v1 }
 0x770   : > { %v3636_v3 = vpop.permute.xlu0 %3635  ;;  %v3628_v55 = vpop.permute.xlu1 %3627 }
 0x771   : > { %v3695_v11 = vsel %vm551_vm1, %v3691_v17, %v3636_v3  ;;  %v3693_v53 = vsel %vm3689_vm4, %v3688_v9, %v3628_v55 }
 0x774   : > { %v3648_v46 = vpop.permute.xlu0 %3647  ;;  %v3640_v26 = vpop.permute.xlu1 %3639 }
 0x775   : > { %v3700_v47 = vsel %vm3698_vm5, %v3695_v11, %v3648_v46  ;;  %v3697_v0 = vsel %vm551_vm1, %v3693_v53, %v3640_v26 }
 0x778   : > { %v3660_v40 = vpop.permute.xlu0 %3659  ;;  %v3652_v45 = vpop.permute.xlu1 %3651 }
 0x779   : > { %v3704_v56 = vsel %vm2830_vm2, %v3700_v47, %v3660_v40  ;;  %v3702_v32 = vsel %vm3698_vm5, %v3697_v0, %v3652_v45 }
 0x77c   : > { %v3672_v38 = vpop.permute.xlu0 %3671  ;;  %v3664_v23 = vpop.permute.xlu1 %3663 }
 0x77d   : > { %v3708_v50 = vsel %vm2793_vm0, %v3704_v56, %v3672_v38  ;;  %v3706_v18 = vsel %vm2830_vm2, %v3702_v32, %v3664_v23 }
 0x77e   : > { %v3712_v16 = vadd.f32 %v3708_v50, %v5769_v21 }
 0x780   : > { %3728 = vrot.lane.b32.xlu0 %v3712_v16, %s4837_s22  ;;  %v3598_v54 = vpop.permute.xlu0 %3597  ;;  %v3676_v48 = vpop.permute.xlu1 %3675 }
 0x781   : > { %v3710_v41 = vsel %vm2793_vm0, %v3706_v18, %v3676_v48  ;;  %v3681_v21 = vsel %vm2165_vm3, %v3598_v54, %v3589_v34 }
 0x782   : > { %v3714_v22 = vadd.f32 %v3710_v41, %v5829_v13 }
 0x784   : > { %v3610_v24 = vpop.permute.xlu0 %3609  ;;  %3732 = vrot.lane.b32.xlu1 %v3714_v22, %s4837_s22  ;;  %v3721_v28 = vpop.permute.xlu1 %3720 }
 0x785   : > { %v3685_v37 = vsel %vm1172_vm15, %v3681_v21, %v3610_v24  ;;  %v3724_v8 = vsel %vm1474_vm14, %v2755_v25, %v3721_v28 }
 0x786   : > { %3726 = vst [vmem:[%s5940_s18 + $0x8] sm:$0xff] %v3724_v8 }
 0x788   : > { %v3622_v13 = vpop.permute.xlu0 %3621  ;;  %v3602_v30 = vpop.permute.xlu1 %3601 }
 0x789   : > { %v3690_v10 = vsel %vm3689_vm4, %v3685_v37, %v3622_v13  ;;  %v3683_v33 = vsel %vm2165_vm3, %v3602_v30, %v5899_v62 }
 0x78c   : > { %v3634_v39 = vpop.permute.xlu0 %3633  ;;  %v3614_v60 = vpop.permute.xlu1 %3613 }
 0x78d   : > { %v3694_v5 = vsel %vm551_vm1, %v3690_v10, %v3634_v39  ;;  %v3687_v63 = vsel %vm1172_vm15, %v3683_v33, %v3614_v60 }
 0x790   : > { %v3646_v15 = vpop.permute.xlu0 %3645  ;;  %v3626_v4 = vpop.permute.xlu1 %3625 }
 0x791   : > { %v3699_v20 = vsel %vm3698_vm5, %v3694_v5, %v3646_v15  ;;  %v3692_v44 = vsel %vm3689_vm4, %v3687_v63, %v3626_v4 }
 0x794   : > { %v3658_v27 = vpop.permute.xlu0 %3657  ;;  %v3638_v59 = vpop.permute.xlu1 %3637 }
 0x795   : > { %v3703_v7 = vsel %vm2830_vm2, %v3699_v20, %v3658_v27  ;;  %v3696_v12 = vsel %vm551_vm1, %v3692_v44, %v3638_v59 }
 0x798   : > { %v3670_v51 = vpop.permute.xlu0 %3669  ;;  %v3650_v61 = vpop.permute.xlu1 %3649 }
 0x799   : > { %v3707_v34 = vsel %vm2793_vm0, %v3703_v7, %v3670_v51  ;;  %v3701_v43 = vsel %vm3698_vm5, %v3696_v12, %v3650_v61 }
 0x79a   : > { %v3711_v49 = vadd.f32 %v3707_v34, %v5761_v6 }
 0x79c   : > { %v3717_v62 = vpop.permute.xlu0 %3716  ;;  %v3662_v2 = vpop.permute.xlu1 %3661 }
 0x79d   : > { %v3723_v36 = vsel %vm1474_vm14, %v2753_v14, %v3717_v62  ;;  %v3705_v29 = vsel %vm2830_vm2, %v3701_v43, %v3662_v2 }
 0x79e   : > { %3725 = vst [vmem:[%s5940_s18] sm:$0xff] %v3723_v36 }
 0x7a0   : > { %v3674_v58 = vpop.permute.xlu1 %3673 }
 0x7a1   : > { %v3709_v1 = vsel %vm2793_vm0, %v3705_v29, %v3674_v58 }
 0x7a2   : > { %v3713_v46 = vadd.f32 %v3709_v1, %v5777_v57 }
 0x7f2   : > { %v3729_v3 = vpop.permute.xlu0 %3728 }
 0x7f3   : > { %v3735_v55 = vsel %vm1474_vm14, %v3711_v49, %v3729_v3 }
 0x7f4   : > { %3821 = vst [vmem:[%s5940_s18 + $0x10] sm:$0xff] %v3735_v55 }
 0x7f6   : > { %v3733_v26 = vpop.permute.xlu1 %3732 }
 0x7f7   : > { %v3736_v35 = vsel %vm1474_vm14, %v3713_v46, %v3733_v26 }
 0x7f8   : > { %3822 = vst [vmem:[%s5940_s18 + $0x18] sm:$0xff] %v3736_v35 }
 0x7f9 PF: > { %s27_s24 = sadd.s32 1, %s4809_s24  }
 0x7fa   : > { %p24_p4 = scmp.ge.s32.totalorder %s27_s24, 4  }
 0x7fc   :  { %26 = sbr.rel (!%p24_p4) target bundleno = 3 (0x3), region = 119 }

</bundles_post_ra>
